<compile_context>
chip_gen: v6e
topology: v6e:2x2x1
jax: 0.10.0
libtpu: 0.0.40
codegen_flags: <defaults>
</compile_context>

<pallas_src>
import functools
import math

import jax
import jax.numpy as jnp
from jax import lax
from jax.experimental import pallas as pl
from jax.experimental.pallas import tpu as pltpu


def _layernorm(x, gamma, beta, eps=1e-5):
    mean = jnp.mean(x, axis=-1, keepdims=True)
    var = jnp.mean(jnp.square(x - mean), axis=-1, keepdims=True)
    return (x - mean) * lax.rsqrt(var + eps) * gamma + beta


def _transformer_cell_kernel(x_ref, wqkv_ref, wo_ref, bo_ref,
                             w1_ref, b1_ref, w2_ref, b2_ref,
                             g1_ref, be1_ref, g2_ref, be2_ref,
                             o_ref, *, heads, nodes):
    tokens, C = x_ref.shape            # token order is (b, t, n); C = embed_size
    Dh = C // heads
    N = nodes
    G = tokens // N                    # number of attention groups (b, t pairs) in block
    scale = 1.0 / math.sqrt(Dh)

    x2 = x_ref[...]                    # (tokens, C) f32

    # ---- Fused Q/K/V projection: one MXU matmul (tokens, C) @ (C, 3C) ----
    qkv = jnp.dot(x2, wqkv_ref[...], preferred_element_type=jnp.float32)

    # Per-head Q/K/V via static lane slices, stacked along the leading (batch) axis
    # so the whole attention runs as one batched op chain (batch = heads * G).
    q_list, k_list, v_list = [], [], []
    for h in range(heads):
        lo = h * Dh
        q_list.append(qkv[:, lo:lo + Dh].reshape(G, N, Dh))
        k_list.append(qkv[:, C + lo:C + lo + Dh].reshape(G, N, Dh))
        v_list.append(qkv[:, 2 * C + lo:2 * C + lo + Dh].reshape(G, N, Dh))
    qs = jnp.concatenate(q_list, axis=0)       # (heads*G, N, Dh)
    ks = jnp.concatenate(k_list, axis=0)
    vs = jnp.concatenate(v_list, axis=0)

    # ---- Scaled dot-product attention over the node axis (single batched chain) ----
    scores = jnp.einsum('gnd,gmd->gnm', qs, ks,
                        preferred_element_type=jnp.float32) * scale
    scores = scores - jnp.max(scores, axis=-1, keepdims=True)
    p = jnp.exp(scores)
    p = p * pl.reciprocal(jnp.sum(p, axis=-1, keepdims=True), approx=True)
    ctx = jnp.einsum('gnm,gmd->gnd', p, vs,
                     preferred_element_type=jnp.float32)   # (heads*G, N, Dh)

    # Re-concatenate heads along the channel axis, then ONE fc_out matmul (K = C).
    ctx_cat = jnp.concatenate([ctx[h * G:(h + 1) * G] for h in range(heads)],
                              axis=-1).reshape(tokens, C)
    attn_out = jnp.dot(ctx_cat, wo_ref[...],
                       preferred_element_type=jnp.float32) + bo_ref[...]

    # ---- Residual + LayerNorm1 (dropout p=0 -> identity) ----
    xs = _layernorm(attn_out + x2, g1_ref[...], be1_ref[...])

    # ---- Feed-forward: Linear(C, 2C) -> ReLU -> Linear(2C, C) ----
    hidden = jnp.dot(xs, w1_ref[...], preferred_element_type=jnp.float32) + b1_ref[...]
    hidden = jnp.maximum(hidden, 0.0)
    ff = jnp.dot(hidden, w2_ref[...], preferred_element_type=jnp.float32) + b2_ref[...]

    # ---- Residual + LayerNorm2 ----
    o_ref[...] = _layernorm(ff + xs, g2_ref[...], be2_ref[...]).astype(o_ref.dtype)


def _num_parallel_blocks(total_tokens, nodes):
    """2-way 'parallel' token split only on 2-TensorCore devices (v7x / v4 megacore)."""
    try:
        kind = jax.devices()[0].device_kind.lower()
    except Exception:
        return 1
    n = 2 if ('v7' in kind or 'v4' in kind) else 1
    if total_tokens % n or (total_tokens // n) % nodes:
        return 1
    return n


def transformer_cell(x, params, heads):
    """x: (B, N, T, C) float32 -> (B, N, T, C) float32 (matches Transformer_cell)."""
    B, N, T, C = x.shape
    tokens = B * T * N

    # Token order (b, t, n): attention groups (fixed b, t; all n) are contiguous rows.
    # TODO(synk): this permute stays JAX-side; folding it into the kernel would need a
    # second-minor relayout that Mosaic may reject at these tiny tile sizes.
    xt = jnp.transpose(x, (0, 2, 1, 3)).reshape(tokens, C)

    # PyTorch Linear stores weight as (out, in); pre-transpose and fuse Wq|Wk|Wv.
    wqkv_t = jnp.concatenate([params['wq'].T, params['wk'].T, params['wv'].T], axis=1)
    wo_t = params['wo'].T
    w1_t = params['w1'].T
    w2_t = params['w2'].T
    bo = params['bo'].reshape(1, C)
    b1 = params['b1'].reshape(1, 2 * C)
    b2 = params['b2'].reshape(1, C)
    g1 = params['g1'].reshape(1, C)
    be1 = params['be1'].reshape(1, C)
    g2 = params['g2'].reshape(1, C)
    be2 = params['be2'].reshape(1, C)

    n_par = _num_parallel_blocks(tokens, N)
    tok_blk = tokens // n_par

    def rep(a):  # replicated full-array (2D) block
        return pl.BlockSpec(a.shape, lambda i: (0, 0))

    kernel = functools.partial(_transformer_cell_kernel, heads=heads, nodes=N)
    out2 = pl.pallas_call(
        kernel,
        out_shape=jax.ShapeDtypeStruct((tokens, C), jnp.float32),
        grid=(n_par,),
        in_specs=[
            pl.BlockSpec((tok_blk, C), lambda i: (i, 0)),
            rep(wqkv_t), rep(wo_t), rep(bo),
            rep(w1_t), rep(b1), rep(w2_t), rep(b2),
            rep(g1), rep(be1), rep(g2), rep(be2),
        ],
        out_specs=pl.BlockSpec((tok_blk, C), lambda i: (i, 0)),
        compiler_params=pltpu.CompilerParams(dimension_semantics=("parallel",)),
    )(xt, wqkv_t, wo_t, bo, w1_t, b1, w2_t, b2, g1, be1, g2, be2)

    return out2.reshape(B, T, N, C).transpose(0, 2, 1, 3)   # back to (B, N, T, C)


def reference(x, p, heads):
    """Pure-JAX reimplementation of the PyTorch forward (for verification)."""
    B, N, T, C = x.shape
    Dh = C // heads

    def lin(z, w, b=None):
        y = jnp.einsum('...c,dc->...d', z, w)
        return y if b is None else y + b

    q = lin(x, p['wq']).reshape(B, N, T, heads, Dh).transpose(0, 3, 2, 1, 4)
    k = lin(x, p['wk']).reshape(B, N, T, heads, Dh).transpose(0, 3, 2, 1, 4)
    v = lin(x, p['wv']).reshape(B, N, T, heads, Dh).transpose(0, 3, 2, 1, 4)
    scores = jnp.einsum('bhtnd,bhtmd->bhtnm', q, k) / math.sqrt(Dh)
    attn = jax.nn.softmax(scores, axis=-1)
    ctx = jnp.einsum('bhtnm,bhtmd->bhtnd', attn, v)
    ctx = ctx.transpose(0, 3, 2, 1, 4).reshape(B, N, T, C)
    so = lin(ctx, p['wo'], p['bo'])

    def ln(z, g, bta):
        m = z.mean(-1, keepdims=True)
        v_ = ((z - m) ** 2).mean(-1, keepdims=True)
        return (z - m) / jnp.sqrt(v_ + 1e-5) * g + bta

    xs = ln(so + x, p['g1'], p['be1'])
    ff = lin(jax.nn.relu(lin(xs, p['w1'], p['b1'])), p['w2'], p['b2'])
    return ln(ff + xs, p['g2'], p['be2'])


if __name__ == "__main__":
    B, N, T, C, H = 2, 8, 8, 32, 4     # batch, nodes, time, embed_size, heads
    key = jax.random.PRNGKey(0)
    ks = jax.random.split(key, 12)

    x = jax.random.normal(ks[0], (B, N, T, C), jnp.float32)

    params = {
        'wq': 0.1 * jax.random.normal(ks[1], (C, C), jnp.float32),
        'wk': 0.1 * jax.random.normal(ks[2], (C, C), jnp.float32),
        'wv': 0.1 * jax.random.normal(ks[3], (C, C), jnp.float32),
        'wo': 0.1 * jax.random.normal(ks[4], (C, C), jnp.float32),
        'bo': 0.1 * jax.random.normal(ks[5], (C,), jnp.float32),
        'w1': 0.1 * jax.random.normal(ks[6], (2 * C, C), jnp.float32),
        'b1': 0.1 * jax.random.normal(ks[7], (2 * C,), jnp.float32),
        'w2': 0.1 * jax.random.normal(ks[8], (C, 2 * C), jnp.float32),
        'b2': 0.1 * jax.random.normal(ks[9], (C,), jnp.float32),
        'g1': jnp.ones((C,), jnp.float32),       # LayerNorm defaults: weight=1, bias=0
        'be1': jnp.zeros((C,), jnp.float32),
        'g2': jnp.ones((C,), jnp.float32),
        'be2': jnp.zeros((C,), jnp.float32),
    }

    out = transformer_cell(x, params, H)
    out = jax.block_until_ready(out)

    ref = reference(x, params, H)
    assert out.shape == (B, N, T, C)
    # Tolerance slightly relaxed vs f32-exact because the softmax denominator uses the
    # hardware approximate reciprocal (EUP).
    assert jnp.allclose(out, ref, atol=2e-3, rtol=2e-3), \
        f"max abs err {jnp.max(jnp.abs(out - ref))}"

    print("KERNEL_OK")
</pallas_src>

<mosaic_0001>
module attributes {stable_mosaic.version = 11 : i64} {
  func.func @_transformer_cell_kernel(%arg0: i32, %arg1: memref<128x32xf32, #tpu.memory_space<vmem>>, %arg2: memref<32x96xf32, #tpu.memory_space<vmem>>, %arg3: memref<32x32xf32, #tpu.memory_space<vmem>>, %arg4: memref<1x32xf32, #tpu.memory_space<vmem>>, %arg5: memref<32x64xf32, #tpu.memory_space<vmem>>, %arg6: memref<1x64xf32, #tpu.memory_space<vmem>>, %arg7: memref<64x32xf32, #tpu.memory_space<vmem>>, %arg8: memref<1x32xf32, #tpu.memory_space<vmem>>, %arg9: memref<1x32xf32, #tpu.memory_space<vmem>>, %arg10: memref<1x32xf32, #tpu.memory_space<vmem>>, %arg11: memref<1x32xf32, #tpu.memory_space<vmem>>, %arg12: memref<1x32xf32, #tpu.memory_space<vmem>>, %arg13: memref<128x32xf32, #tpu.memory_space<vmem>>) attributes {dimension_semantics = [#tpu.dimension_semantics<parallel>], iteration_bounds = array<i64: 1>, scalar_prefetch = 0 : i64, scratch_operands = 0 : i64, tpu.core_type = #tpu.core_type<tc>, window_params = [{transform_indices = @transform_0, window_bounds = array<i64: 128, 32>}, {pipeline_mode = #tpu.pipeline_mode<synchronous>, transform_indices = @transform_1, window_bounds = array<i64: 32, 96>}, {pipeline_mode = #tpu.pipeline_mode<synchronous>, transform_indices = @transform_2, window_bounds = array<i64: 32, 32>}, {pipeline_mode = #tpu.pipeline_mode<synchronous>, transform_indices = @transform_3, window_bounds = array<i64: 1, 32>}, {pipeline_mode = #tpu.pipeline_mode<synchronous>, transform_indices = @transform_4, window_bounds = array<i64: 32, 64>}, {pipeline_mode = #tpu.pipeline_mode<synchronous>, transform_indices = @transform_5, window_bounds = array<i64: 1, 64>}, {pipeline_mode = #tpu.pipeline_mode<synchronous>, transform_indices = @transform_6, window_bounds = array<i64: 64, 32>}, {pipeline_mode = #tpu.pipeline_mode<synchronous>, transform_indices = @transform_7, window_bounds = array<i64: 1, 32>}, {pipeline_mode = #tpu.pipeline_mode<synchronous>, transform_indices = @transform_8, window_bounds = array<i64: 1, 32>}, {pipeline_mode = #tpu.pipeline_mode<synchronous>, transform_indices = @transform_9, window_bounds = array<i64: 1, 32>}, {pipeline_mode = #tpu.pipeline_mode<synchronous>, transform_indices = @transform_10, window_bounds = array<i64: 1, 32>}, {pipeline_mode = #tpu.pipeline_mode<synchronous>, transform_indices = @transform_11, window_bounds = array<i64: 1, 32>}, {transform_indices = @transform_12, window_bounds = array<i64: 128, 32>}]} {
    %c0 = arith.constant 0 : index
    %c0_0 = arith.constant 0 : index
    %0 = vector.load %arg1[%c0, %c0_0] : memref<128x32xf32, #tpu.memory_space<vmem>>, vector<128x32xf32>
    %c0_1 = arith.constant 0 : index
    %c0_2 = arith.constant 0 : index
    %1 = vector.load %arg2[%c0_1, %c0_2] : memref<32x96xf32, #tpu.memory_space<vmem>>, vector<32x96xf32>
    %cst = arith.constant dense<0.000000e+00> : vector<128x96xf32>
    %2 = tpu.matmul %0, %1, %cst {dimension_numbers = #tpu.dot_dimension_numbers<[1], [0], [0], [1], [0, 0, 1, 1], [], []>} : vector<128x32xf32>, vector<32x96xf32>, vector<128x96xf32> -> vector<128x96xf32>
    %3 = vector.extract_strided_slice %2 {offsets = [0, 0], sizes = [128, 8], strides = [1, 1]} : vector<128x96xf32> to vector<128x8xf32>
    %4 = vector.shape_cast %3 : vector<128x8xf32> to vector<16x8x8xf32>
    %5 = vector.extract_strided_slice %2 {offsets = [0, 32], sizes = [128, 8], strides = [1, 1]} : vector<128x96xf32> to vector<128x8xf32>
    %6 = vector.shape_cast %5 : vector<128x8xf32> to vector<16x8x8xf32>
    %7 = vector.extract_strided_slice %2 {offsets = [0, 64], sizes = [128, 8], strides = [1, 1]} : vector<128x96xf32> to vector<128x8xf32>
    %8 = vector.shape_cast %7 : vector<128x8xf32> to vector<16x8x8xf32>
    %9 = vector.extract_strided_slice %2 {offsets = [0, 8], sizes = [128, 8], strides = [1, 1]} : vector<128x96xf32> to vector<128x8xf32>
    %10 = vector.shape_cast %9 : vector<128x8xf32> to vector<16x8x8xf32>
    %11 = vector.extract_strided_slice %2 {offsets = [0, 40], sizes = [128, 8], strides = [1, 1]} : vector<128x96xf32> to vector<128x8xf32>
    %12 = vector.shape_cast %11 : vector<128x8xf32> to vector<16x8x8xf32>
    %13 = vector.extract_strided_slice %2 {offsets = [0, 72], sizes = [128, 8], strides = [1, 1]} : vector<128x96xf32> to vector<128x8xf32>
    %14 = vector.shape_cast %13 : vector<128x8xf32> to vector<16x8x8xf32>
    %15 = vector.extract_strided_slice %2 {offsets = [0, 16], sizes = [128, 8], strides = [1, 1]} : vector<128x96xf32> to vector<128x8xf32>
    %16 = vector.shape_cast %15 : vector<128x8xf32> to vector<16x8x8xf32>
    %17 = vector.extract_strided_slice %2 {offsets = [0, 48], sizes = [128, 8], strides = [1, 1]} : vector<128x96xf32> to vector<128x8xf32>
    %18 = vector.shape_cast %17 : vector<128x8xf32> to vector<16x8x8xf32>
    %19 = vector.extract_strided_slice %2 {offsets = [0, 80], sizes = [128, 8], strides = [1, 1]} : vector<128x96xf32> to vector<128x8xf32>
    %20 = vector.shape_cast %19 : vector<128x8xf32> to vector<16x8x8xf32>
    %21 = vector.extract_strided_slice %2 {offsets = [0, 24], sizes = [128, 8], strides = [1, 1]} : vector<128x96xf32> to vector<128x8xf32>
    %22 = vector.shape_cast %21 : vector<128x8xf32> to vector<16x8x8xf32>
    %23 = vector.extract_strided_slice %2 {offsets = [0, 56], sizes = [128, 8], strides = [1, 1]} : vector<128x96xf32> to vector<128x8xf32>
    %24 = vector.shape_cast %23 : vector<128x8xf32> to vector<16x8x8xf32>
    %25 = vector.extract_strided_slice %2 {offsets = [0, 88], sizes = [128, 8], strides = [1, 1]} : vector<128x96xf32> to vector<128x8xf32>
    %26 = vector.shape_cast %25 : vector<128x8xf32> to vector<16x8x8xf32>
    %27 = tpu.concatenate %4, %10, %16, %22 in 0 : vector<16x8x8xf32>, vector<16x8x8xf32>, vector<16x8x8xf32>, vector<16x8x8xf32> -> vector<64x8x8xf32>
    %28 = tpu.concatenate %6, %12, %18, %24 in 0 : vector<16x8x8xf32>, vector<16x8x8xf32>, vector<16x8x8xf32>, vector<16x8x8xf32> -> vector<64x8x8xf32>
    %29 = tpu.concatenate %8, %14, %20, %26 in 0 : vector<16x8x8xf32>, vector<16x8x8xf32>, vector<16x8x8xf32>, vector<16x8x8xf32> -> vector<64x8x8xf32>
    "tpu.trace_start"() <{level = 10 : i32, message = "gnd,gmd->gnm"}> : () -> ()
    %cst_3 = arith.constant dense<0.000000e+00> : vector<64x8x8xf32>
    %30 = tpu.matmul %27, %28, %cst_3 {dimension_numbers = #tpu.dot_dimension_numbers<[2], [2], [1], [1], [0, 0, 0, 1, 1, 1], [0], [0]>} : vector<64x8x8xf32>, vector<64x8x8xf32>, vector<64x8x8xf32> -> vector<64x8x8xf32>
    "tpu.trace_stop"() : () -> ()
    %cst_4 = arith.constant 0.353553385 : f32
    %31 = vector.broadcast %cst_4 : f32 to vector<64x8x8xf32>
    %32 = arith.mulf %30, %31 : vector<64x8x8xf32>
    %cst_5 = arith.constant dense<0xFF800000> : vector<64x8xf32>
    %33 = vector.multi_reduction <maximumf>, %32, %cst_5 [2] : vector<64x8x8xf32> to vector<64x8xf32>
    %34 = vector.shape_cast %33 : vector<64x8xf32> to vector<64x8x1xf32>
    %35 = vector.broadcast %34 : vector<64x8x1xf32> to vector<64x8x8xf32>
    %36 = arith.subf %32, %35 : vector<64x8x8xf32>
    %37 = math.exp %36 : vector<64x8x8xf32>
    %cst_6 = arith.constant dense<0.000000e+00> : vector<64x8xf32>
    %38 = vector.multi_reduction <add>, %37, %cst_6 [2] : vector<64x8x8xf32> to vector<64x8xf32>
    %39 = vector.shape_cast %38 : vector<64x8xf32> to vector<64x8x1xf32>
    %40 = tpu.reciprocal %39 {approx = true} : vector<64x8x1xf32> -> vector<64x8x1xf32>
    %41 = vector.broadcast %40 : vector<64x8x1xf32> to vector<64x8x8xf32>
    %42 = arith.mulf %37, %41 : vector<64x8x8xf32>
    "tpu.trace_start"() <{level = 10 : i32, message = "gnm,gmd->gnd"}> : () -> ()
    %cst_7 = arith.constant dense<0.000000e+00> : vector<64x8x8xf32>
    %43 = tpu.matmul %42, %29, %cst_7 {dimension_numbers = #tpu.dot_dimension_numbers<[2], [1], [1], [2], [0, 0, 0, 1, 1, 2], [0], [0]>} : vector<64x8x8xf32>, vector<64x8x8xf32>, vector<64x8x8xf32> -> vector<64x8x8xf32>
    "tpu.trace_stop"() : () -> ()
    %44 = vector.extract_strided_slice %43 {offsets = [0, 0, 0], sizes = [16, 8, 8], strides = [1, 1, 1]} : vector<64x8x8xf32> to vector<16x8x8xf32>
    %45 = vector.extract_strided_slice %43 {offsets = [16, 0, 0], sizes = [16, 8, 8], strides = [1, 1, 1]} : vector<64x8x8xf32> to vector<16x8x8xf32>
    %46 = vector.extract_strided_slice %43 {offsets = [32, 0, 0], sizes = [16, 8, 8], strides = [1, 1, 1]} : vector<64x8x8xf32> to vector<16x8x8xf32>
    %47 = vector.extract_strided_slice %43 {offsets = [48, 0, 0], sizes = [16, 8, 8], strides = [1, 1, 1]} : vector<64x8x8xf32> to vector<16x8x8xf32>
    %48 = tpu.concatenate %44, %45, %46, %47 in 2 : vector<16x8x8xf32>, vector<16x8x8xf32>, vector<16x8x8xf32>, vector<16x8x8xf32> -> vector<16x8x32xf32>
    %49 = vector.shape_cast %48 : vector<16x8x32xf32> to vector<128x32xf32>
    %c0_8 = arith.constant 0 : index
    %c0_9 = arith.constant 0 : index
    %50 = vector.load %arg3[%c0_8, %c0_9] : memref<32x32xf32, #tpu.memory_space<vmem>>, vector<32x32xf32>
    %cst_10 = arith.constant dense<0.000000e+00> : vector<128x32xf32>
    %51 = tpu.matmul %49, %50, %cst_10 {dimension_numbers = #tpu.dot_dimension_numbers<[1], [0], [0], [1], [0, 0, 1, 1], [], []>} : vector<128x32xf32>, vector<32x32xf32>, vector<128x32xf32> -> vector<128x32xf32>
    %c0_11 = arith.constant 0 : index
    %c0_12 = arith.constant 0 : index
    %52 = vector.load %arg4[%c0_11, %c0_12] : memref<1x32xf32, #tpu.memory_space<vmem>>, vector<1x32xf32>
    %53 = vector.broadcast %52 : vector<1x32xf32> to vector<128x32xf32>
    %54 = arith.addf %51, %53 : vector<128x32xf32>
    %55 = arith.addf %54, %0 : vector<128x32xf32>
    %c0_13 = arith.constant 0 : index
    %c0_14 = arith.constant 0 : index
    %56 = vector.load %arg9[%c0_13, %c0_14] : memref<1x32xf32, #tpu.memory_space<vmem>>, vector<1x32xf32>
    %c0_15 = arith.constant 0 : index
    %c0_16 = arith.constant 0 : index
    %57 = vector.load %arg10[%c0_15, %c0_16] : memref<1x32xf32, #tpu.memory_space<vmem>>, vector<1x32xf32>
    %cst_17 = arith.constant dense<0.000000e+00> : vector<128xf32>
    %58 = vector.multi_reduction <add>, %55, %cst_17 [1] : vector<128x32xf32> to vector<128xf32>
    %59 = vector.shape_cast %58 : vector<128xf32> to vector<128x1xf32>
    %cst_18 = arith.constant 3.200000e+01 : f32
    %60 = vector.broadcast %cst_18 : f32 to vector<128x1xf32>
    %61 = arith.divf %59, %60 : vector<128x1xf32>
    %62 = vector.broadcast %61 : vector<128x1xf32> to vector<128x32xf32>
    %63 = arith.subf %55, %62 : vector<128x32xf32>
    %64 = arith.mulf %63, %63 : vector<128x32xf32>
    %cst_19 = arith.constant dense<0.000000e+00> : vector<128xf32>
    %65 = vector.multi_reduction <add>, %64, %cst_19 [1] : vector<128x32xf32> to vector<128xf32>
    %66 = vector.shape_cast %65 : vector<128xf32> to vector<128x1xf32>
    %cst_20 = arith.constant 3.200000e+01 : f32
    %67 = vector.broadcast %cst_20 : f32 to vector<128x1xf32>
    %68 = arith.divf %66, %67 : vector<128x1xf32>
    %69 = vector.broadcast %61 : vector<128x1xf32> to vector<128x32xf32>
    %70 = arith.subf %55, %69 : vector<128x32xf32>
    %cst_21 = arith.constant 9.99999974E-6 : f32
    %71 = vector.broadcast %cst_21 : f32 to vector<128x1xf32>
    %72 = arith.addf %68, %71 : vector<128x1xf32>
    %73 = math.rsqrt %72 : vector<128x1xf32>
    %74 = vector.broadcast %73 : vector<128x1xf32> to vector<128x32xf32>
    %75 = arith.mulf %70, %74 : vector<128x32xf32>
    %76 = vector.broadcast %56 : vector<1x32xf32> to vector<128x32xf32>
    %77 = arith.mulf %75, %76 : vector<128x32xf32>
    %78 = vector.broadcast %57 : vector<1x32xf32> to vector<128x32xf32>
    %79 = arith.addf %77, %78 : vector<128x32xf32>
    %c0_22 = arith.constant 0 : index
    %c0_23 = arith.constant 0 : index
    %80 = vector.load %arg5[%c0_22, %c0_23] : memref<32x64xf32, #tpu.memory_space<vmem>>, vector<32x64xf32>
    %cst_24 = arith.constant dense<0.000000e+00> : vector<128x64xf32>
    %81 = tpu.matmul %79, %80, %cst_24 {dimension_numbers = #tpu.dot_dimension_numbers<[1], [0], [0], [1], [0, 0, 1, 1], [], []>} : vector<128x32xf32>, vector<32x64xf32>, vector<128x64xf32> -> vector<128x64xf32>
    %c0_25 = arith.constant 0 : index
    %c0_26 = arith.constant 0 : index
    %82 = vector.load %arg6[%c0_25, %c0_26] : memref<1x64xf32, #tpu.memory_space<vmem>>, vector<1x64xf32>
    %83 = vector.broadcast %82 : vector<1x64xf32> to vector<128x64xf32>
    %84 = arith.addf %81, %83 : vector<128x64xf32>
    %cst_27 = arith.constant 0.000000e+00 : f32
    %85 = vector.broadcast %cst_27 : f32 to vector<128x64xf32>
    %86 = arith.maximumf %84, %85 : vector<128x64xf32>
    %c0_28 = arith.constant 0 : index
    %c0_29 = arith.constant 0 : index
    %87 = vector.load %arg7[%c0_28, %c0_29] : memref<64x32xf32, #tpu.memory_space<vmem>>, vector<64x32xf32>
    %cst_30 = arith.constant dense<0.000000e+00> : vector<128x32xf32>
    %88 = tpu.matmul %86, %87, %cst_30 {dimension_numbers = #tpu.dot_dimension_numbers<[1], [0], [0], [1], [0, 0, 1, 1], [], []>} : vector<128x64xf32>, vector<64x32xf32>, vector<128x32xf32> -> vector<128x32xf32>
    %c0_31 = arith.constant 0 : index
    %c0_32 = arith.constant 0 : index
    %89 = vector.load %arg8[%c0_31, %c0_32] : memref<1x32xf32, #tpu.memory_space<vmem>>, vector<1x32xf32>
    %90 = vector.broadcast %89 : vector<1x32xf32> to vector<128x32xf32>
    %91 = arith.addf %88, %90 : vector<128x32xf32>
    %92 = arith.addf %91, %79 : vector<128x32xf32>
    %c0_33 = arith.constant 0 : index
    %c0_34 = arith.constant 0 : index
    %93 = vector.load %arg11[%c0_33, %c0_34] : memref<1x32xf32, #tpu.memory_space<vmem>>, vector<1x32xf32>
    %c0_35 = arith.constant 0 : index
    %c0_36 = arith.constant 0 : index
    %94 = vector.load %arg12[%c0_35, %c0_36] : memref<1x32xf32, #tpu.memory_space<vmem>>, vector<1x32xf32>
    %cst_37 = arith.constant dense<0.000000e+00> : vector<128xf32>
    %95 = vector.multi_reduction <add>, %92, %cst_37 [1] : vector<128x32xf32> to vector<128xf32>
    %96 = vector.shape_cast %95 : vector<128xf32> to vector<128x1xf32>
    %cst_38 = arith.constant 3.200000e+01 : f32
    %97 = vector.broadcast %cst_38 : f32 to vector<128x1xf32>
    %98 = arith.divf %96, %97 : vector<128x1xf32>
    %99 = vector.broadcast %98 : vector<128x1xf32> to vector<128x32xf32>
    %100 = arith.subf %92, %99 : vector<128x32xf32>
    %101 = arith.mulf %100, %100 : vector<128x32xf32>
    %cst_39 = arith.constant dense<0.000000e+00> : vector<128xf32>
    %102 = vector.multi_reduction <add>, %101, %cst_39 [1] : vector<128x32xf32> to vector<128xf32>
    %103 = vector.shape_cast %102 : vector<128xf32> to vector<128x1xf32>
    %cst_40 = arith.constant 3.200000e+01 : f32
    %104 = vector.broadcast %cst_40 : f32 to vector<128x1xf32>
    %105 = arith.divf %103, %104 : vector<128x1xf32>
    %106 = vector.broadcast %98 : vector<128x1xf32> to vector<128x32xf32>
    %107 = arith.subf %92, %106 : vector<128x32xf32>
    %cst_41 = arith.constant 9.99999974E-6 : f32
    %108 = vector.broadcast %cst_41 : f32 to vector<128x1xf32>
    %109 = arith.addf %105, %108 : vector<128x1xf32>
    %110 = math.rsqrt %109 : vector<128x1xf32>
    %111 = vector.broadcast %110 : vector<128x1xf32> to vector<128x32xf32>
    %112 = arith.mulf %107, %111 : vector<128x32xf32>
    %113 = vector.broadcast %93 : vector<1x32xf32> to vector<128x32xf32>
    %114 = arith.mulf %112, %113 : vector<128x32xf32>
    %115 = vector.broadcast %94 : vector<1x32xf32> to vector<128x32xf32>
    %116 = arith.addf %114, %115 : vector<128x32xf32>
    %c0_42 = arith.constant 0 : index
    %c0_43 = arith.constant 0 : index
    %117 = vector.load %arg13[%c0_42, %c0_43] : memref<128x32xf32, #tpu.memory_space<vmem>>, vector<128x32xf32>
    tpu.vector_store %arg13[%c0_42, %c0_43], %116 {strides = array<i32>} : memref<128x32xf32, #tpu.memory_space<vmem>>, vector<128x32xf32>,
    return
  }
  func.func @transform_0(%arg0: i32) -> (i32, i32) {
    %c0_i32 = arith.constant 0 : i32
    %c0_i32_0 = arith.constant 0 : i32
    return %arg0, %c0_i32 : i32, i32
  }
  func.func @transform_1(%arg0: i32) -> (i32, i32) {
    %c0_i32 = arith.constant 0 : i32
    %c0_i32_0 = arith.constant 0 : i32
    %c0_i32_1 = arith.constant 0 : i32
    return %c0_i32, %c0_i32_0 : i32, i32
  }
  func.func @transform_2(%arg0: i32) -> (i32, i32) {
    %c0_i32 = arith.constant 0 : i32
    %c0_i32_0 = arith.constant 0 : i32
    %c0_i32_1 = arith.constant 0 : i32
    return %c0_i32, %c0_i32_0 : i32, i32
  }
  func.func @transform_3(%arg0: i32) -> (i32, i32) {
    %c0_i32 = arith.constant 0 : i32
    %c0_i32_0 = arith.constant 0 : i32
    %c0_i32_1 = arith.constant 0 : i32
    return %c0_i32, %c0_i32_0 : i32, i32
  }
  func.func @transform_4(%arg0: i32) -> (i32, i32) {
    %c0_i32 = arith.constant 0 : i32
    %c0_i32_0 = arith.constant 0 : i32
    %c0_i32_1 = arith.constant 0 : i32
    return %c0_i32, %c0_i32_0 : i32, i32
  }
  func.func @transform_5(%arg0: i32) -> (i32, i32) {
    %c0_i32 = arith.constant 0 : i32
    %c0_i32_0 = arith.constant 0 : i32
    %c0_i32_1 = arith.constant 0 : i32
    return %c0_i32, %c0_i32_0 : i32, i32
  }
  func.func @transform_6(%arg0: i32) -> (i32, i32) {
    %c0_i32 = arith.constant 0 : i32
    %c0_i32_0 = arith.constant 0 : i32
    %c0_i32_1 = arith.constant 0 : i32
    return %c0_i32, %c0_i32_0 : i32, i32
  }
  func.func @transform_7(%arg0: i32) -> (i32, i32) {
    %c0_i32 = arith.constant 0 : i32
    %c0_i32_0 = arith.constant 0 : i32
    %c0_i32_1 = arith.constant 0 : i32
    return %c0_i32, %c0_i32_0 : i32, i32
  }
  func.func @transform_8(%arg0: i32) -> (i32, i32) {
    %c0_i32 = arith.constant 0 : i32
    %c0_i32_0 = arith.constant 0 : i32
    %c0_i32_1 = arith.constant 0 : i32
    return %c0_i32, %c0_i32_0 : i32, i32
  }
  func.func @transform_9(%arg0: i32) -> (i32, i32) {
    %c0_i32 = arith.constant 0 : i32
    %c0_i32_0 = arith.constant 0 : i32
    %c0_i32_1 = arith.constant 0 : i32
    return %c0_i32, %c0_i32_0 : i32, i32
  }
  func.func @transform_10(%arg0: i32) -> (i32, i32) {
    %c0_i32 = arith.constant 0 : i32
    %c0_i32_0 = arith.constant 0 : i32
    %c0_i32_1 = arith.constant 0 : i32
    return %c0_i32, %c0_i32_0 : i32, i32
  }
  func.func @transform_11(%arg0: i32) -> (i32, i32) {
    %c0_i32 = arith.constant 0 : i32
    %c0_i32_0 = arith.constant 0 : i32
    %c0_i32_1 = arith.constant 0 : i32
    return %c0_i32, %c0_i32_0 : i32, i32
  }
  func.func @transform_12(%arg0: i32) -> (i32, i32) {
    %c0_i32 = arith.constant 0 : i32
    %c0_i32_0 = arith.constant 0 : i32
    return %arg0, %c0_i32 : i32, i32
  }
}

</mosaic_0001>

<bundles_post_ra>
// kernel: tpu_custom_call.1
= control target key start
LH: loop header
LB: loop body
LE: loop exit
PB: predicated region body
PF: predicated region fallthrough
CT: control target
= control target key end

     0   :  { %vm61_vm0 = vcmask 261120   ;;  %v17296_v20 = vmov 0.0   ;;  %vm14034_vm1 = vmmov 0   ;;  %s14035_s23 = smov 96   ;;  %s14036_s24 = smov 120   ;;  %vm369_vm2 = vcmask 64512   ;;  %s17267_s1 = inlined_call_operand.vmem [shape: f32[32,96], index: 1, kind: input, shape index: {}]   ;;  %s17268_s0 = inlined_call_operand.vmem [shape: f32[128,32], index: 0, kind: input, shape index: {}]   ;;  %s17269_s2 = inlined_call_operand.vmem [shape: f32[32,32], index: 2, kind: input, shape index: {}]   ;;  %s17270_s3 = inlined_call_operand.vmem [shape: f32[1,32], index: 3, kind: input, shape index: {}]   ;;  %s17271_s4 = inlined_call_operand.vmem [shape: f32[32,64], index: 4, kind: input, shape index: {}]   ;;  %s17272_s6 = inlined_call_operand.vmem [shape: f32[64,32], index: 6, kind: input, shape index: {}]   ;;  %s17273_s8 = inlined_call_operand.vmem [shape: f32[1,32], index: 8, kind: input, shape index: {}]   ;;  %s17274_s9 = inlined_call_operand.vmem [shape: f32[1,32], index: 9, kind: input, shape index: {}]   ;;  %s17275_s5 = inlined_call_operand.vmem [shape: f32[1,64], index: 5, kind: input, shape index: {}]   ;;  %s17276_s7 = inlined_call_operand.vmem [shape: f32[1,32], index: 7, kind: input, shape index: {}]   ;;  %s17277_s10 = inlined_call_operand.vmem [shape: f32[1,32], index: 10, kind: input, shape index: {}]   ;;  %s17278_s11 = inlined_call_operand.vmem [shape: f32[1,32], index: 11, kind: input, shape index: {}]   ;;  %s17279_s12 = inlined_call_operand.vmem [shape: f32[128,32], index: 12, kind: output, shape index: {}]  }
   0x1   :  { %v60_v0 = vld [vmem:[%s17267_s1 + $0x18] sm:$0xff]  ;;  %v59_v1 = vld [vmem:[%s17267_s1 + $0x10] sm:$0xff]  ;;  %v41_v2 = vld [vmem:[%s17268_s0] sm:$0xff]  ;;  %12935 = vmatprep.subr.mxu1 %v17296_v20  ;;  %12937 = vmatprep.mubr.msk.f32.mxu1 %vm14034_vm1, %v17296_v20  ;;  %s14037_s25 = smov 112   ;;  %s14038_s26 = smov 104   ;;  %vm11072_vm3 = vcmask 130048  }
   0x2   :  { %12903 = vmatprep.subr.mxu0 %v60_v0  ;;  %v58_v3 = vld [vmem:[%s17267_s1 + $0x8] sm:$0xff]  ;;  %12911 = vmatprep.mubr.msk.f32.mxu0 %vm61_vm0, %v41_v2  ;;  %v57_v4 = vld [vmem:[%s17267_s1] sm:$0xff]  ;;  %v43_v6 = vld [vmem:[%s17268_s0 + $0x10] sm:$0xff]  ;;  %s14039_s27 = smov 64   ;;  %s14040_s28 = smov 8   ;;  %vm11089_vm4 = vcmask 195584  }
   0x3   :  { %12904 = vmatpush3.msra.mxu0 %v60_v0  ;;  %v42_v5 = vld [vmem:[%s17268_s0 + $0x8] sm:$0xff]  ;;  %v44_v7 = vld [vmem:[%s17268_s0 + $0x18] sm:$0xff]  ;;  %v45_v8 = vld [vmem:[%s17268_s0 + $0x20] sm:$0xff]  ;;  %s14041_s29 = smov 16   ;;  %s14042_s19 = smov 24   ;;  %vm11816_vm5 = vcmask 523264  }
   0x4   :  { %12905 = vmatprep.subr.mxu0 %v59_v1  ;;  %v46_v9 = vld [vmem:[%s17268_s0 + $0x28] sm:$0xff]  ;;  %v47_v10 = vld [vmem:[%s17268_s0 + $0x30] sm:$0xff]  ;;  %v48_v11 = vld [vmem:[%s17268_s0 + $0x38] sm:$0xff] }
   0x5   :  { %12906 = vmatpush3.msra.mxu0 %v59_v1  ;;  %v49_v12 = vld [vmem:[%s17268_s0 + $0x40] sm:$0xff]  ;;  %v50_v13 = vld [vmem:[%s17268_s0 + $0x48] sm:$0xff]  ;;  %v51_v14 = vld [vmem:[%s17268_s0 + $0x50] sm:$0xff] }
   0x6   :  { %12907 = vmatprep.subr.mxu0 %v58_v3  ;;  %v52_v15 = vld [vmem:[%s17268_s0 + $0x58] sm:$0xff]  ;;  %v53_v16 = vld [vmem:[%s17268_s0 + $0x60] sm:$0xff]  ;;  %v54_v17 = vld [vmem:[%s17268_s0 + $0x68] sm:$0xff] }
   0x7   :  { %12908 = vmatpush3.msra.mxu0 %v58_v3  ;;  %v55_v18 = vld [vmem:[%s17268_s0 + $0x70] sm:$0xff]  ;;  %v56_v19 = vld [vmem:[%s17268_s0 + $0x78] sm:$0xff] }
   0x8   :  { %12909 = vmatprep.subr.mxu0 %v57_v4 }
   0x9   :  { %12910 = vmatpush3.msra.mxu0 %v57_v4 }
   0xa   :  { %12912 = vmatmul.mubr.msk.f32.vlgmr.msra.gmra.mxu0 %vm61_vm0, %v42_v5  ;;  %12980 = vmatprep.subr.mxu0 %v17296_v20 }
   0xb   :  { %12914 = vmatprep.mubr.msk.f32.mxu0 %vm61_vm0, %v43_v6 }
   0xe   :  { %12915 = vmatmul.mubr.msk.f32.gmra.mxu0 %vm61_vm0, %v44_v7 }
   0xf   :  { %12917 = vmatprep.mubr.msk.f32.mxu0 %vm61_vm0, %v45_v8 }
  0x12   :  { %12918 = vmatmul.mubr.msk.f32.gmra.mxu0 %vm61_vm0, %v46_v9 }
  0x13   :  { %12920 = vmatprep.mubr.msk.f32.mxu0 %vm61_vm0, %v47_v10 }
  0x16   :  { %12921 = vmatmul.mubr.msk.f32.gmra.mxu0 %vm61_vm0, %v48_v11 }
  0x17   :  { %12923 = vmatprep.mubr.msk.f32.mxu0 %vm61_vm0, %v49_v12 }
  0x1a   :  { %12924 = vmatmul.mubr.msk.f32.gmra.mxu0 %vm61_vm0, %v50_v13 }
  0x1b   :  { %12926 = vmatprep.mubr.msk.f32.mxu0 %vm61_vm0, %v51_v14 }
  0x1e   :  { %12927 = vmatmul.mubr.msk.f32.gmra.mxu0 %vm61_vm0, %v52_v15 }
  0x1f   :  { %12929 = vmatprep.mubr.msk.f32.mxu0 %vm61_vm0, %v53_v16 }
  0x22   :  { %12930 = vmatmul.mubr.msk.f32.gmra.mxu0 %vm61_vm0, %v54_v17 }
  0x23   :  { %12932 = vmatprep.mubr.msk.f32.mxu0 %vm61_vm0, %v55_v18 }
  0x26   :  { %12933 = vmatmul.mubr.msk.f32.gmra.mxu0 %vm61_vm0, %v56_v19 }
  0x27   :  { %12982 = vmatprep.mubr.msk.f32.mxu0 %vm14034_vm1, %v17296_v20 }
  0xca   :  { %v14190_v21 = vpop.f32.mrf.mxu0 }
  0xcb   :  { %444 = vrot.lane.b32.xlu1 %v14190_v21, %s14035_s23  ;;  %273 = vrot.lane.b32.xlu0 %v14190_v21, %s14036_s24 }
  0xcc   :  { %v14196_v22 = vpop.f32.mrf.mxu0 }
  0xce   :  { %v14210_v23 = vpop.f32.mrf.mxu0 }
  0xcf   :  { %305 = vrot.lane.b32.xlu1 %v14190_v21, %s14037_s25  ;;  %271 = vrot.lane.b32.xlu0 %v14196_v22, %s14036_s24 }
  0xd0   :  { %v14224_v24 = vpop.f32.mrf.mxu0 }
  0xd2   :  { %v14238_v25 = vpop.f32.mrf.mxu0 }
  0xd3   :  { %337 = vrot.lane.b32.xlu1 %v14190_v21, %s14038_s26  ;;  %367 = vrot.lane.b32.xlu0 %v14196_v22, %s14035_s23 }
  0xd4   :  { %v14244_v26 = vpop.f32.mrf.mxu0 }
  0xd6   :  { %v14258_v27 = vpop.f32.mrf.mxu0 }
  0xd7   :  { %6076 = vrot.lane.b32.xlu1 %v14190_v21, %s14039_s27  ;;  %303 = vrot.lane.b32.xlu0 %v14196_v22, %s14037_s25 }
  0xd8   :  { %v14272_v28 = vpop.f32.mrf.mxu0 }
  0xda   :  { %v14278_v29 = vpop.f32.mrf.mxu0 }
  0xdb   :  { %335 = vrot.lane.b32.xlu0 %v14196_v22, %s14038_s26  ;;  %277 = vrot.lane.b32.xlu1 %v14210_v23, %s14036_s24 }
  0xdc   :  { %v14292_v30 = vpop.f32.mrf.mxu0 }
  0xde   :  { %v14298_v31 = vpop.f32.mrf.mxu0 }
  0xdf   :  { %6000 = vrot.lane.b32.xlu0 %v14196_v22, %s14039_s27  ;;  %596 = vrot.lane.b32.xlu1 %v14210_v23, %s14035_s23 }
  0xe0   :  { %v14312_v32 = vpop.f32.mrf.mxu0 }
  0xe2   :  { %v14318_v33 = vpop.f32.mrf.mxu0 }
  0xe3   :  { %309 = vrot.lane.b32.xlu0 %v14210_v23, %s14037_s25  ;;  %341 = vrot.lane.b32.xlu1 %v14210_v23, %s14038_s26 }
  0xe4   :  { %v14332_v34 = vpop.f32.mrf.mxu0 }
  0xe6   :  { %v14340_v37 = vpop.f32.mrf.mxu0 }
  0xe7   :  { %6228 = vrot.lane.b32.xlu1 %v14210_v23, %s14039_s27  ;;  %520 = vrot.lane.b32.xlu0 %v14224_v24, %s14035_s23 }
  0xe8   :  { %v14371_v44 = vpop.f32.mrf.mxu0 }
  0xeb   :  { %339 = vrot.lane.b32.xlu0 %v14224_v24, %s14038_s26  ;;  %275 = vrot.lane.b32.xlu1 %v14224_v24, %s14036_s24 }
  0xef   :  { %6152 = vrot.lane.b32.xlu0 %v14224_v24, %s14039_s27  ;;  %307 = vrot.lane.b32.xlu1 %v14224_v24, %s14037_s25 }
  0xf3   :  { %6380 = vrot.lane.b32.xlu0 %v14238_v25, %s14039_s27  ;;  %281 = vrot.lane.b32.xlu1 %v14238_v25, %s14036_s24 }
  0xf7   :  { %748 = vrot.lane.b32.xlu1 %v14238_v25, %s14035_s23  ;;  %279 = vrot.lane.b32.xlu0 %v14244_v26, %s14036_s24 }
  0xfb   :  { %313 = vrot.lane.b32.xlu1 %v14238_v25, %s14037_s25  ;;  %672 = vrot.lane.b32.xlu0 %v14244_v26, %s14035_s23 }
  0xff   :  { %345 = vrot.lane.b32.xlu1 %v14238_v25, %s14038_s26  ;;  %311 = vrot.lane.b32.xlu0 %v14244_v26, %s14037_s25 }
 0x103   :  { %343 = vrot.lane.b32.xlu0 %v14244_v26, %s14038_s26  ;;  %900 = vrot.lane.b32.xlu1 %v14258_v27, %s14035_s23 }
 0x107   :  { %6304 = vrot.lane.b32.xlu0 %v14244_v26, %s14039_s27  ;;  %317 = vrot.lane.b32.xlu1 %v14258_v27, %s14037_s25 }
 0x10b   :  { %349 = vrot.lane.b32.xlu1 %v14258_v27, %s14038_s26  ;;  %285 = vrot.lane.b32.xlu0 %v14258_v27, %s14036_s24 }
 0x10f   :  { %6532 = vrot.lane.b32.xlu0 %v14258_v27, %s14039_s27  ;;  %283 = vrot.lane.b32.xlu1 %v14272_v28, %s14036_s24 }
 0x113   :  { %824 = vrot.lane.b32.xlu0 %v14272_v28, %s14035_s23  ;;  %289 = vrot.lane.b32.xlu1 %v14278_v29, %s14036_s24 }
 0x117   :  { %315 = vrot.lane.b32.xlu0 %v14272_v28, %s14037_s25  ;;  %1052 = vrot.lane.b32.xlu1 %v14278_v29, %s14035_s23 }
 0x11b   :  { %347 = vrot.lane.b32.xlu0 %v14272_v28, %s14038_s26  ;;  %321 = vrot.lane.b32.xlu1 %v14278_v29, %s14037_s25 }
 0x11f   :  { %6456 = vrot.lane.b32.xlu0 %v14272_v28, %s14039_s27  ;;  %353 = vrot.lane.b32.xlu1 %v14278_v29, %s14038_s26 }
 0x123   :  { %6684 = vrot.lane.b32.xlu0 %v14278_v29, %s14039_s27  ;;  %1204 = vrot.lane.b32.xlu1 %v14298_v31, %s14035_s23 }
 0x127   :  { %287 = vrot.lane.b32.xlu0 %v14292_v30, %s14036_s24  ;;  %325 = vrot.lane.b32.xlu1 %v14298_v31, %s14037_s25 }
 0x12b   :  { %976 = vrot.lane.b32.xlu0 %v14292_v30, %s14035_s23  ;;  %357 = vrot.lane.b32.xlu1 %v14298_v31, %s14038_s26 }
 0x12f   :  { %319 = vrot.lane.b32.xlu0 %v14292_v30, %s14037_s25  ;;  %291 = vrot.lane.b32.xlu1 %v14312_v32, %s14036_s24 }
 0x133   :  { %351 = vrot.lane.b32.xlu0 %v14292_v30, %s14038_s26  ;;  %297 = vrot.lane.b32.xlu1 %v14318_v33, %s14036_s24 }
 0x137   :  { %6608 = vrot.lane.b32.xlu0 %v14292_v30, %s14039_s27  ;;  %1356 = vrot.lane.b32.xlu1 %v14318_v33, %s14035_s23 }
 0x13b   :  { %293 = vrot.lane.b32.xlu0 %v14298_v31, %s14036_s24  ;;  %329 = vrot.lane.b32.xlu1 %v14318_v33, %s14037_s25 }
 0x13d   :  { %v445_v35 = vpop.permute.xlu1 %444  ;;  %v14334_v36 = vpop.permute.xlu0 %273 }
 0x13f   :  { %6836 = vrot.lane.b32.xlu0 %v14298_v31, %s14039_s27  ;;  %361 = vrot.lane.b32.xlu1 %v14318_v33, %s14038_s26 }
 0x141   :  { %v14342_v38 = vpop.permute.xlu1 %305  ;;  %v14344_v39 = vpop.permute.xlu0 %271 }
 0x143   :  { %1128 = vrot.lane.b32.xlu0 %v14312_v32, %s14035_s23  ;;  %1508 = vrot.lane.b32.xlu1 %v14340_v37, %s14035_s23 }
 0x145   :  { %v14350_v40 = vpop.permute.xlu1 %337  ;;  %v368_v41 = vpop.permute.xlu0 %367 }
 0x146   :  { %17347 = vst [vmem:[#allocation2_spill] sm:$0xff] %v14350_v40  ;;  %12936 = vmatpush3.xpose.msk.msra.mxu1 %vm369_vm2, %v368_v41 }
 0x147   :  { %323 = vrot.lane.b32.xlu0 %v14312_v32, %s14037_s25  ;;  %333 = vrot.lane.b32.xlu1 %v14340_v37, %s14037_s25 }
 0x148   :  { %12940 = vmatprep.subr.mxu1 %v17296_v20 }
 0x149   :  { %v14358_v42 = vpop.permute.xlu1 %6076  ;;  %12938 = vmatmul.mubr.msk.f32.vlgmr.msra.gmra.mxu1 %vm369_vm2, %v14196_v22  ;;  %v14362_v43 = vpop.permute.xlu0 %303 }
 0x14a   :  { %17348 = vst [vmem:[#allocation3_spill] sm:$0xff] %v14358_v42  ;;  %12941 = vmatpush3.xpose.msk.msra.mxu1 %vm369_vm2, %v445_v35  ;;  %12942 = vmatprep.mubr.msk.f32.mxu1 %vm14034_vm1, %v17296_v20 }
 0x14b   :  { %355 = vrot.lane.b32.xlu0 %v14312_v32, %s14038_s26  ;;  %365 = vrot.lane.b32.xlu1 %v14340_v37, %s14038_s26 }
 0x14c   :  { %12945 = vmatprep.subr.mxu1 %v17296_v20 }
 0x14d   :  { %12943 = vmatmul.mubr.msk.f32.vlgmr.msra.gmra.mxu1 %vm369_vm2, %v14190_v21  ;;  %v14376_v45 = vpop.permute.xlu0 %335  ;;  %v14378_v46 = vpop.permute.xlu1 %277 }
 0x14e   :  { %17349 = vst [vmem:[#allocation4_spill] sm:$0xff] %v14376_v45  ;;  %12947 = vmatprep.mubr.msk.f32.mxu1 %vm14034_vm1, %v17296_v20 }
 0x14f   :  { %6760 = vrot.lane.b32.xlu0 %v14312_v32, %s14039_s27  ;;  %299 = vrot.lane.b32.xlu1 %v14371_v44, %s14036_s24 }
 0x151   :  { %v14386_v47 = vpop.permute.xlu0 %6000  ;;  %v597_v48 = vpop.permute.xlu1 %596 }
 0x152   :  { %17350 = vst [vmem:[#allocation5_spill] sm:$0xff] %v14386_v47 }
 0x153   :  { %295 = vrot.lane.b32.xlu0 %v14332_v34, %s14036_s24  ;;  %1660 = vrot.lane.b32.xlu1 %v14334_v36, %s14035_s23 }
 0x155   :  { %v14392_v49 = vpop.permute.xlu0 %309  ;;  %v14394_v50 = vpop.permute.xlu1 %341 }
 0x157   :  { %1280 = vrot.lane.b32.xlu0 %v14332_v34, %s14035_s23  ;;  %2876 = vrot.lane.b32.xlu1 %v14342_v38, %s14035_s23 }
 0x159   :  { %v14400_v51 = vpop.permute.xlu1 %6228  ;;  %v521_v52 = vpop.permute.xlu0 %520 }
 0x15a   :  { %17351 = vst [vmem:[#allocation6_spill] sm:$0xff] %v14400_v51  ;;  %12946 = vmatpush3.xpose.msk.msra.mxu1 %vm369_vm2, %v521_v52 }
 0x15b   :  { %327 = vrot.lane.b32.xlu0 %v14332_v34, %s14037_s25  ;;  %4092 = vrot.lane.b32.xlu1 %v14350_v40, %s14035_s23 }
 0x15c   :  { %12950 = vmatprep.subr.mxu1 %v17296_v20 }
 0x15d   :  { %12948 = vmatmul.mubr.msk.f32.vlgmr.msra.gmra.mxu1 %vm369_vm2, %v14224_v24  ;;  %v14410_v53 = vpop.permute.xlu0 %339  ;;  %v14412_v54 = vpop.permute.xlu1 %275 }
 0x15e   :  { %17352 = vst [vmem:[#allocation7_spill] sm:$0xff] %v14410_v53  ;;  %12951 = vmatpush3.xpose.msk.msra.mxu1 %vm369_vm2, %v597_v48  ;;  %12952 = vmatprep.mubr.msk.f32.mxu1 %vm14034_vm1, %v17296_v20 }
 0x15f   :  { %359 = vrot.lane.b32.xlu0 %v14332_v34, %s14038_s26  ;;  %1812 = vrot.lane.b32.xlu1 %v14378_v46, %s14035_s23 }
 0x160   :  { %12955 = vmatprep.subr.mxu1 %v17296_v20 }
 0x161   :  { %12953 = vmatmul.mubr.msk.f32.vlgmr.msra.gmra.mxu1 %vm369_vm2, %v14210_v23  ;;  %v14424_v55 = vpop.permute.xlu0 %6152  ;;  %v14426_v56 = vpop.permute.xlu1 %307 }
 0x162   :  { %17353 = vst [vmem:[#allocation8_spill] sm:$0xff] %v14424_v55  ;;  %12957 = vmatprep.mubr.msk.f32.mxu1 %vm14034_vm1, %v17296_v20 }
 0x163   :  { %6912 = vrot.lane.b32.xlu0 %v14332_v34, %s14039_s27  ;;  %3028 = vrot.lane.b32.xlu1 %v14392_v49, %s14035_s23 }
 0x165   :  { %v14434_v57 = vpop.permute.xlu0 %6380  ;;  %v14436_v58 = vpop.permute.xlu1 %281 }
 0x166   :  { %17354 = vst [vmem:[#allocation9_spill] sm:$0xff] %v14434_v57 }
 0x167   :  { %301 = vrot.lane.b32.xlu0 %v14340_v37, %s14036_s24  ;;  %4244 = vrot.lane.b32.xlu1 %v14394_v50, %s14035_s23 }
 0x169   :  { %v749_v59 = vpop.permute.xlu1 %748  ;;  %v14442_v60 = vpop.permute.xlu0 %279 }
 0x16b   :  { %1432 = vrot.lane.b32.xlu0 %v14371_v44, %s14035_s23  ;;  %1964 = vrot.lane.b32.xlu1 %v14436_v58, %s14035_s23 }
 0x16d   :  { %v14448_v61 = vpop.permute.xlu1 %313  ;;  %v673_v62 = vpop.permute.xlu0 %672 }
 0x16e   :  { %12956 = vmatpush3.xpose.msk.msra.mxu1 %vm369_vm2, %v673_v62 }
 0x16f   :  { %331 = vrot.lane.b32.xlu0 %v14371_v44, %s14037_s25  ;;  %3180 = vrot.lane.b32.xlu1 %v14448_v61, %s14035_s23 }
 0x170   :  { %12960 = vmatprep.subr.mxu1 %v17296_v20 }
 0x171   :  { %v14456_v63 = vpop.permute.xlu1 %345  ;;  %12958 = vmatmul.mubr.msk.f32.vlgmr.msra.gmra.mxu1 %vm369_vm2, %v14244_v26  ;;  %v14460_v0 = vpop.permute.xlu0 %311 }
 0x172   :  { %17355 = vst [vmem:[#allocation10_spill] sm:$0xff] %v14456_v63  ;;  %12961 = vmatpush3.xpose.msk.msra.mxu1 %vm369_vm2, %v749_v59  ;;  %12962 = vmatprep.mubr.msk.f32.mxu1 %vm14034_vm1, %v17296_v20 }
 0x173   :  { %363 = vrot.lane.b32.xlu0 %v14371_v44, %s14038_s26  ;;  %4396 = vrot.lane.b32.xlu1 %v14456_v63, %s14035_s23 }
 0x174   :  { %12965 = vmatprep.subr.mxu1 %v17296_v20 }
 0x175   :  { %12963 = vmatmul.mubr.msk.f32.vlgmr.msra.gmra.mxu1 %vm369_vm2, %v14238_v25  ;;  %v14472_v1 = vpop.permute.xlu0 %343  ;;  %v901_v2 = vpop.permute.xlu1 %900 }
 0x176   :  { %17356 = vst [vmem:[#allocation11_spill] sm:$0xff] %v14472_v1  ;;  %12967 = vmatprep.mubr.msk.f32.mxu1 %vm14034_vm1, %v17296_v20 }
 0x177   :  { %1584 = vrot.lane.b32.xlu0 %v14344_v39, %s14035_s23 }
 0x179   :  { %v14478_v3 = vpop.permute.xlu0 %6304  ;;  %v14480_v4 = vpop.permute.xlu1 %317 }
 0x17a   :  { %17357 = vst [vmem:[#allocation12_spill] sm:$0xff] %v14478_v3 }
 0x17b   :  { %2800 = vrot.lane.b32.xlu0 %v14362_v43, %s14035_s23 }
 0x17d   :  { %v14484_v5 = vpop.permute.xlu1 %349  ;;  %v14486_v6 = vpop.permute.xlu0 %285 }
 0x17e   :  { %17358 = vst [vmem:[#allocation13_spill] sm:$0xff] %v14484_v5  ;;  %2116 = vrot.lane.b32.xlu1 %v14486_v6, %s14035_s23 }
 0x17f   :  { %4016 = vrot.lane.b32.xlu0 %v14376_v45, %s14035_s23 }
 0x181   :  { %v14492_v7 = vpop.permute.xlu0 %6532  ;;  %v14494_v8 = vpop.permute.xlu1 %283 }
 0x182   :  { %17359 = vst [vmem:[#allocation14_spill] sm:$0xff] %v14492_v7  ;;  %3332 = vrot.lane.b32.xlu1 %v14480_v4, %s14035_s23 }
 0x183   :  { %1736 = vrot.lane.b32.xlu0 %v14412_v54, %s14035_s23 }
 0x185   :  { %v825_v9 = vpop.permute.xlu0 %824  ;;  %v14500_v10 = vpop.permute.xlu1 %289 }
 0x186   :  { %12966 = vmatpush3.xpose.msk.msra.mxu1 %vm369_vm2, %v825_v9  ;;  %4548 = vrot.lane.b32.xlu1 %v14484_v5, %s14035_s23 }
 0x187   :  { %2952 = vrot.lane.b32.xlu0 %v14426_v56, %s14035_s23  ;;  %12970 = vmatprep.subr.mxu1 %v17296_v20 }
 0x189   :  { %12968 = vmatmul.mubr.msk.f32.vlgmr.msra.gmra.mxu1 %vm369_vm2, %v14272_v28  ;;  %v14510_v11 = vpop.permute.xlu0 %315  ;;  %v1053_v12 = vpop.permute.xlu1 %1052 }
 0x18a   :  { %12971 = vmatpush3.xpose.msk.msra.mxu1 %vm369_vm2, %v901_v2  ;;  %12981 = vmatpush3.xpose.msk.msra.mxu0 %vm369_vm2, %v1053_v12 }
 0x18b   :  { %2268 = vrot.lane.b32.xlu1 %v14500_v10, %s14035_s23  ;;  %4168 = vrot.lane.b32.xlu0 %v14410_v53, %s14035_s23 }
 0x18c   :  { %12972 = vmatprep.mubr.msk.f32.mxu1 %vm14034_vm1, %v17296_v20  ;;  %12990 = vmatprep.subr.mxu0 %v17296_v20 }
 0x18d   :  { %12973 = vmatmul.mubr.msk.f32.vlgmr.msra.gmra.mxu1 %vm369_vm2, %v14258_v27  ;;  %v14523_v13 = vpop.permute.xlu0 %347  ;;  %12983 = vmatmul.mubr.msk.f32.vlgmr.msra.gmra.mxu0 %vm369_vm2, %v14278_v29  ;;  %v14527_v14 = vpop.permute.xlu1 %321 }
 0x18e   :  { %17360 = vst [vmem:[#allocation15_spill] sm:$0xff] %v14523_v13  ;;  %12992 = vmatprep.mubr.msk.f32.mxu0 %vm14034_vm1, %v17296_v20  ;;  %12975 = vmatprep.subr.mxu1 %v17296_v20 }
 0x18f   :  { %1888 = vrot.lane.b32.xlu0 %v14442_v60, %s14035_s23  ;;  %3484 = vrot.lane.b32.xlu1 %v14527_v14, %s14035_s23 }
 0x190   :  { %12977 = vmatprep.mubr.msk.f32.mxu1 %vm14034_vm1, %v17296_v20 }
 0x191   :  { %v14538_v15 = vpop.permute.xlu0 %6456  ;;  %v14540_v16 = vpop.permute.xlu1 %353 }
 0x192   :  { %17361 = vst [vmem:[#allocation16_spill] sm:$0xff] %v14538_v15  ;;  %17362 = vst [vmem:[#allocation17_spill] sm:$0xff] %v14540_v16 }
 0x193   :  { %3104 = vrot.lane.b32.xlu0 %v14460_v0, %s14035_s23  ;;  %4700 = vrot.lane.b32.xlu1 %v14540_v16, %s14035_s23 }
 0x195   :  { %v14546_v17 = vpop.permute.xlu0 %6684  ;;  %v1205_v18 = vpop.permute.xlu1 %1204 }
 0x196   :  { %17363 = vst [vmem:[#allocation18_spill] sm:$0xff] %v14546_v17  ;;  %12991 = vmatpush3.xpose.msk.msra.mxu0 %vm369_vm2, %v1205_v18 }
 0x197   :  { %4320 = vrot.lane.b32.xlu0 %v14472_v1, %s14035_s23  ;;  %13000 = vmatprep.subr.mxu0 %v17296_v20 }
 0x199   :  { %v14552_v19 = vpop.permute.xlu0 %287  ;;  %12993 = vmatmul.mubr.msk.f32.vlgmr.msra.gmra.mxu0 %vm369_vm2, %v14298_v31  ;;  %v14556_v21 = vpop.permute.xlu1 %325 }
 0x19a   :  { %13002 = vmatprep.mubr.msk.f32.mxu0 %vm14034_vm1, %v17296_v20 }
 0x19b   :  { %2040 = vrot.lane.b32.xlu0 %v14494_v8, %s14035_s23 }
 0x19d   :  { %v977_v22 = vpop.permute.xlu0 %976  ;;  %v14562_v23 = vpop.permute.xlu1 %357 }
 0x19e   :  { %17364 = vst [vmem:[#allocation19_spill] sm:$0xff] %v14562_v23  ;;  %12976 = vmatpush3.xpose.msk.msra.mxu1 %vm369_vm2, %v977_v22 }
 0x19f   :  { %3256 = vrot.lane.b32.xlu0 %v14510_v11, %s14035_s23  ;;  %12985 = vmatprep.subr.mxu1 %v17296_v20 }
 0x1a1   :  { %12978 = vmatmul.mubr.msk.f32.vlgmr.msra.gmra.mxu1 %vm369_vm2, %v14292_v30  ;;  %v14570_v24 = vpop.permute.xlu0 %319  ;;  %v14572_v25 = vpop.permute.xlu1 %291 }
 0x1a2   :  { %12987 = vmatprep.mubr.msk.f32.mxu1 %vm14034_vm1, %v17296_v20 }
 0x1a3   :  { %4472 = vrot.lane.b32.xlu0 %v14523_v13, %s14035_s23 }
 0x1a5   :  { %v14578_v26 = vpop.permute.xlu0 %351  ;;  %v14580_v27 = vpop.permute.xlu1 %297 }
 0x1a6   :  { %17365 = vst [vmem:[#allocation20_spill] sm:$0xff] %v14578_v26 }
 0x1a7   :  { %2192 = vrot.lane.b32.xlu0 %v14552_v19, %s14035_s23 }
 0x1a9   :  { %v14584_v28 = vpop.permute.xlu0 %6608  ;;  %v1357_v29 = vpop.permute.xlu1 %1356 }
 0x1aa   :  { %17366 = vst [vmem:[#allocation21_spill] sm:$0xff] %v14584_v28  ;;  %13001 = vmatpush3.xpose.msk.msra.mxu0 %vm369_vm2, %v1357_v29 }
 0x1ab   :  { %3408 = vrot.lane.b32.xlu0 %v14570_v24, %s14035_s23  ;;  %13010 = vmatprep.subr.mxu0 %v17296_v20 }
 0x1ad   :  { %v14590_v30 = vpop.permute.xlu0 %293  ;;  %13003 = vmatmul.mubr.msk.f32.vlgmr.msra.gmra.mxu0 %vm369_vm2, %v14318_v33  ;;  %v14594_v31 = vpop.permute.xlu1 %329 }
 0x1ae   :  { %2420 = vrot.lane.b32.xlu1 %v14590_v30, %s14035_s23  ;;  %13012 = vmatprep.mubr.msk.f32.mxu0 %vm14034_vm1, %v17296_v20 }
 0x1af   :  { %4624 = vrot.lane.b32.xlu0 %v14578_v26, %s14035_s23 }
 0x1b1   :  { %v14602_v35 = vpop.permute.xlu0 %6836  ;;  %v14604_v41 = vpop.permute.xlu1 %361 }
 0x1b2   :  { %17367 = vst [vmem:[#allocation22_spill] sm:$0xff] %v14602_v35  ;;  %17368 = vst [vmem:[#allocation23_spill] sm:$0xff] %v14604_v41  ;;  %3636 = vrot.lane.b32.xlu1 %v14556_v21, %s14035_s23 }
 0x1b3   :  { %2344 = vrot.lane.b32.xlu0 %v14572_v25, %s14035_s23 }
 0x1b5   :  { %v1129_v48 = vpop.permute.xlu0 %1128  ;;  %v1509_v52 = vpop.permute.xlu1 %1508 }
 0x1b6   :  { %12986 = vmatpush3.xpose.msk.msra.mxu1 %vm369_vm2, %v1129_v48  ;;  %13011 = vmatpush3.xpose.msk.msra.mxu0 %vm369_vm2, %v1509_v52 }
 0x1b7   :  { %4852 = vrot.lane.b32.xlu1 %v14562_v23, %s14035_s23  ;;  %13020 = vmatprep.subr.mxu0 %v17296_v20 }
 0x1b8   :  { %12995 = vmatprep.subr.mxu1 %v17296_v20 }
 0x1b9   :  { %12988 = vmatmul.mubr.msk.f32.vlgmr.msra.gmra.mxu1 %vm369_vm2, %v14312_v32  ;;  %v14618_v59 = vpop.permute.xlu0 %323  ;;  %13013 = vmatmul.mubr.msk.f32.vlgmr.msra.gmra.mxu0 %vm369_vm2, %v14340_v37  ;;  %v14622_v62 = vpop.permute.xlu1 %333 }
 0x1ba   :  { %17369 = vst [vmem:[#allocation24_spill] sm:$0xff] %v14622_v62  ;;  %3560 = vrot.lane.b32.xlu0 %v14618_v59, %s14035_s23  ;;  %13022 = vmatprep.mubr.msk.f32.mxu0 %vm14034_vm1, %v17296_v20 }
 0x1bb   :  { %2572 = vrot.lane.b32.xlu1 %v14580_v27, %s14035_s23  ;;  %12997 = vmatprep.mubr.msk.f32.mxu1 %vm14034_vm1, %v17296_v20 }
 0x1bd   :  { %v14632_v32 = vpop.permute.xlu0 %355  ;;  %v14634_v2 = vpop.permute.xlu1 %365 }
 0x1be   :  { %17370 = vst [vmem:[#allocation25_spill] sm:$0xff] %v14632_v32  ;;  %17371 = vst [vmem:[#allocation26_spill] sm:$0xff] %v14634_v2  ;;  %4776 = vrot.lane.b32.xlu0 %v14632_v32, %s14035_s23 }
 0x1bf   :  { %3788 = vrot.lane.b32.xlu1 %v14594_v31, %s14035_s23 }
 0x1c1   :  { %v14640_v9 = vpop.permute.xlu0 %6760  ;;  %v14642_v12 = vpop.permute.xlu1 %299 }
 0x1c2   :  { %17372 = vst [vmem:[#allocation27_spill] sm:$0xff] %v14640_v9 }
 0x1c3   :  { %5004 = vrot.lane.b32.xlu1 %v14604_v41, %s14035_s23 }
 0x1c5   :  { %v14646_v18 = vpop.permute.xlu0 %295  ;;  %v1661_v22 = vpop.permute.xlu1 %1660 }
 0x1c6   :  { %2496 = vrot.lane.b32.xlu0 %v14646_v18, %s14035_s23  ;;  %13021 = vmatpush3.xpose.msk.msra.mxu0 %vm369_vm2, %v1661_v22 }
 0x1c7   :  { %13030 = vmatprep.subr.mxu0 %v17296_v20 }
 0x1c9   :  { %v1281_v29 = vpop.permute.xlu0 %1280  ;;  %13023 = vmatmul.mubr.msk.f32.vlgmr.msra.gmra.mxu0 %vm369_vm2, %v14334_v36  ;;  %v14654_v48 = vpop.permute.xlu1 %2876 }
 0x1ca   :  { %12996 = vmatpush3.xpose.msk.msra.mxu1 %vm369_vm2, %v1281_v29  ;;  %13032 = vmatprep.mubr.msk.f32.mxu0 %vm14034_vm1, %v17296_v20 }
 0x1cb   :  { %13005 = vmatprep.subr.mxu1 %v17296_v20 }
 0x1cd   :  { %12998 = vmatmul.mubr.msk.f32.vlgmr.msra.gmra.mxu1 %vm369_vm2, %v14332_v34  ;;  %v14662_v52 = vpop.permute.xlu0 %327  ;;  %v14664_v22 = vpop.permute.xlu1 %4092 }
 0x1ce   :  { %3712 = vrot.lane.b32.xlu0 %v14662_v52, %s14035_s23  ;;  %13007 = vmatprep.mubr.msk.f32.mxu1 %vm14034_vm1, %v17296_v20 }
 0x1d1   :  { %v14670_v35 = vpop.permute.xlu0 %359  ;;  %v1813_v29 = vpop.permute.xlu1 %1812 }
 0x1d2   :  { %17373 = vst [vmem:[#allocation28_spill] sm:$0xff] %v14670_v35  ;;  %4928 = vrot.lane.b32.xlu0 %v14670_v35, %s14035_s23  ;;  %13031 = vmatpush3.xpose.msk.msra.mxu0 %vm369_vm2, %v1813_v29 }
 0x1d3   :  { %13040 = vmatprep.subr.mxu0 %v17296_v20 }
 0x1d5   :  { %v14676_v34 = vpop.permute.xlu0 %6912  ;;  %13033 = vmatmul.mubr.msk.f32.vlgmr.msra.gmra.mxu0 %vm369_vm2, %v14378_v46  ;;  %v14680_v17 = vpop.permute.xlu1 %3028 }
 0x1d6   :  { %17374 = vst [vmem:[#allocation29_spill] sm:$0xff] %v14676_v34  ;;  %2648 = vrot.lane.b32.xlu0 %v14642_v12, %s14035_s23  ;;  %13042 = vmatprep.mubr.msk.f32.mxu0 %vm14034_vm1, %v17296_v20 }
 0x1d9   :  { %v14686_v9 = vpop.permute.xlu0 %301  ;;  %v14688_v7 = vpop.permute.xlu1 %4244 }
 0x1da   :  { %2724 = vrot.lane.b32.xlu1 %v14686_v9, %s14035_s23  ;;  %6988 = vrot.lane.b32.xlu0 %v14318_v33, %s14039_s27 }
 0x1dd   :  { %v1433_v29 = vpop.permute.xlu0 %1432  ;;  %v1965_v34 = vpop.permute.xlu1 %1964 }
 0x1de   :  { %13006 = vmatpush3.xpose.msk.msra.mxu1 %vm369_vm2, %v1433_v29  ;;  %3940 = vrot.lane.b32.xlu1 %v14622_v62, %s14035_s23 }
 0x1df   :  { %7064 = vrot.lane.b32.xlu0 %v14371_v44, %s14039_s27  ;;  %13041 = vmatpush3.xpose.msk.msra.mxu0 %vm369_vm2, %v1965_v34 }
 0x1e0   :  { %13015 = vmatprep.subr.mxu1 %v17296_v20  ;;  %13050 = vmatprep.subr.mxu0 %v17296_v20 }
 0x1e1   :  { %13008 = vmatmul.mubr.msk.f32.vlgmr.msra.gmra.mxu1 %vm369_vm2, %v14371_v44  ;;  %v14704_v33 = vpop.permute.xlu0 %331  ;;  %v14718_v44 = vpop.permute.xlu1 %3180 }
 0x1e2   :  { %13043 = vmatmul.mubr.msk.f32.vlgmr.msra.gmra.mxu0 %vm369_vm2, %v14436_v58  ;;  %5156 = vrot.lane.b32.xlu1 %v14634_v2, %s14035_s23 }
 0x1e3   :  { %7140 = vrot.lane.b32.xlu0 %v14340_v37, %s14039_s27  ;;  %13017 = vmatprep.mubr.msk.f32.mxu1 %vm14034_vm1, %v17296_v20 }
 0x1e4   :  { %13052 = vmatprep.mubr.msk.f32.mxu0 %vm14034_vm1, %v17296_v20 }
 0x1e5   :  { %v14716_v34 = vpop.permute.xlu0 %363  ;;  %v14726_v37 = vpop.permute.xlu1 %4396 }
 0x1e6   :  { %17375 = vst [vmem:[#allocation30_spill] sm:$0xff] %v14716_v34 }
 0x1e7   :  { %7216 = vrot.lane.b32.xlu0 %v14344_v39, %s14039_s27 }
 0x1e9   :  { %v1585_v29 = vpop.permute.xlu0 %1584 }
 0x1ea   :  { %13016 = vmatpush3.xpose.msk.msra.mxu1 %vm369_vm2, %v1585_v29 }
 0x1eb   :  { %7292 = vrot.lane.b32.xlu0 %v14334_v36, %s14039_s27  ;;  %13025 = vmatprep.subr.mxu1 %v17296_v20 }
 0x1ed   :  { %13018 = vmatmul.mubr.msk.f32.vlgmr.msra.gmra.mxu1 %vm369_vm2, %v14344_v39  ;;  %v14730_v28 = vpop.permute.xlu0 %2800 }
 0x1ee   :  { %13027 = vmatprep.mubr.msk.f32.mxu1 %vm14034_vm1, %v17296_v20 }
 0x1ef   :  { %7368 = vrot.lane.b32.xlu0 %v14412_v54, %s14039_s27 }
 0x1f0   :  { %v2117_v57 = vpop.permute.xlu1 %2116 }
 0x1f1   :  { %v14736_v29 = vpop.permute.xlu0 %4016  ;;  %13051 = vmatpush3.xpose.msk.msra.mxu0 %vm369_vm2, %v2117_v57 }
 0x1f2   :  { %13060 = vmatprep.subr.mxu0 %v17296_v20 }
 0x1f3   :  { %7444 = vrot.lane.b32.xlu0 %v14378_v46, %s14039_s27 }
 0x1f4   :  { %13053 = vmatmul.mubr.msk.f32.vlgmr.msra.gmra.mxu0 %vm369_vm2, %v14486_v6  ;;  %v14744_v36 = vpop.permute.xlu1 %3332 }
 0x1f5   :  { %v1737_v39 = vpop.permute.xlu0 %1736  ;;  %13062 = vmatprep.mubr.msk.f32.mxu0 %vm14034_vm1, %v17296_v20 }
 0x1f6   :  { %13026 = vmatpush3.xpose.msk.msra.mxu1 %vm369_vm2, %v1737_v39 }
 0x1f7   :  { %3864 = vrot.lane.b32.xlu0 %v14704_v33, %s14035_s23  ;;  %13035 = vmatprep.subr.mxu1 %v17296_v20 }
 0x1f8   :  { %v14752_v57 = vpop.permute.xlu1 %4548 }
 0x1f9   :  { %13028 = vmatmul.mubr.msk.f32.vlgmr.msra.gmra.mxu1 %vm369_vm2, %v14412_v54  ;;  %v14756_v46 = vpop.permute.xlu0 %2952 }
 0x1fa   :  { %13037 = vmatprep.mubr.msk.f32.mxu1 %vm14034_vm1, %v17296_v20 }
 0x1fb   :  { %5080 = vrot.lane.b32.xlu0 %v14716_v34, %s14035_s23 }
 0x1fd   :  { %v2269_v15 = vpop.permute.xlu1 %2268  ;;  %v14762_v39 = vpop.permute.xlu0 %4168 }
 0x1fe   :  { %13061 = vmatpush3.xpose.msk.msra.mxu0 %vm369_vm2, %v2269_v15 }
 0x1ff   :  { %7520 = vrot.lane.b32.xlu0 %v14442_v60, %s14039_s27  ;;  %13070 = vmatprep.subr.mxu0 %v17296_v20 }
 0x201   :  { %13063 = vmatmul.mubr.msk.f32.vlgmr.msra.gmra.mxu0 %vm369_vm2, %v14500_v10  ;;  %v1889_v54 = vpop.permute.xlu0 %1888 }
 0x202   :  { %13036 = vmatpush3.xpose.msk.msra.mxu1 %vm369_vm2, %v1889_v54  ;;  %13072 = vmatprep.mubr.msk.f32.mxu0 %vm14034_vm1, %v17296_v20 }
 0x203   :  { %7596 = vrot.lane.b32.xlu0 %v14436_v58, %s14039_s27  ;;  %13045 = vmatprep.subr.mxu1 %v17296_v20 }
 0x205   :  { %13038 = vmatmul.mubr.msk.f32.vlgmr.msra.gmra.mxu1 %vm369_vm2, %v14442_v60  ;;  %v14778_v15 = vpop.permute.xlu0 %3104 }
 0x206   :  { %13047 = vmatprep.mubr.msk.f32.mxu1 %vm14034_vm1, %v17296_v20 }
 0x207   :  { %7672 = vrot.lane.b32.xlu0 %v14494_v8, %s14039_s27 }
 0x209   :  { %v14784_v54 = vpop.f32.mrf.mxu1  ;;  %v14786_v51 = vpop.permute.xlu0 %4320 }
 0x20b   :  { %7748 = vrot.lane.b32.xlu0 %v14486_v6, %s14039_s27  ;;  %v12939_v58 = vpop.f32.mrf.mxu1 }
 0x20d   :  { %v516_v3 = vpop.f32.mrf.mxu1  ;;  %v2041_v55 = vpop.permute.xlu0 %2040 }
 0x20e   :  { %v14790_v42 = vmul.f32 0.35355338, %v516_v3  ;;  %13046 = vmatpush3.xpose.msk.msra.mxu1 %vm369_vm2, %v2041_v55  ;;  %v14808_v3 = vpop.permute.xlu1 %3484 }
 0x20f   :  { %7824 = vrot.lane.b32.xlu0 %v14552_v19, %s14039_s27  ;;  %v12944_v60 = vpop.f32.mrf.mxu1  ;;  %13055 = vmatprep.subr.mxu1 %v17296_v20 }
 0x210   :  { %17376 = vst [vmem:[#allocation31_spill] sm:$0xff] %v14790_v42  ;;  %v5299_v2 = vsel %vm369_vm2, %v14790_v42, -inf }
 0x211   :  { %13048 = vmatmul.mubr.msk.f32.vlgmr.msra.gmra.mxu1 %vm369_vm2, %v14494_v8  ;;  %v14800_v6 = vpop.permute.xlu0 %3256  ;;  %5300 = vmax.xlane.f32.xlu1 %v5299_v2 }
 0x212   :  { %13057 = vmatprep.mubr.msk.f32.mxu1 %vm14034_vm1, %v17296_v20  ;;  %v14816_v8 = vpop.permute.xlu1 %4700 }
 0x213   :  { %7900 = vrot.lane.b32.xlu0 %v14500_v10, %s14039_s27  ;;  %17377 = vst [vmem:[#allocation32_spill] sm:$0xff] %v14816_v8 }
 0x215   :  { %v14806_v55 = vpop.permute.xlu0 %4472 }
 0x217   :  { %7976 = vrot.lane.b32.xlu0 %v14572_v25, %s14039_s27 }
 0x219   :  { %v2193_v58 = vpop.permute.xlu0 %2192 }
 0x21a   :  { %13056 = vmatpush3.xpose.msk.msra.mxu1 %vm369_vm2, %v2193_v58 }
 0x21b   :  { %8052 = vrot.lane.b32.xlu0 %v14590_v30, %s14039_s27  ;;  %13065 = vmatprep.subr.mxu1 %v17296_v20 }
 0x21d   :  { %v14818_v2 = vpop.f32.mrf.mxu1  ;;  %13058 = vmatmul.mubr.msk.f32.vlgmr.msra.gmra.mxu1 %vm369_vm2, %v14552_v19  ;;  %v14822_v10 = vpop.permute.xlu0 %3408 }
 0x21e   :  { %13067 = vmatprep.mubr.msk.f32.mxu1 %vm14034_vm1, %v17296_v20 }
 0x21f   :  { %8128 = vrot.lane.b32.xlu0 %v14646_v18, %s14039_s27  ;;  %v12949_v60 = vpop.f32.mrf.mxu1 }
 0x220   :  { %v2421_v58 = vpop.permute.xlu1 %2420 }
 0x221   :  { %v14828_v42 = vpop.f32.mrf.mxu1  ;;  %v14830_v47 = vpop.permute.xlu0 %4624  ;;  %13071 = vmatpush3.xpose.msk.msra.mxu0 %vm369_vm2, %v2421_v58 }
 0x222   :  { %13080 = vmatprep.subr.mxu0 %v17296_v20 }
 0x223   :  { %8204 = vrot.lane.b32.xlu0 %v14580_v27, %s14039_s27  ;;  %v12954_v19 = vpop.f32.mrf.mxu1 }
 0x224   :  { %13073 = vmatmul.mubr.msk.f32.vlgmr.msra.gmra.mxu0 %vm369_vm2, %v14590_v30  ;;  %v14838_v41 = vpop.permute.xlu1 %3636 }
 0x225   :  { %v2345_v34 = vpop.permute.xlu0 %2344  ;;  %13082 = vmatprep.mubr.msk.f32.mxu0 %vm14034_vm1, %v17296_v20 }
 0x226   :  { %13066 = vmatpush3.xpose.msk.msra.mxu1 %vm369_vm2, %v2345_v34 }
 0x227   :  { %8280 = vrot.lane.b32.xlu0 %v14642_v12, %s14039_s27  ;;  %13075 = vmatprep.subr.mxu1 %v17296_v20 }
 0x229   :  { %v14846_v60 = vpop.permute.xlu1 %4852  ;;  %13068 = vmatmul.mubr.msk.f32.vlgmr.msra.gmra.mxu1 %vm369_vm2, %v14572_v25 }
 0x22a   :  { %17378 = vst [vmem:[#allocation33_spill] sm:$0xff] %v14846_v60  ;;  %13077 = vmatprep.mubr.msk.f32.mxu1 %vm14034_vm1, %v17296_v20 }
 0x22b   :  { %8356 = vrot.lane.b32.xlu0 %v14686_v9, %s14039_s27 }
 0x22c   :  { %v14854_v58 = vpop.permute.xlu0 %3560 }
 0x22d   :  { %v2573_v30 = vpop.permute.xlu1 %2572 }
 0x22e   :  { %13081 = vmatpush3.xpose.msk.msra.mxu0 %vm369_vm2, %v2573_v30 }
 0x22f   :  { %8432 = vrot.lane.b32.xlu0 %v14362_v43, %s14039_s27  ;;  %13090 = vmatprep.subr.mxu0 %v17296_v20 }
 0x230   :  { %v14868_v23 = vpop.permute.xlu0 %4776 }
 0x231   :  { %13083 = vmatmul.mubr.msk.f32.vlgmr.msra.gmra.mxu0 %vm369_vm2, %v14580_v27  ;;  %v744_v25 = vpop.f32.mrf.mxu1  ;;  %17380 = vst [vmem:[#allocation35_spill] sm:$0xff] %v14868_v23 }
 0x232   :  { %v14862_v34 = vmul.f32 0.35355338, %v744_v25  ;;  %13092 = vmatprep.mubr.msk.f32.mxu0 %vm14034_vm1, %v17296_v20 }
 0x233   :  { %8508 = vrot.lane.b32.xlu0 %v14342_v38, %s14039_s27  ;;  %v12959_v19 = vpop.f32.mrf.mxu1 }
 0x234   :  { %17379 = vst [vmem:[#allocation34_spill] sm:$0xff] %v14862_v34  ;;  %v5308_v30 = vsel %vm369_vm2, %v14862_v34, -inf  ;;  %v14884_v34 = vpop.permute.xlu1 %3788 }
 0x235   :  { %v14872_v35 = vpop.f32.mrf.mxu1  ;;  %5309 = vmax.xlane.f32.xlu1 %v5308_v30 }
 0x237   :  { %8584 = vrot.lane.b32.xlu0 %v14426_v56, %s14039_s27  ;;  %v12964_v27 = vpop.f32.mrf.mxu1 }
 0x238   :  { %v2497_v25 = vpop.permute.xlu0 %2496  ;;  %v14888_v60 = vpop.permute.xlu1 %5004 }
 0x239   :  { %13076 = vmatpush3.xpose.msk.msra.mxu1 %vm369_vm2, %v2497_v25  ;;  %17382 = vst [vmem:[#allocation37_spill] sm:$0xff] %v14888_v60 }
 0x23a   :  { %13085 = vmatprep.subr.mxu1 %v17296_v20 }
 0x23c   :  { %13078 = vmatmul.mubr.msk.f32.vlgmr.msra.gmra.mxu1 %vm369_vm2, %v14646_v18 }
 0x23d   :  { %13087 = vmatprep.mubr.msk.f32.mxu1 %vm14034_vm1, %v17296_v20 }
 0x240   :  { %v14882_v19 = vpop.permute.xlu0 %3712 }
 0x244   :  { %v14886_v30 = vpop.permute.xlu0 %4928 }
 0x245   :  { %17381 = vst [vmem:[#allocation36_spill] sm:$0xff] %v14886_v30 }
 0x248   :  { %v2649_v27 = vpop.permute.xlu0 %2648 }
 0x249   :  { %v896_v16 = vpop.f32.mrf.mxu1  ;;  %13086 = vmatpush3.xpose.msk.msra.mxu1 %vm369_vm2, %v2649_v27 }
 0x24a   :  { %v14891_v25 = vmul.f32 0.35355338, %v896_v16  ;;  %13095 = vmatprep.subr.mxu1 %v17296_v20 }
 0x24b   :  { %v12969_v18 = vpop.f32.mrf.mxu1 }
 0x24c   :  { %13088 = vmatmul.mubr.msk.f32.vlgmr.msra.gmra.mxu1 %vm369_vm2, %v14642_v12  ;;  %v14896_v32 = vpop.permute.xlu0 %6988  ;;  %v2725_v8 = vpop.permute.xlu1 %2724  ;;  %v5314_v30 = vsel %vm369_vm2, %v14891_v25, -inf }
 0x24d   :  { %17383 = vst [vmem:[#allocation38_spill] sm:$0xff] %v14896_v32  ;;  %v14900_v23 = vpop.f32.mrf.mxu1  ;;  %5315 = vmax.xlane.f32.xlu1 %v5314_v30  ;;  %v1124_v60 = vpop.f32.mrf.mxu0  ;;  %13091 = vmatpush3.xpose.msk.msra.mxu0 %vm369_vm2, %v2725_v8  ;;  %v14912_v30 = vmul.f32 0.35355338, %v14784_v54 }
 0x24e   :  { %13096 = vmatpush3.xpose.msk.msra.mxu1 %vm369_vm2, %v14730_v28  ;;  %13097 = vmatprep.mubr.msk.f32.mxu1 %vm14034_vm1, %v17296_v20 }
 0x24f   :  { %v12974_v16 = vpop.f32.mrf.mxu1  ;;  %v12984_v12 = vpop.f32.mrf.mxu0  ;;  %13105 = vmatprep.subr.mxu1 %v17296_v20  ;;  %13100 = vmatprep.subr.mxu0 %v17296_v20 }
 0x250   :  { %13093 = vmatmul.mubr.msk.f32.vlgmr.msra.gmra.mxu0 %vm369_vm2, %v14686_v9  ;;  %v5296_v9 = vsel %vm369_vm2, %v14912_v30, -inf }
 0x251   :  { %13098 = vmatmul.mubr.msk.f32.vlgmr.msra.gmra.mxu1 %vm369_vm2, %v14362_v43  ;;  %v14916_v8 = vpop.permute.xlu0 %7064  ;;  %13101 = vmatpush3.xpose.msk.msra.mxu0 %vm369_vm2, %v14654_v48  ;;  %v14931_v43 = vmul.f32 0.35355338, %v14818_v2 }
 0x252   :  { %17384 = vst [vmem:[#allocation39_spill] sm:$0xff] %v14916_v8  ;;  %13106 = vmatpush3.xpose.msk.msra.mxu1 %vm369_vm2, %v14756_v46  ;;  %13102 = vmatprep.mubr.msk.f32.mxu0 %vm14034_vm1, %v17296_v20 }
 0x253   :  { %13107 = vmatprep.mubr.msk.f32.mxu1 %vm14034_vm1, %v17296_v20  ;;  %13115 = vmatprep.subr.mxu1 %v17296_v20 }
 0x254   :  { %13103 = vmatmul.mubr.msk.f32.vlgmr.msra.gmra.mxu0 %vm369_vm2, %v14342_v38  ;;  %13110 = vmatprep.subr.mxu0 %v17296_v20  ;;  %v14951_v38 = vmul.f32 0.35355338, %v14828_v42 }
 0x255   :  { %13108 = vmatmul.mubr.msk.f32.vlgmr.msra.gmra.mxu1 %vm369_vm2, %v14426_v56  ;;  %v14935_v28 = vpop.permute.xlu0 %7140  ;;  %13111 = vmatpush3.xpose.msk.msra.mxu0 %vm369_vm2, %v14680_v17  ;;  %v5302_v17 = vsel %vm369_vm2, %v14931_v43, -inf }
 0x256   :  { %17385 = vst [vmem:[#allocation40_spill] sm:$0xff] %v14935_v28  ;;  %5297 = vmax.xlane.f32.xlu0 %v5296_v9  ;;  %13116 = vmatpush3.xpose.msk.msra.mxu1 %vm369_vm2, %v14778_v15  ;;  %v14978_v15 = vmul.f32 0.35355338, %v1124_v60  ;;  %v3941_v9 = vpop.permute.xlu1 %3940 }
 0x257   :  { %13112 = vmatprep.mubr.msk.f32.mxu0 %vm14034_vm1, %v17296_v20  ;;  %13117 = vmatprep.mubr.msk.f32.mxu1 %vm14034_vm1, %v17296_v20 }
 0x258   :  { %13125 = vmatprep.subr.mxu1 %v17296_v20  ;;  %13113 = vmatmul.mubr.msk.f32.vlgmr.msra.gmra.mxu0 %vm369_vm2, %v14392_v49  ;;  %v5323_v2 = vsel %vm369_vm2, %v14978_v15, -inf }
 0x259   :  { %13118 = vmatmul.mubr.msk.f32.vlgmr.msra.gmra.mxu1 %vm369_vm2, %v14460_v0  ;;  %v14955_v56 = vpop.permute.xlu0 %7216  ;;  %13120 = vmatprep.subr.mxu0 %v17296_v20  ;;  %v1276_v48 = vpop.f32.mrf.mxu0 }
 0x25a   :  { %17386 = vst [vmem:[#allocation41_spill] sm:$0xff] %v14955_v56  ;;  %5303 = vmax.xlane.f32.xlu0 %v5302_v17  ;;  %13121 = vmatpush3.xpose.msk.msra.mxu0 %vm369_vm2, %v14718_v44  ;;  %v5305_v44 = vsel %vm369_vm2, %v14951_v38, -inf  ;;  %v15004_v60 = vmul.f32 0.35355338, %v1276_v48 }
 0x25b   :  { %13126 = vmatpush3.xpose.msk.msra.mxu1 %vm369_vm2, %v14800_v6  ;;  %v12994_v42 = vpop.f32.mrf.mxu0  ;;  %13122 = vmatprep.mubr.msk.f32.mxu0 %vm14034_vm1, %v17296_v20 }
 0x25c   :  { %13127 = vmatprep.mubr.msk.f32.mxu1 %vm14034_vm1, %v17296_v20  ;;  %13135 = vmatprep.subr.mxu1 %v17296_v20  ;;  %v5329_v18 = vsel %vm369_vm2, %v15004_v60, -inf  ;;  %v17392_v42 = vld [vmem:[#allocation25_spill] sm:$0xff] }
 0x25d   :  { %v14969_v46 = vpop.permute.xlu0 %7292  ;;  %13123 = vmatmul.mubr.msk.f32.vlgmr.msra.gmra.mxu0 %vm369_vm2, %v14448_v61  ;;  %13130 = vmatprep.subr.mxu0 %v17296_v20 }
 0x25e   :  { %17387 = vst [vmem:[#allocation42_spill] sm:$0xff] %v14969_v46  ;;  %13128 = vmatmul.mubr.msk.f32.vlgmr.msra.gmra.mxu1 %vm369_vm2, %v14510_v11  ;;  %5306 = vmax.xlane.f32.xlu0 %v5305_v44 }
 0x25f   :  { %13131 = vmatpush3.xpose.msk.msra.mxu0 %vm369_vm2, %v14744_v36  ;;  %13136 = vmatpush3.xpose.msk.msra.mxu1 %vm369_vm2, %v14822_v10 }
 0x260   :  { %13132 = vmatprep.mubr.msk.f32.mxu0 %vm14034_vm1, %v17296_v20  ;;  %13137 = vmatprep.mubr.msk.f32.mxu1 %vm14034_vm1, %v17296_v20 }
 0x261   :  { %13145 = vmatprep.subr.mxu1 %v17296_v20  ;;  %v14989_v54 = vpop.permute.xlu0 %7368  ;;  %13140 = vmatprep.subr.mxu0 %v17296_v20  ;;  %v1048_v6 = vpop.f32.mrf.mxu1 }
 0x262   :  { %17388 = vst [vmem:[#allocation43_spill] sm:$0xff] %v14989_v54  ;;  %13138 = vmatmul.mubr.msk.f32.vlgmr.msra.gmra.mxu1 %vm369_vm2, %v14570_v24  ;;  %13133 = vmatmul.mubr.msk.f32.vlgmr.msra.gmra.mxu0 %vm369_vm2, %v14480_v4  ;;  %v14996_v36 = vmul.f32 0.35355338, %v1048_v6  ;;  %v17393_v6 = vld [vmem:[#allocation17_spill] sm:$0xff] }
 0x263   :  { %13141 = vmatpush3.xpose.msk.msra.mxu0 %vm369_vm2, %v14808_v3  ;;  %13146 = vmatpush3.xpose.msk.msra.mxu1 %vm369_vm2, %v14854_v58  ;;  %v12979_v10 = vpop.f32.mrf.mxu1  ;;  %v15021_v58 = vmul.f32 0.35355338, %v14872_v35 }
 0x264   :  { %5324 = vmax.xlane.f32.xlu0 %v5323_v2  ;;  %13142 = vmatprep.mubr.msk.f32.mxu0 %vm14034_vm1, %v17296_v20  ;;  %v5320_v27 = vsel %vm369_vm2, %v14996_v36, -inf  ;;  %v17394_v2 = vld [vmem:[#allocation33_spill] sm:$0xff]  ;;  %v17395_v10 = vld [vmem:[#allocation36_spill] sm:$0xff] }
 0x265   :  { %13147 = vmatprep.mubr.msk.f32.mxu1 %vm14034_vm1, %v17296_v20  ;;  %13155 = vmatprep.subr.mxu1 %v17296_v20  ;;  %v15013_v3 = vpop.permute.xlu0 %7444  ;;  %v5311_v35 = vsel %vm369_vm2, %v15021_v58, -inf }
 0x266   :  { %17389 = vst [vmem:[#allocation44_spill] sm:$0xff] %v15013_v3  ;;  %13148 = vmatmul.mubr.msk.f32.vlgmr.msra.gmra.mxu1 %vm369_vm2, %v14618_v59  ;;  %13143 = vmatmul.mubr.msk.f32.vlgmr.msra.gmra.mxu0 %vm369_vm2, %v14527_v14 }
 0x267   :  { %13150 = vmatprep.subr.mxu0 %v17296_v20  ;;  %5321 = vmax.xlane.f32.xlu1 %v5320_v27 }
 0x268   :  { %13151 = vmatpush3.xpose.msk.msra.mxu0 %vm369_vm2, %v14838_v41  ;;  %13156 = vmatpush3.xpose.msk.msra.mxu1 %vm369_vm2, %v14882_v19 }
 0x269   :  { %5330 = vmax.xlane.f32.xlu0 %v5329_v18  ;;  %13152 = vmatprep.mubr.msk.f32.mxu0 %vm14034_vm1, %v17296_v20  ;;  %v3865_v16 = vpop.permute.xlu0 %3864 }
 0x26a   :  { %13157 = vmatprep.mubr.msk.f32.mxu1 %vm14034_vm1, %v17296_v20  ;;  %13165 = vmatprep.subr.mxu1 %v17296_v20 }
 0x26b   :  { %13158 = vmatmul.mubr.msk.f32.vlgmr.msra.gmra.mxu1 %vm369_vm2, %v14662_v52  ;;  %13153 = vmatmul.mubr.msk.f32.vlgmr.msra.gmra.mxu0 %vm369_vm2, %v14556_v21 }
 0x26c   :  { %13160 = vmatprep.subr.mxu0 %v17296_v20  ;;  %13166 = vmatpush3.xpose.msk.msra.mxu1 %vm369_vm2, %v3865_v16 }
 0x26d   :  { %13161 = vmatpush3.xpose.msk.msra.mxu0 %vm369_vm2, %v14884_v34  ;;  %5312 = vmax.xlane.f32.xlu0 %v5311_v35  ;;  %v1428_v41 = vpop.f32.mrf.mxu0  ;;  %v5081_v35 = vpop.permute.xlu0 %5080 }
 0x26e   :  { %13162 = vmatprep.mubr.msk.f32.mxu0 %vm14034_vm1, %v17296_v20  ;;  %13167 = vmatprep.mubr.msk.f32.mxu1 %vm14034_vm1, %v17296_v20  ;;  %v15051_v19 = vmul.f32 0.35355338, %v1428_v41  ;;  %v17396_v41 = vld [vmem:[#allocation28_spill] sm:$0xff] }
 0x26f   :  { %13168 = vmatmul.mubr.msk.f32.vlgmr.msra.gmra.mxu1 %vm369_vm2, %v14704_v33  ;;  %13175 = vmatprep.subr.mxu1 %v17296_v20  ;;  %v13004_v12 = vpop.f32.mrf.mxu0 }
 0x270   :  { %13163 = vmatmul.mubr.msk.f32.vlgmr.msra.gmra.mxu0 %vm369_vm2, %v14594_v31  ;;  %13170 = vmatprep.subr.mxu0 %v17296_v20  ;;  %v5335_v34 = vsel %vm369_vm2, %v15051_v19, -inf  ;;  %v17397_v12 = vld [vmem:[#allocation19_spill] sm:$0xff] }
 0x271   :  { %13171 = vmatpush3.xpose.msk.msra.mxu0 %vm369_vm2, %v3941_v9  ;;  %13176 = vmatpush3.xpose.msk.msra.mxu1 %vm369_vm2, %v14736_v29 }
 0x272   :  { %13172 = vmatprep.mubr.msk.f32.mxu0 %vm14034_vm1, %v17296_v20  ;;  %13177 = vmatprep.mubr.msk.f32.mxu1 %vm14034_vm1, %v17296_v20 }
 0x273   :  { %13185 = vmatprep.subr.mxu1 %v17296_v20  ;;  %13180 = vmatprep.subr.mxu0 %v17296_v20 }
 0x274   :  { %13178 = vmatmul.mubr.msk.f32.vlgmr.msra.gmra.mxu1 %vm369_vm2, %v14376_v45  ;;  %13173 = vmatmul.mubr.msk.f32.vlgmr.msra.gmra.mxu0 %vm369_vm2, %v14622_v62 }
 0x275   :  { %13181 = vmatpush3.xpose.msk.msra.mxu0 %vm369_vm2, %v14664_v22  ;;  %13186 = vmatpush3.xpose.msk.msra.mxu1 %vm369_vm2, %v14762_v39 }
 0x276   :  { %5336 = vmax.xlane.f32.xlu0 %v5335_v34  ;;  %13182 = vmatprep.mubr.msk.f32.mxu0 %vm14034_vm1, %v17296_v20  ;;  %v17398_v34 = vld [vmem:[#allocation37_spill] sm:$0xff] }
 0x277   :  { %13187 = vmatprep.mubr.msk.f32.mxu1 %vm14034_vm1, %v17296_v20  ;;  %13195 = vmatprep.subr.mxu1 %v17296_v20 }
 0x278   :  { %13188 = vmatmul.mubr.msk.f32.vlgmr.msra.gmra.mxu1 %vm369_vm2, %v14410_v53  ;;  %13183 = vmatmul.mubr.msk.f32.vlgmr.msra.gmra.mxu0 %vm369_vm2, %v14350_v40 }
 0x279   :  { %13190 = vmatprep.subr.mxu0 %v17296_v20  ;;  %13196 = vmatpush3.xpose.msk.msra.mxu1 %vm369_vm2, %v14786_v51  ;;  %v1200_v22 = vpop.f32.mrf.mxu1  ;;  %v1580_v39 = vpop.f32.mrf.mxu0 }
 0x27a   :  { %13191 = vmatpush3.xpose.msk.msra.mxu0 %vm369_vm2, %v14688_v7  ;;  %13192 = vmatprep.mubr.msk.f32.mxu0 %vm14034_vm1, %v17296_v20  ;;  %v15091_v29 = vmul.f32 0.35355338, %v1200_v22  ;;  %v15099_v51 = vmul.f32 0.35355338, %v1580_v39 }
 0x27b   :  { %13197 = vmatprep.mubr.msk.f32.mxu1 %vm14034_vm1, %v17296_v20  ;;  %13205 = vmatprep.subr.mxu1 %v17296_v20  ;;  %v12989_v17 = vpop.f32.mrf.mxu1  ;;  %v13014_v7 = vpop.f32.mrf.mxu0 }
 0x27c   :  { %13198 = vmatmul.mubr.msk.f32.vlgmr.msra.gmra.mxu1 %vm369_vm2, %v14472_v1  ;;  %13200 = vmatprep.subr.mxu0 %v17296_v20  ;;  %v5326_v48 = vsel %vm369_vm2, %v15091_v29, -inf  ;;  %v5157_v17 = vpop.permute.xlu1 %5156  ;;  %v17399_v7 = vld [vmem:[#allocation30_spill] sm:$0xff] }
 0x27d   :  { %13193 = vmatmul.mubr.msk.f32.vlgmr.msra.gmra.mxu0 %vm369_vm2, %v14394_v50  ;;  %13206 = vmatpush3.xpose.msk.msra.mxu1 %vm369_vm2, %v14806_v55  ;;  %v5341_v55 = vsel %vm369_vm2, %v15099_v51, -inf }
 0x27e   :  { %13201 = vmatpush3.xpose.msk.msra.mxu0 %vm369_vm2, %v14726_v37  ;;  %13202 = vmatprep.mubr.msk.f32.mxu0 %vm14034_vm1, %v17296_v20  ;;  %v15122_v37 = vmul.f32 0.35355338, %v14900_v23  ;;  %v17390_v23 = vld [vmem:[#allocation35_spill] sm:$0xff] }
 0x27f   :  { %13207 = vmatprep.mubr.msk.f32.mxu1 %vm14034_vm1, %v17296_v20  ;;  %13215 = vmatprep.subr.mxu1 %v17296_v20 }
 0x280   :  { %13208 = vmatmul.mubr.msk.f32.vlgmr.msra.gmra.mxu1 %vm369_vm2, %v14523_v13  ;;  %13210 = vmatprep.subr.mxu0 %v17296_v20 }
 0x281   :  { %13203 = vmatmul.mubr.msk.f32.vlgmr.msra.gmra.mxu0 %vm369_vm2, %v14456_v63  ;;  %5327 = vmax.xlane.f32.xlu1 %v5326_v48  ;;  %v17400_v48 = vld [vmem:[#allocation23_spill] sm:$0xff] }
 0x282   :  { %13211 = vmatpush3.xpose.msk.msra.mxu0 %vm369_vm2, %v14752_v57  ;;  %13216 = vmatpush3.xpose.msk.msra.mxu1 %vm369_vm2, %v14830_v47  ;;  %v5317_v47 = vsel %vm369_vm2, %v15122_v37, -inf  ;;  %v17391_v57 = vld [vmem:[#allocation32_spill] sm:$0xff] }
 0x283   :  { %5342 = vmax.xlane.f32.xlu0 %v5341_v55  ;;  %13212 = vmatprep.mubr.msk.f32.mxu0 %vm14034_vm1, %v17296_v20 }
 0x284   :  { %13217 = vmatprep.mubr.msk.f32.mxu1 %vm14034_vm1, %v17296_v20  ;;  %13225 = vmatprep.subr.mxu1 %v17296_v20 }
 0x285   :  { %13218 = vmatmul.mubr.msk.f32.vlgmr.msra.gmra.mxu1 %vm369_vm2, %v14578_v26  ;;  %13213 = vmatmul.mubr.msk.f32.vlgmr.msra.gmra.mxu0 %vm369_vm2, %v14484_v5 }
 0x286   :  { %13220 = vmatprep.subr.mxu0 %v17296_v20  ;;  %13226 = vmatpush3.xpose.msk.msra.mxu1 %vm369_vm2, %v17390_v23  ;;  %v17401_v23 = vld [vmem:[#allocation5_spill] sm:$0xff] }
 0x287   :  { %13221 = vmatpush3.xpose.msk.msra.mxu0 %vm369_vm2, %v17391_v57  ;;  %5318 = vmax.xlane.f32.xlu0 %v5317_v47  ;;  %v17402_v57 = vld [vmem:[#allocation26_spill] sm:$0xff] }
 0x288   :  { %13222 = vmatprep.mubr.msk.f32.mxu0 %vm14034_vm1, %v17296_v20  ;;  %13227 = vmatprep.mubr.msk.f32.mxu1 %vm14034_vm1, %v17296_v20 }
 0x289   :  { %13228 = vmatmul.mubr.msk.f32.vlgmr.msra.gmra.mxu1 %vm369_vm2, %v17392_v42  ;;  %13235 = vmatprep.subr.mxu1 %v17296_v20  ;;  %v1732_v44 = vpop.f32.mrf.mxu0 }
 0x28a   :  { %13223 = vmatmul.mubr.msk.f32.vlgmr.msra.gmra.mxu0 %vm369_vm2, %v17393_v6  ;;  %13230 = vmatprep.subr.mxu0 %v17296_v20  ;;  %v15164_v18 = vmul.f32 0.35355338, %v1732_v44 }
 0x28b   :  { %13231 = vmatpush3.xpose.msk.msra.mxu0 %vm369_vm2, %v17394_v2  ;;  %13236 = vmatpush3.xpose.msk.msra.mxu1 %vm369_vm2, %v17395_v10  ;;  %v13024_v27 = vpop.f32.mrf.mxu0  ;;  %v17403_v2 = vld [vmem:[#allocation3_spill] sm:$0xff] }
 0x28c   :  { %13232 = vmatprep.mubr.msk.f32.mxu0 %vm14034_vm1, %v17296_v20  ;;  %13237 = vmatprep.mubr.msk.f32.mxu1 %vm14034_vm1, %v17296_v20  ;;  %v5347_v39 = vsel %vm369_vm2, %v15164_v18, -inf }
 0x28d   :  { %13245 = vmatprep.subr.mxu1 %v17296_v20  ;;  %13240 = vmatprep.subr.mxu0 %v17296_v20  ;;  %v1352_v16 = vpop.f32.mrf.mxu1 }
 0x28e   :  { %13238 = vmatmul.mubr.msk.f32.vlgmr.msra.gmra.mxu1 %vm369_vm2, %v17396_v41  ;;  %13233 = vmatmul.mubr.msk.f32.vlgmr.msra.gmra.mxu0 %vm369_vm2, %v17397_v12  ;;  %v15170_v9 = vmul.f32 0.35355338, %v1352_v16 }
 0x28f   :  { %13241 = vmatpush3.xpose.msk.msra.mxu0 %vm369_vm2, %v17398_v34  ;;  %13246 = vmatpush3.xpose.msk.msra.mxu1 %vm369_vm2, %v5081_v35  ;;  %v12999_v22 = vpop.f32.mrf.mxu1 }
 0x290   :  { %13242 = vmatprep.mubr.msk.f32.mxu0 %vm14034_vm1, %v17296_v20  ;;  %13247 = vmatprep.mubr.msk.f32.mxu1 %vm14034_vm1, %v17296_v20  ;;  %v5332_v55 = vsel %vm369_vm2, %v15170_v9, -inf }
 0x291   :  { %13255 = vmatprep.subr.mxu1 %v17296_v20  ;;  %13250 = vmatprep.subr.mxu0 %v17296_v20 }
 0x292   :  { %13248 = vmatmul.mubr.msk.f32.vlgmr.msra.gmra.mxu1 %vm369_vm2, %v17399_v7  ;;  %13243 = vmatmul.mubr.msk.f32.vlgmr.msra.gmra.mxu0 %vm369_vm2, %v17400_v48 }
 0x293   :  { %13251 = vmatpush3.xpose.msk.msra.mxu0 %vm369_vm2, %v5157_v17  ;;  %13256 = vmatpush3.msra.mxu1 %v17401_v23 }
 0x294   :  { %5348 = vmax.xlane.f32.xlu0 %v5347_v39  ;;  %13252 = vmatprep.mubr.msk.f32.mxu0 %vm14034_vm1, %v17296_v20 }
 0x295   :  { %13260 = vmatprep.subr.mxu0 %v17296_v20  ;;  %5333 = vmax.xlane.f32.xlu1 %v5332_v55  ;;  %v1884_v47 = vpop.f32.mrf.mxu0 }
 0x296   :  { %13253 = vmatmul.mubr.msk.f32.vlgmr.msra.gmra.mxu0 %vm369_vm2, %v17402_v57  ;;  %v15196_v44 = vmul.f32 0.35355338, %v1884_v47  ;;  %13257 = vmatprep.mubr.msk.f32.mxu1 %vm14034_vm1, %v17296_v20  ;;  %v15215_v47 = vpop.permute.xlu0 %7520 }
 0x297   :  { %13261 = vmatpush3.msra.mxu0 %v17403_v2  ;;  %v13034_v10 = vpop.f32.mrf.mxu0  ;;  %13265 = vmatprep.subr.mxu1 %v17296_v20  ;;  %17404 = vst [vmem:[#allocation35_spill] sm:$0xff] %v15215_v47 }
 0x298   :  { %v5353_v27 = vsel %vm369_vm2, %v15196_v44, -inf  ;;  %13262 = vmatprep.mubr.msk.f32.mxu0 %vm14034_vm1, %v17296_v20  ;;  %13270 = vmatprep.subr.mxu0 %v17296_v20 }
 0x299   :  { %5354 = vmax.xlane.f32.xlu0 %v5353_v27 }
 0x29a   :  { %v5301_v8 = vpop.xlane.xlu1 %5300 }
 0x2a1   :  { %v1504_v16 = vpop.f32.mrf.mxu1 }
 0x2a2   :  { %v15207_v35 = vmul.f32 0.35355338, %v1504_v16  ;;  %v2036_v34 = vpop.f32.mrf.mxu0 }
 0x2a3   :  { %v15209_v22 = vmul.f32 0.35355338, %v2036_v34  ;;  %v13009_v39 = vpop.f32.mrf.mxu1  ;;  %v15221_v34 = vpop.permute.xlu0 %7596 }
 0x2a4   :  { %v13044_v17 = vpop.f32.mrf.mxu0  ;;  %v5338_v55 = vsel %vm369_vm2, %v15207_v35, -inf  ;;  %17405 = vst [vmem:[#allocation32_spill] sm:$0xff] %v15221_v34 }
 0x2a5   :  { %5339 = vmax.xlane.f32.xlu1 %v5338_v55  ;;  %v5359_v23 = vsel %vm369_vm2, %v15209_v22, -inf }
 0x2a6   :  { %5360 = vmax.xlane.f32.xlu0 %v5359_v23 }
 0x2a7   :  { %v15227_v23 = vpop.permute.xlu0 %7672 }
 0x2a8   :  { %17406 = vst [vmem:[#allocation17_spill] sm:$0xff] %v15227_v23 }
 0x2ad   :  { %v1656_v2 = vpop.f32.mrf.mxu1 }
 0x2ae   :  { %v15217_v10 = vmul.f32 0.35355338, %v1656_v2 }
 0x2af   :  { %v13019_v27 = vpop.f32.mrf.mxu1 }
 0x2b0   :  { %v5344_v16 = vsel %vm369_vm2, %v15217_v10, -inf }
 0x2b1   :  { %5345 = vmax.xlane.f32.xlu1 %v5344_v16  ;;  %v15233_v16 = vpop.permute.xlu0 %7748 }
 0x2b2   :  { %17407 = vst [vmem:[#allocation33_spill] sm:$0xff] %v15233_v16 }
 0x2b4   :  { %v2188_v39 = vpop.f32.mrf.mxu0 }
 0x2b5   :  { %v15223_v17 = vmul.f32 0.35355338, %v2188_v39 }
 0x2b6   :  { %v13054_v55 = vpop.f32.mrf.mxu0 }
 0x2b7   :  { %v5365_v20 = vsel %vm369_vm2, %v15223_v17, -inf }
 0x2b8   :  { %5366 = vmax.xlane.f32.xlu0 %v5365_v20  ;;  %v15239_v20 = vpop.permute.xlu0 %7824 }
 0x2b9   :  { %v1808_v57 = vpop.f32.mrf.mxu1  ;;  %17408 = vst [vmem:[#allocation36_spill] sm:$0xff] %v15239_v20 }
 0x2ba   :  { %v15229_v2 = vmul.f32 0.35355338, %v1808_v57 }
 0x2bb   :  { %v13029_v27 = vpop.f32.mrf.mxu1 }
 0x2bc   :  { %v5350_v47 = vsel %vm369_vm2, %v15229_v2, -inf }
 0x2bd   :  { %5351 = vmax.xlane.f32.xlu1 %v5350_v47  ;;  %v15245_v47 = vpop.permute.xlu0 %7900 }
 0x2be   :  { %17409 = vst [vmem:[#allocation19_spill] sm:$0xff] %v15245_v47 }
 0x2c1   :  { %v2340_v34 = vpop.f32.mrf.mxu0  ;;  %v15247_v16 = vpop.permute.xlu0 %7976 }
 0x2c2   :  { %v15235_v39 = vmul.f32 0.35355338, %v2340_v34  ;;  %17410 = vst [vmem:[#allocation37_spill] sm:$0xff] %v15247_v16 }
 0x2c3   :  { %v13064_v55 = vpop.f32.mrf.mxu0 }
 0x2c4   :  { %v5371_v54 = vsel %vm369_vm2, %v15235_v39, -inf }
 0x2c5   :  { %5372 = vmax.xlane.f32.xlu0 %v5371_v54  ;;  %v1960_v23 = vpop.f32.mrf.mxu1  ;;  %v15253_v54 = vpop.permute.xlu0 %8052 }
 0x2c6   :  { %v15241_v57 = vmul.f32 0.35355338, %v1960_v23  ;;  %17411 = vst [vmem:[#allocation23_spill] sm:$0xff] %v15253_v54 }
 0x2c7   :  { %v13039_v27 = vpop.f32.mrf.mxu1 }
 0x2c8   :  { %v5356_v3 = vsel %vm369_vm2, %v15241_v57, -inf }
 0x2c9   :  { %5357 = vmax.xlane.f32.xlu1 %v5356_v3  ;;  %v15255_v23 = vpop.permute.xlu0 %8128 }
 0x2ca   :  { %17412 = vst [vmem:[#allocation5_spill] sm:$0xff] %v15255_v23 }
 0x2cd   :  { %v15261_v16 = vpop.permute.xlu0 %8204 }
 0x2ce   :  { %17413 = vst [vmem:[#allocation3_spill] sm:$0xff] %v15261_v16 }
 0x2d1   :  { %v2112_v34 = vpop.f32.mrf.mxu1  ;;  %v15267_v54 = vpop.permute.xlu0 %8280 }
 0x2d2   :  { %v15249_v55 = vmul.f32 0.35355338, %v2112_v34  ;;  %17414 = vst [vmem:[#allocation45_spill] sm:$0xff] %v15267_v54 }
 0x2d3   :  { %v13049_v7 = vpop.f32.mrf.mxu1 }
 0x2d4   :  { %v5362_v20 = vsel %vm369_vm2, %v15249_v55, -inf }
 0x2d5   :  { %5363 = vmax.xlane.f32.xlu1 %v5362_v20 }
 0x2dd   :  { %v2264_v27 = vpop.f32.mrf.mxu1 }
 0x2de   :  { %v15257_v41 = vmul.f32 0.35355338, %v2264_v27 }
 0x2df   :  { %v13059_v3 = vpop.f32.mrf.mxu1 }
 0x2e0   :  { %v5368_v47 = vsel %vm369_vm2, %v15257_v41, -inf }
 0x2e1   :  { %5369 = vmax.xlane.f32.xlu1 %v5368_v47  ;;  %v15273_v47 = vpop.permute.xlu0 %8356 }
 0x2e2   :  { %17415 = vst [vmem:[#allocation46_spill] sm:$0xff] %v15273_v47 }
 0x2e4   :  { %v2492_v34 = vpop.f32.mrf.mxu0 }
 0x2e5   :  { %v15263_v7 = vmul.f32 0.35355338, %v2492_v34 }
 0x2e6   :  { %v13074_v56 = vpop.f32.mrf.mxu0 }
 0x2e7   :  { %v5377_v20 = vsel %vm369_vm2, %v15263_v7, -inf }
 0x2e8   :  { %5378 = vmax.xlane.f32.xlu0 %v5377_v20  ;;  %v15279_v20 = vpop.permute.xlu0 %8432 }
 0x2e9   :  { %v2416_v23 = vpop.f32.mrf.mxu1  ;;  %17416 = vst [vmem:[#allocation47_spill] sm:$0xff] %v15279_v20 }
 0x2ea   :  { %v15269_v27 = vmul.f32 0.35355338, %v2416_v23 }
 0x2eb   :  { %v13069_v3 = vpop.f32.mrf.mxu1 }
 0x2ec   :  { %v5374_v46 = vsel %vm369_vm2, %v15269_v27, -inf  ;;  %v15281_v54 = vpop.permute.xlu0 %8508 }
 0x2ed   :  { %5375 = vmax.xlane.f32.xlu1 %v5374_v46  ;;  %17417 = vst [vmem:[#allocation48_spill] sm:$0xff] %v15281_v54 }
 0x2f0   :  { %v15287_v47 = vpop.permute.xlu0 %8584 }
 0x2f1   :  { %v2644_v16 = vpop.f32.mrf.mxu0  ;;  %17418 = vst [vmem:[#allocation49_spill] sm:$0xff] %v15287_v47 }
 0x2f2   :  { %v15275_v34 = vmul.f32 0.35355338, %v2644_v16 }
 0x2f3   :  { %v13084_v56 = vpop.f32.mrf.mxu0 }
 0x2f4   :  { %v5383_v42 = vsel %vm369_vm2, %v15275_v34, -inf  ;;  %v5298_v16 = vpop.xlane.xlu0 %5297 }
 0x2f5   :  { %5384 = vmax.xlane.f32.xlu0 %v5383_v42  ;;  %v5488_v56 = vsub.f32 %v14912_v30, %v5298_v16 }
 0x2f7   :  { %v5552_v26 = vmul.f32 1.442695, %v5488_v56 }
 0x2f9   :  { %13697 = vpow2.f32 %v5552_v26 }
 0x2fc   :  { %v2568_v23 = vpop.f32.mrf.mxu1 }
 0x2fd   :  { %v15283_v3 = vmul.f32 0.35355338, %v2568_v23  ;;  %v5304_v23 = vpop.xlane.xlu0 %5303 }
 0x2fe   :  { %v13079_v28 = vpop.f32.mrf.mxu1  ;;  %v5490_v16 = vsub.f32 %v14931_v43, %v5304_v23 }
 0x2ff   :  { %v5380_v46 = vsel %vm369_vm2, %v15283_v3, -inf }
 0x300   :  { %5381 = vmax.xlane.f32.xlu1 %v5380_v46  ;;  %v5556_v53 = vmul.f32 1.442695, %v5490_v16 }
 0x302   :  { %13699 = vpow2.f32 %v5556_v53 }
 0x30c   :  { %v2720_v32 = vpop.f32.mrf.mxu1 }
 0x30d   :  { %v15290_v5 = vmul.f32 0.35355338, %v2720_v32 }
 0x30e   :  { %v13089_v42 = vpop.f32.mrf.mxu1 }
 0x30f   :  { %v5386_v20 = vsel %vm369_vm2, %v15290_v5, -inf }
 0x310   :  { %5387 = vmax.xlane.f32.xlu1 %v5386_v20  ;;  %v2796_v28 = vpop.f32.mrf.mxu0  ;;  %v17420_v20 = vld [vmem:[#allocation31_spill] sm:$0xff] }
 0x311   :  { %v15294_v54 = vmul.f32 0.35355338, %v2796_v28  ;;  %v2872_v46 = vpop.f32.mrf.mxu1  ;;  %v5489_v42 = vsub.f32 %v17420_v20, %v5301_v8 }
 0x312   :  { %v15296_v47 = vmul.f32 0.35355338, %v2872_v46  ;;  %v13094_v13 = vpop.f32.mrf.mxu0 }
 0x313   :  { %v13099_v30 = vpop.f32.mrf.mxu1  ;;  %v5389_v32 = vsel %vm369_vm2, %v15294_v54, -inf }
 0x314   :  { %17419 = vst [vmem:[#allocation50_spill] sm:$0xff] %v15296_v47  ;;  %v5392_v56 = vsel %vm369_vm2, %v15296_v47, -inf  ;;  %5390 = vmax.xlane.f32.xlu0 %v5389_v32  ;;  %v2948_v26 = vpop.f32.mrf.mxu0  ;;  %v5554_v32 = vmul.f32 1.442695, %v5489_v42  ;;  %v5310_v42 = vpop.xlane.xlu1 %5309 }
 0x315   :  { %5393 = vmax.xlane.f32.xlu1 %v5392_v56  ;;  %v3024_v28 = vpop.f32.mrf.mxu1  ;;  %v15304_v63 = vmul.f32 0.35355338, %v2948_v26 }
 0x316   :  { %v15306_v46 = vmul.f32 0.35355338, %v3024_v28  ;;  %v13104_v13 = vpop.f32.mrf.mxu0  ;;  %v5307_v28 = vpop.xlane.xlu0 %5306  ;;  %13701 = vpow2.f32 %v5554_v32 }
 0x317   :  { %v13109_v30 = vpop.f32.mrf.mxu1  ;;  %v5395_v1 = vsel %vm369_vm2, %v15304_v63, -inf  ;;  %v5491_v32 = vsub.f32 %v14951_v38, %v5307_v28 }
 0x318   :  { %17421 = vst [vmem:[#allocation31_spill] sm:$0xff] %v15306_v46  ;;  %v5398_v43 = vsel %vm369_vm2, %v15306_v46, -inf  ;;  %5396 = vmax.xlane.f32.xlu0 %v5395_v1  ;;  %v3100_v23 = vpop.f32.mrf.mxu0  ;;  %v15320_v1 = vpop.eup %13697  ;;  %v17425_v46 = vld [vmem:[#allocation34_spill] sm:$0xff] }
 0x319   :  { %5399 = vmax.xlane.f32.xlu1 %v5398_v43  ;;  %v3176_v8 = vpop.f32.mrf.mxu1  ;;  %v15312_v56 = vmul.f32 0.35355338, %v3100_v23  ;;  %v5680_v53 = vsel %vm369_vm2, %v15320_v1, 0.0  ;;  %v5558_v47 = vmul.f32 1.442695, %v5491_v32  ;;  %v5316_v32 = vpop.xlane.xlu1 %5315 }
 0x31a   :  { %v15314_v26 = vmul.f32 0.35355338, %v3176_v8  ;;  %v13114_v20 = vpop.f32.mrf.mxu0 }
 0x31b   :  { %17422 = vst [vmem:[#allocation51_spill] sm:$0xff] %v15312_v56  ;;  %v13119_v13 = vpop.f32.mrf.mxu1  ;;  %v5401_v30 = vsel %vm369_vm2, %v15312_v56, -inf }
 0x31c   :  { %17423 = vst [vmem:[#allocation52_spill] sm:$0xff] %v15314_v26  ;;  %v5404_v16 = vsel %vm369_vm2, %v15314_v26, -inf  ;;  %5402 = vmax.xlane.f32.xlu0 %v5401_v30  ;;  %v5492_v13 = vsub.f32 %v17425_v46, %v5310_v42  ;;  %v5325_v26 = vpop.xlane.xlu0 %5324 }
 0x31d   :  { %5405 = vmax.xlane.f32.xlu1 %v5404_v16  ;;  %v3252_v43 = vpop.f32.mrf.mxu0 }
 0x31e   :  { %v3328_v23 = vpop.f32.mrf.mxu1  ;;  %v15322_v8 = vmul.f32 0.35355338, %v3252_v43 }
 0x31f   :  { %v13124_v20 = vpop.f32.mrf.mxu0  ;;  %v15325_v40 = vmul.f32 0.35355338, %v3328_v23 }
 0x320   :  { %17424 = vst [vmem:[#allocation53_spill] sm:$0xff] %v15322_v8  ;;  %v13129_v56 = vpop.f32.mrf.mxu1  ;;  %v5407_v30 = vsel %vm369_vm2, %v15322_v8, -inf  ;;  %v5560_v20 = vmul.f32 1.442695, %v5492_v13  ;;  %v5497_v8 = vsub.f32 %v14978_v15, %v5325_v26 }
 0x321   :  { %17426 = vst [vmem:[#allocation34_spill] sm:$0xff] %v15325_v40  ;;  %5681 = vadd.xlane.f32.xlu1 %v5680_v53  ;;  %5408 = vmax.xlane.f32.xlu0 %v5407_v30  ;;  %v5410_v23 = vsel %vm369_vm2, %v15325_v40, -inf }
 0x322   :  { %v3480_v16 = vpop.f32.mrf.mxu1  ;;  %v3404_v43 = vpop.f32.mrf.mxu0  ;;  %13703 = vpow2.f32 %v5560_v20  ;;  %v5570_v15 = vmul.f32 1.442695, %v5497_v8 }
 0x323   :  { %v15332_v45 = vmul.f32 0.35355338, %v3404_v43  ;;  %v15334_v46 = vmul.f32 0.35355338, %v3480_v16  ;;  %13705 = vpow2.f32 %v5558_v47 }
 0x324   :  { %v13139_v42 = vpop.f32.mrf.mxu1  ;;  %v13134_v56 = vpop.f32.mrf.mxu0  ;;  %13707 = vpow2.f32 %v5570_v15 }
 0x325   :  { %17427 = vst [vmem:[#allocation54_spill] sm:$0xff] %v15332_v45  ;;  %17428 = vst [vmem:[#allocation55_spill] sm:$0xff] %v15334_v46  ;;  %5411 = vmax.xlane.f32.xlu1 %v5410_v23  ;;  %v5413_v38 = vsel %vm369_vm2, %v15332_v45, -inf  ;;  %v5416_v43 = vsel %vm369_vm2, %v15334_v46, -inf  ;;  %v15345_v42 = vpop.eup %13699  ;;  %v5331_v23 = vpop.xlane.xlu0 %5330 }
 0x326   :  { %v3632_v28 = vpop.f32.mrf.mxu1  ;;  %5414 = vmax.xlane.f32.xlu0 %v5413_v38  ;;  %v3556_v53 = vpop.f32.mrf.mxu0  ;;  %v5499_v47 = vsub.f32 %v15004_v60, %v5331_v23 }
 0x327   :  { %v15341_v30 = vmul.f32 0.35355338, %v3556_v53  ;;  %v15349_v56 = vpop.eup %13701  ;;  %v5494_v53 = vsub.f32 %v14891_v25, %v5316_v32 }
 0x328   :  { %v13144_v13 = vpop.f32.mrf.mxu0  ;;  %v13149_v16 = vpop.f32.mrf.mxu1  ;;  %v5574_v15 = vmul.f32 1.442695, %v5499_v47 }
 0x329   :  { %17429 = vst [vmem:[#allocation56_spill] sm:$0xff] %v15341_v30  ;;  %5417 = vmax.xlane.f32.xlu1 %v5416_v43  ;;  %v5419_v26 = vsel %vm369_vm2, %v15341_v30, -inf  ;;  %v15352_v13 = vmul.f32 0.35355338, %v3632_v28  ;;  %v5686_v16 = vsel %vm369_vm2, %v15345_v42, 0.0  ;;  %v5313_v45 = vpop.xlane.xlu0 %5312 }
 0x32a   :  { %5420 = vmax.xlane.f32.xlu0 %v5419_v26  ;;  %v5683_v26 = vsel %vm369_vm2, %v15349_v56, 0.0  ;;  %v5564_v40 = vmul.f32 1.442695, %v5494_v53  ;;  %v5493_v47 = vsub.f32 %v15021_v58, %v5313_v45 }
 0x32b   :  { %v3784_v38 = vpop.f32.mrf.mxu1  ;;  %v3708_v20 = vpop.f32.mrf.mxu0  ;;  %17430 = vst [vmem:[#allocation57_spill] sm:$0xff] %v15352_v13  ;;  %v5422_v32 = vsel %vm369_vm2, %v15352_v13, -inf }
 0x32c   :  { %v15357_v8 = vmul.f32 0.35355338, %v3708_v20  ;;  %v15361_v25 = vmul.f32 0.35355338, %v3784_v38  ;;  %13709 = vpow2.f32 %v5564_v40  ;;  %v5562_v45 = vmul.f32 1.442695, %v5493_v47 }
 0x32d   :  { %v13154_v43 = vpop.f32.mrf.mxu0  ;;  %v13159_v46 = vpop.f32.mrf.mxu1  ;;  %5687 = vadd.xlane.f32.xlu1 %v5686_v16  ;;  %13711 = vpow2.f32 %v5574_v15 }
 0x32e   :  { %17431 = vst [vmem:[#allocation58_spill] sm:$0xff] %v15357_v8  ;;  %5684 = vadd.xlane.f32.xlu0 %v5683_v26  ;;  %17432 = vst [vmem:[#allocation59_spill] sm:$0xff] %v15361_v25  ;;  %v5425_v46 = vsel %vm369_vm2, %v15357_v8, -inf  ;;  %v5428_v38 = vsel %vm369_vm2, %v15361_v25, -inf  ;;  %v5322_v26 = vpop.xlane.xlu1 %5321  ;;  %13713 = vpow2.f32 %v5562_v45 }
 0x32f   :  { %v3936_v30 = vpop.f32.mrf.mxu1  ;;  %v15371_v43 = vpop.eup %13703 }
 0x330   :  { %v3860_v28 = vpop.f32.mrf.mxu0  ;;  %v15379_v13 = vmul.f32 0.35355338, %v3936_v30  ;;  %v5692_v15 = vsel %vm369_vm2, %v15371_v43, 0.0 }
 0x331   :  { %v15365_v60 = vmul.f32 0.35355338, %v3860_v28  ;;  %v13169_v23 = vpop.f32.mrf.mxu1  ;;  %5423 = vmax.xlane.f32.xlu1 %v5422_v32  ;;  %v5337_v28 = vpop.xlane.xlu0 %5336 }
 0x332   :  { %v13164_v20 = vpop.f32.mrf.mxu0  ;;  %5426 = vmax.xlane.f32.xlu0 %v5425_v46  ;;  %v15376_v23 = vpop.eup %13705  ;;  %17434 = vst [vmem:[#allocation61_spill] sm:$0xff] %v15379_v13  ;;  %v5501_v58 = vsub.f32 %v15051_v19, %v5337_v28  ;;  %v5434_v62 = vsel %vm369_vm2, %v15379_v13, -inf }
 0x333   :  { %17433 = vst [vmem:[#allocation60_spill] sm:$0xff] %v15365_v60  ;;  %v5431_v32 = vsel %vm369_vm2, %v15365_v60, -inf  ;;  %v5496_v20 = vsub.f32 %v14996_v36, %v5322_v26  ;;  %v15386_v60 = vpop.eup %13707  ;;  %v5328_v19 = vpop.xlane.xlu1 %5327 }
 0x334   :  { %v4088_v16 = vpop.f32.mrf.mxu1  ;;  %v4012_v53 = vpop.f32.mrf.mxu0  ;;  %17435 = vst [vmem:[#allocation62_spill] sm:$0xff] %v15386_v60  ;;  %v5578_v47 = vmul.f32 1.442695, %v5501_v58 }
 0x335   :  { %5429 = vmax.xlane.f32.xlu1 %v5428_v38  ;;  %v5689_v38 = vsel %vm369_vm2, %v15376_v23, 0.0  ;;  %v5568_v36 = vmul.f32 1.442695, %v5496_v20  ;;  %v5343_v30 = vpop.xlane.xlu0 %5342  ;;  %v15388_v26 = vmul.f32 0.35355338, %v4088_v16  ;;  %v5498_v16 = vsub.f32 %v15091_v29, %v5328_v19 }
 0x336   :  { %v13174_v46 = vpop.f32.mrf.mxu0  ;;  %v13179_v40 = vpop.f32.mrf.mxu1  ;;  %5432 = vmax.xlane.f32.xlu0 %v5431_v32  ;;  %v15392_v28 = vmul.f32 0.35355338, %v4012_v53  ;;  %v5503_v53 = vsub.f32 %v15099_v51, %v5343_v30 }
 0x337   :  { %17436 = vst [vmem:[#allocation63_spill] sm:$0xff] %v15388_v26  ;;  %13715 = vpow2.f32 %v5568_v36  ;;  %v5440_v45 = vsel %vm369_vm2, %v15388_v26, -inf  ;;  %v5572_v19 = vmul.f32 1.442695, %v5498_v16 }
 0x338   :  { %v4240_v25 = vpop.f32.mrf.mxu1  ;;  %v4164_v8 = vpop.f32.mrf.mxu0  ;;  %17437 = vst [vmem:[#allocation64_spill] sm:$0xff] %v15392_v28  ;;  %13717 = vpow2.f32 %v5578_v47  ;;  %v5582_v51 = vmul.f32 1.442695, %v5503_v53 }
 0x339   :  { %5693 = vadd.xlane.f32.xlu1 %v5692_v15  ;;  %v15401_v58 = vpop.eup %13709  ;;  %v5319_v36 = vpop.xlane.xlu0 %5318  ;;  %v15410_v26 = vmul.f32 0.35355338, %v4240_v25  ;;  %13719 = vpow2.f32 %v5572_v19 }
 0x33a   :  { %v13184_v46 = vpop.f32.mrf.mxu0  ;;  %v13189_v32 = vpop.f32.mrf.mxu1  ;;  %5690 = vadd.xlane.f32.xlu0 %v5689_v38  ;;  %v5698_v47 = vsel %vm369_vm2, %v15401_v58, 0.0  ;;  %v5495_v30 = vsub.f32 %v15122_v37, %v5319_v36  ;;  %13721 = vpow2.f32 %v5582_v51 }
 0x33b   :  { %v5707_v46 = vsel %vm369_vm2, %v15386_v60, 0.0  ;;  %17439 = vst [vmem:[#allocation66_spill] sm:$0xff] %v15410_v26  ;;  %v5446_v37 = vsel %vm369_vm2, %v15410_v26, -inf }
 0x33c   :  { %v4392_v40 = vpop.f32.mrf.mxu1 }
 0x33d   :  { %v15394_v15 = vpop.f32.mrf.mxu0  ;;  %5435 = vmax.xlane.f32.xlu1 %v5434_v62  ;;  %v5437_v62 = vsel %vm369_vm2, %v15392_v28, -inf }
 0x33e   :  { %v13199_v38 = vpop.f32.mrf.mxu1  ;;  %5708 = vadd.xlane.f32.xlu0 %v5707_v46  ;;  %v15408_v46 = vpop.eup %13711 }
 0x33f   :  { %v13194_v20 = vpop.f32.mrf.mxu0  ;;  %17438 = vst [vmem:[#allocation65_spill] sm:$0xff] %v15408_v46 }
 0x340   :  { %v4544_v32 = vpop.f32.mrf.mxu1  ;;  %v5334_v20 = vpop.xlane.xlu1 %5333 }
 0x341   :  { %v15404_v13 = vpop.f32.mrf.mxu0  ;;  %5441 = vmax.xlane.f32.xlu1 %v5440_v45  ;;  %v15415_v45 = vmul.f32 0.35355338, %v4164_v8  ;;  %v5500_v25 = vsub.f32 %v15170_v9, %v5334_v20  ;;  %v5566_v8 = vmul.f32 1.442695, %v5495_v30 }
 0x342   :  { %v13209_v38 = vpop.f32.mrf.mxu1  ;;  %5438 = vmax.xlane.f32.xlu0 %v5437_v62  ;;  %v5713_v62 = vsel %vm369_vm2, %v15408_v46, 0.0 }
 0x343   :  { %v13204_v29 = vpop.f32.mrf.mxu0  ;;  %17440 = vst [vmem:[#allocation67_spill] sm:$0xff] %v15415_v45  ;;  %v5443_v36 = vsel %vm369_vm2, %v15415_v45, -inf  ;;  %v5576_v19 = vmul.f32 1.442695, %v5500_v25  ;;  %13723 = vpow2.f32 %v5566_v8  ;;  %v15443_v8 = vmul.f32 0.35355338, %v15394_v15 }
 0x344   :  { %v15422_v29 = vmul.f32 0.35355338, %v4392_v40 }
 0x345   :  { %v4696_v60 = vpop.f32.mrf.mxu1  ;;  %v15417_v28 = vpop.f32.mrf.mxu0  ;;  %5699 = vadd.xlane.f32.xlu1 %v5698_v47  ;;  %13725 = vpow2.f32 %v5576_v19  ;;  %17445 = vst [vmem:[#allocation72_spill] sm:$0xff] %v15443_v8  ;;  %v5449_v15 = vsel %vm369_vm2, %v15443_v8, -inf }
 0x346   :  { %5714 = vadd.xlane.f32.xlu0 %v5713_v62  ;;  %17441 = vst [vmem:[#allocation68_spill] sm:$0xff] %v15422_v29  ;;  %v15428_v47 = vpop.eup %13713  ;;  %v5452_v9 = vsel %vm369_vm2, %v15422_v29, -inf  ;;  %v5340_v29 = vpop.xlane.xlu1 %5339 }
 0x347   :  { %v13214_v16 = vpop.f32.mrf.mxu0  ;;  %v13219_v38 = vpop.f32.mrf.mxu1  ;;  %v5695_v20 = vsel %vm369_vm2, %v15428_v47, 0.0  ;;  %v5502_v19 = vsub.f32 %v15207_v35, %v5340_v29 }
 0x348   :  { %v15432_v40 = vpop.eup %13715 }
 0x349   :  { %v4848_v53 = vpop.f32.mrf.mxu1  ;;  %5447 = vmax.xlane.f32.xlu1 %v5446_v37  ;;  %17442 = vst [vmem:[#allocation69_spill] sm:$0xff] %v15432_v40  ;;  %v15436_v51 = vpop.eup %13717 }
 0x34a   :  { %v4772_v62 = vpop.f32.mrf.mxu0  ;;  %5444 = vmax.xlane.f32.xlu0 %v5443_v36  ;;  %17443 = vst [vmem:[#allocation70_spill] sm:$0xff] %v15436_v51  ;;  %v15438_v36 = vmul.f32 0.35355338, %v4544_v32 }
 0x34b   :  { %v13229_v16 = vpop.f32.mrf.mxu1 }
 0x34c   :  { %v13224_v38 = vpop.f32.mrf.mxu0  ;;  %17444 = vst [vmem:[#allocation71_spill] sm:$0xff] %v15438_v36 }
 0x34d   :  { %5453 = vmax.xlane.f32.xlu1 %v5452_v9  ;;  %v5704_v38 = vsel %vm369_vm2, %v15432_v40, 0.0  ;;  %v5719_v9 = vsel %vm369_vm2, %v15436_v51, 0.0  ;;  %v5580_v51 = vmul.f32 1.442695, %v5502_v19  ;;  %v15456_v40 = vmul.f32 0.35355338, %v4696_v60 }
 0x34e   :  { %v5000_v30 = vpop.f32.mrf.mxu1  ;;  %v4924_v37 = vpop.f32.mrf.mxu0  ;;  %5696 = vadd.xlane.f32.xlu0 %v5695_v20  ;;  %v15469_v60 = vmul.f32 0.35355338, %v15404_v13  ;;  %v15482_v13 = vmul.f32 0.35355338, %v4848_v53 }
 0x34f   :  { %17447 = vst [vmem:[#allocation74_spill] sm:$0xff] %v15456_v40  ;;  %13727 = vpow2.f32 %v5580_v51  ;;  %v15478_v51 = vmul.f32 0.35355338, %v15417_v28 }
 0x350   :  { %v13234_v25 = vpop.f32.mrf.mxu0  ;;  %v13239_v16 = vpop.f32.mrf.mxu1  ;;  %17450 = vst [vmem:[#allocation77_spill] sm:$0xff] %v15469_v60  ;;  %17453 = vst [vmem:[#allocation80_spill] sm:$0xff] %v15482_v13  ;;  %v5470_v28 = vsel %vm369_vm2, %v15482_v13, -inf }
 0x351   :  { %5705 = vadd.xlane.f32.xlu1 %v5704_v38  ;;  %v5458_v25 = vsel %vm369_vm2, %v15438_v36, -inf  ;;  %v15450_v16 = vpop.eup %13719  ;;  %17452 = vst [vmem:[#allocation79_spill] sm:$0xff] %v15478_v51 }
 0x352   :  { %v5152_v26 = vpop.f32.mrf.mxu1  ;;  %v5076_v45 = vpop.f32.mrf.mxu0  ;;  %5720 = vadd.xlane.f32.xlu0 %v5719_v9  ;;  %v5710_v35 = vsel %vm369_vm2, %v15450_v16, 0.0 }
 0x353   :  { %v15454_v38 = vpop.eup %13721  ;;  %v15496_v53 = vmul.f32 0.35355338, %v5076_v45 }
 0x354   :  { %v13244_v32 = vpop.f32.mrf.mxu0  ;;  %v13249_v20 = vpop.f32.mrf.mxu1  ;;  %17446 = vst [vmem:[#allocation73_spill] sm:$0xff] %v15454_v38  ;;  %v5725_v29 = vsel %vm369_vm2, %v15454_v38, 0.0 }
 0x355   :  { %5459 = vmax.xlane.f32.xlu1 %v5458_v25  ;;  %v15462_v32 = vpop.eup %13723  ;;  %v5464_v20 = vsel %vm369_vm2, %v15456_v40, -inf  ;;  %17456 = vst [vmem:[#allocation83_spill] sm:$0xff] %v15496_v53 }
 0x356   :  { %v5228_v46 = vpop.f32.mrf.mxu0  ;;  %5450 = vmax.xlane.f32.xlu0 %v5449_v15  ;;  %17448 = vst [vmem:[#allocation75_spill] sm:$0xff] %v15462_v32  ;;  %v15466_v25 = vpop.eup %13725  ;;  %v5701_v19 = vsel %vm369_vm2, %v15462_v32, 0.0  ;;  %v15473_v15 = vmul.f32 0.35355338, %v4924_v37  ;;  %v5461_v37 = vsel %vm369_vm2, %v15478_v51, -inf }
 0x357   :  { %17449 = vst [vmem:[#allocation76_spill] sm:$0xff] %v15466_v25 }
 0x358   :  { %v13254_v9 = vpop.f32.mrf.mxu0  ;;  %17451 = vst [vmem:[#allocation78_spill] sm:$0xff] %v15473_v15 }
 0x359   :  { %5711 = vadd.xlane.f32.xlu1 %v5710_v35  ;;  %v5716_v9 = vsel %vm369_vm2, %v15466_v25, 0.0  ;;  %v5455_v35 = vsel %vm369_vm2, %v15469_v60, -inf }
 0x35a   :  { %5726 = vadd.xlane.f32.xlu0 %v5725_v29  ;;  %v5473_v29 = vsel %vm369_vm2, %v15473_v15, -inf }
 0x35d   :  { %5465 = vmax.xlane.f32.xlu1 %v5464_v20  ;;  %v15486_v20 = vmul.f32 0.35355338, %v4772_v62 }
 0x35e   :  { %5702 = vadd.xlane.f32.xlu0 %v5701_v19  ;;  %v15492_v19 = vpop.eup %13727 }
 0x35f   :  { %17454 = vst [vmem:[#allocation81_spill] sm:$0xff] %v15486_v20  ;;  %17455 = vst [vmem:[#allocation82_spill] sm:$0xff] %v15492_v19  ;;  %v5722_v62 = vsel %vm369_vm2, %v15492_v19, 0.0 }
 0x361   :  { %5717 = vadd.xlane.f32.xlu1 %v5716_v9  ;;  %v5467_v9 = vsel %vm369_vm2, %v15486_v20, -inf }
 0x362   :  { %5456 = vmax.xlane.f32.xlu0 %v5455_v35  ;;  %v15500_v35 = vmul.f32 0.35355338, %v5000_v30 }
 0x364   :  { %17457 = vst [vmem:[#allocation84_spill] sm:$0xff] %v15500_v35  ;;  %v5476_v13 = vsel %vm369_vm2, %v15500_v35, -inf }
 0x365   :  { %5474 = vmax.xlane.f32.xlu1 %v5473_v29  ;;  %v5479_v29 = vsel %vm369_vm2, %v15496_v53, -inf }
 0x366   :  { %5462 = vmax.xlane.f32.xlu0 %v5461_v37  ;;  %v15504_v37 = vmul.f32 0.35355338, %v5228_v46  ;;  %v5349_v46 = vpop.xlane.xlu0 %5348 }
 0x368   :  { %17458 = vst [vmem:[#allocation85_spill] sm:$0xff] %v15504_v37  ;;  %v5485_v45 = vsel %vm369_vm2, %v15504_v37, -inf }
 0x369   :  { %5471 = vmax.xlane.f32.xlu1 %v5470_v28  ;;  %v15508_v28 = vmul.f32 0.35355338, %v5152_v26 }
 0x36a   :  { %5468 = vmax.xlane.f32.xlu0 %v5467_v9  ;;  %v5346_v9 = vpop.xlane.xlu1 %5345 }
 0x36b   :  { %17459 = vst [vmem:[#allocation86_spill] sm:$0xff] %v15508_v28  ;;  %v5482_v30 = vsel %vm369_vm2, %v15508_v28, -inf  ;;  %v5504_v36 = vsub.f32 %v15217_v10, %v5346_v9 }
 0x36d   :  { %5723 = vadd.xlane.f32.xlu1 %v5722_v62  ;;  %v5584_v8 = vmul.f32 1.442695, %v5504_v36 }
 0x36e   :  { %v5352_v62 = vpop.xlane.xlu1 %5351 }
 0x371   :  { %5480 = vmax.xlane.f32.xlu1 %v5479_v29  ;;  %v5355_v29 = vpop.xlane.xlu0 %5354 }
 0x372   :  { %v5358_v53 = vpop.xlane.xlu1 %5357 }
 0x375   :  { %5477 = vmax.xlane.f32.xlu1 %v5476_v13  ;;  %v5505_v13 = vsub.f32 %v15164_v18, %v5349_v46  ;;  %v5361_v26 = vpop.xlane.xlu0 %5360 }
 0x376   :  { %v15517_v35 = vpop.xlane.xlu1 %5363  ;;  %v5509_v10 = vsub.f32 %v15209_v22, %v5361_v26 }
 0x377   :  { %v5586_v15 = vmul.f32 1.442695, %v5505_v13 }
 0x378   :  { %v5594_v36 = vmul.f32 1.442695, %v5509_v10 }
 0x379   :  { %5486 = vmax.xlane.f32.xlu1 %v5485_v45  ;;  %v5367_v37 = vpop.xlane.xlu0 %5366  ;;  %13729 = vpow2.f32 %v5586_v15 }
 0x37a   :  { %v15519_v45 = vpop.xlane.xlu1 %5369 }
 0x37d   :  { %5483 = vmax.xlane.f32.xlu1 %v5482_v30  ;;  %v15523_v30 = vpop.xlane.xlu0 %5372 }
 0x380   :  { %8660 = vrot.lane.b32.xlu0 %v14392_v49, %s14039_s27  ;;  %v15525_v49 = vpop.xlane.xlu1 %5375 }
 0x381   :  { %v15529_v28 = vpop.xlane.xlu0 %5378 }
 0x385   :  { %v15535_v46 = vpop.xlane.xlu0 %5384 }
 0x389   :  { %v15531_v18 = vpop.xlane.xlu1 %5381 }
 0x38e   :  { %9876 = vrot.lane.b32.xlu1 %v14394_v50, %s14039_s27  ;;  %v15541_v50 = vpop.eup %13729 }
 0x38f   :  { %17460 = vst [vmem:[#allocation87_spill] sm:$0xff] %v15541_v50 }
 0x392   :  { %10332 = vrot.lane.b32.xlu1 %v17393_v6, %s14039_s27  ;;  %v5731_v6 = vsel %vm369_vm2, %v15541_v50, 0.0 }
 0x396   :  { %10484 = vrot.lane.b32.xlu1 %v17397_v12, %s14039_s27 }
 0x399   :  { %v15537_v15 = vpop.xlane.xlu1 %5387 }
 0x39a   :  { %10636 = vrot.lane.b32.xlu1 %v17400_v48, %s14039_s27  ;;  %v5507_v48 = vsub.f32 %v15196_v44, %v5355_v29 }
 0x39c   :  { %v5590_v25 = vmul.f32 1.442695, %v5507_v48 }
 0x39d   :  { %v15543_v13 = vpop.xlane.xlu0 %5390 }
 0x39e   :  { %v15545_v40 = vpop.xlane.xlu1 %5393 }
 0x39f   :  { %5732 = vadd.xlane.f32.xlu0 %v5731_v6  ;;  %v5506_v6 = vsub.f32 %v15229_v2, %v5352_v62 }
 0x3a1   :  { %v15549_v20 = vpop.xlane.xlu0 %5396  ;;  %v5588_v9 = vmul.f32 1.442695, %v5506_v6  ;;  %v17463_v6 = vmov 0.0  }
 0x3a2   :  { %v15551_v12 = vpop.xlane.xlu1 %5399 }
 0x3a5   :  { %v15554_v51 = vpop.xlane.xlu0 %5402 }
 0x3a6   :  { %v15556_v60 = vpop.xlane.xlu1 %5405 }
 0x3a7   :  { %17461 = vst [vmem:[#allocation88_spill] sm:$0xff] %v15556_v60 }
 0x3aa   :  { %v5682_v19 = vpop.xlane.xlu1 %5681  ;;  %v15559_v38 = vpop.xlane.xlu0 %5408 }
 0x3ab   :  { %13731 = vrcp.f32 %v5682_v19 }
 0x3ac   :  { %13733 = vpow2.f32 %v5584_v8  ;;  %v5508_v8 = vsub.f32 %v15241_v57, %v5358_v53  ;;  %v5510_v57 = vsub.f32 %v15249_v55, %v15517_v35  ;;  %v17462_v53 = vld [vmem:[#allocation8_spill] sm:$0xff] }
 0x3ad   :  { %13735 = vpow2.f32 %v5590_v25  ;;  %v5511_v25 = vsub.f32 %v15223_v17, %v5367_v37 }
 0x3ae   :  { %v15562_v50 = vpop.xlane.xlu1 %5411  ;;  %13737 = vpow2.f32 %v5588_v9  ;;  %v5592_v29 = vmul.f32 1.442695, %v5508_v8  ;;  %v5596_v35 = vmul.f32 1.442695, %v5510_v57  ;;  %v5513_v9 = vsub.f32 %v15235_v39, %v15523_v30 }
 0x3af   :  { %v15564_v32 = vpop.xlane.xlu0 %5414  ;;  %13739 = vpow2.f32 %v5594_v36  ;;  %v5598_v37 = vmul.f32 1.442695, %v5511_v25  ;;  %v5512_v25 = vsub.f32 %v15257_v41, %v15519_v45  ;;  %v5515_v41 = vsub.f32 %v15263_v7, %v15529_v28  ;;  %v17464_v45 = vld [vmem:[#allocation12_spill] sm:$0xff] }
 0x3b0   :  { %v5514_v7 = vsub.f32 %v15269_v27, %v15525_v49  ;;  %v5517_v49 = vsub.f32 %v15275_v34, %v15535_v46  ;;  %v5516_v34 = vsub.f32 %v15283_v3, %v15531_v18  ;;  %v17466_v46 = vld [vmem:[#allocation16_spill] sm:$0xff]  ;;  %v5519_v3 = vsub.f32 %v15294_v54, %v15543_v13 }
 0x3b1   :  { %v5518_v54 = vsub.f32 %v15290_v5, %v15537_v15  ;;  %v17468_v5 = vld [vmem:[#allocation24_spill] sm:$0xff] }
 0x3b2   :  { %v15567_v60 = vpop.xlane.xlu1 %5417  ;;  %v5604_v27 = vmul.f32 1.442695, %v5514_v7  ;;  %v5614_v13 = vmul.f32 1.442695, %v5519_v3 }
 0x3b3   :  { %v15569_v44 = vpop.xlane.xlu0 %5420  ;;  %v5612_v15 = vmul.f32 1.442695, %v5518_v54  ;;  %v17475_v54 = vld [vmem:[#allocation69_spill] sm:$0xff] }
 0x3b5   :  { %8736 = vrot.lane.b32.xlu0 %v14460_v0, %s14039_s27 }
 0x3b6   :  { %v5688_v2 = vpop.xlane.xlu1 %5687 }
 0x3b7   :  { %v5685_v19 = vpop.xlane.xlu0 %5684  ;;  %13741 = vrcp.f32 %v5688_v2 }
 0x3b8   :  { %v13732_v62 = vpop.eup %13731  ;;  %13743 = vrcp.f32 %v5685_v19 }
 0x3b9   :  { %8812 = vrot.lane.b32.xlu0 %v14448_v61, %s14039_s27  ;;  %v15576_v22 = vpop.eup %13733  ;;  %v5936_v0 = vmul.f32 %v13732_v62, %v15320_v1  ;;  %13745 = vpow2.f32 %v5592_v29  ;;  %v5602_v62 = vmul.f32 1.442695, %v5513_v9 }
 0x3ba   :  { %v15579_v26 = vpop.xlane.xlu1 %5423  ;;  %v5728_v61 = vsel %vm369_vm2, %v15576_v22, 0.0  ;;  %v15592_v17 = vpop.eup %13735  ;;  %13747 = vpow2.f32 %v5598_v37 }
 0x3bb   :  { %v15582_v48 = vpop.xlane.xlu0 %5426  ;;  %13258 = vmatmul.mubr.msk.f32.vlgmr.msra.gmra.mxu1 %vm369_vm2, %v5936_v0  ;;  %v15605_v10 = vpop.eup %13737  ;;  %13749 = vpow2.f32 %v5596_v35 }
 0x3bc   :  { %13266 = vmatpush3.msra.mxu1 %v17462_v53  ;;  %13267 = vmatprep.mubr.msk.f32.mxu1 %vm14034_vm1, %v17463_v6  ;;  %v15609_v2 = vpop.eup %13739 }
 0x3bd   :  { %8888 = vrot.lane.b32.xlu0 %v14510_v11, %s14039_s27  ;;  %13275 = vmatprep.subr.mxu1 %v17463_v6  ;;  %v5737_v11 = vsel %vm369_vm2, %v15592_v17, 0.0 }
 0x3be   :  { %v15594_v1 = vpop.xlane.xlu1 %5429  ;;  %5729 = vadd.xlane.f32.xlu1 %v5728_v61  ;;  %v17465_v61 = vld [vmem:[#allocation6_spill] sm:$0xff] }
 0x3bf   :  { %v15598_v55 = vpop.xlane.xlu0 %5432 }
 0x3c1   :  { %8964 = vrot.lane.b32.xlu0 %v14480_v4, %s14039_s27  ;;  %v5734_v4 = vsel %vm369_vm2, %v15605_v10, 0.0 }
 0x3c2   :  { %v5694_v36 = vpop.xlane.xlu1 %5693  ;;  %5738 = vadd.xlane.f32.xlu1 %v5737_v11 }
 0x3c3   :  { %v5691_v8 = vpop.xlane.xlu0 %5690  ;;  %13751 = vrcp.f32 %v5694_v36 }
 0x3c4   :  { %v13742_v19 = vpop.eup %13741  ;;  %13753 = vrcp.f32 %v5691_v8 }
 0x3c5   :  { %9040 = vrot.lane.b32.xlu0 %v14570_v24, %s14039_s27  ;;  %v13744_v30 = vpop.eup %13743  ;;  %v5938_v0 = vmul.f32 %v13742_v19, %v15345_v42  ;;  %13755 = vpow2.f32 %v5602_v62  ;;  %v5600_v24 = vmul.f32 1.442695, %v5512_v25  ;;  %v5743_v42 = vsel %vm369_vm2, %v15609_v2, 0.0 }
 0x3c6   :  { %v15617_v39 = vpop.xlane.xlu1 %5435  ;;  %5735 = vadd.xlane.f32.xlu1 %v5734_v4  ;;  %v5937_v57 = vmul.f32 %v13744_v30, %v15349_v56  ;;  %v15634_v56 = vpop.eup %13745 }
 0x3c7   :  { %v15619_v29 = vpop.xlane.xlu0 %5708  ;;  %13268 = vmatmul.mubr.msk.f32.vlgmr.msra.gmra.mxu1 %vm369_vm2, %v5938_v0  ;;  %13757 = vpow2.f32 %v5600_v24  ;;  %v5740_v35 = vsel %vm369_vm2, %v15634_v56, 0.0  ;;  %v15651_v11 = vpop.eup %13747 }
 0x3c8   :  { %13263 = vmatmul.mubr.msk.f32.vlgmr.msra.gmra.mxu0 %vm369_vm2, %v5937_v57  ;;  %13276 = vmatpush3.msra.mxu1 %v17464_v45  ;;  %v5749_v4 = vsel %vm369_vm2, %v15651_v11, 0.0  ;;  %v17467_v57 = vld [vmem:[#allocation9_spill] sm:$0xff] }
 0x3c9   :  { %9116 = vrot.lane.b32.xlu0 %v14527_v14, %s14039_s27  ;;  %13271 = vmatpush3.msra.mxu0 %v17465_v61  ;;  %v5606_v14 = vmul.f32 1.442695, %v5515_v41 }
 0x3ca   :  { %v15630_v53 = vpop.xlane.xlu1 %5441  ;;  %5744 = vadd.xlane.f32.xlu1 %v5743_v42  ;;  %13277 = vmatprep.mubr.msk.f32.mxu1 %vm14034_vm1, %v17463_v6 }
 0x3cb   :  { %v15637_v37 = vpop.xlane.xlu0 %5438  ;;  %13285 = vmatprep.subr.mxu1 %v17463_v6  ;;  %13272 = vmatprep.mubr.msk.f32.mxu0 %vm14034_vm1, %v17463_v6 }
 0x3cc   :  { %13280 = vmatprep.subr.mxu0 %v17463_v6 }
 0x3cd   :  { %9192 = vrot.lane.b32.xlu0 %v14618_v59, %s14039_s27  ;;  %v15655_v59 = vpop.eup %13749 }
 0x3ce   :  { %v5700_v28 = vpop.xlane.xlu1 %5699  ;;  %5741 = vadd.xlane.f32.xlu1 %v5740_v35 }
 0x3cf   :  { %v15653_v9 = vpop.xlane.xlu0 %5714  ;;  %13759 = vrcp.f32 %v5700_v28 }
 0x3d0   :  { %v13752_v36 = vpop.eup %13751  ;;  %13761 = vpow2.f32 %v5606_v14 }
 0x3d1   :  { %9268 = vrot.lane.b32.xlu0 %v14556_v21, %s14039_s27  ;;  %v13754_v19 = vpop.eup %13753  ;;  %v5940_v25 = vmul.f32 %v13752_v36, %v15371_v43  ;;  %13763 = vpow2.f32 %v5604_v27  ;;  %v5610_v21 = vmul.f32 1.442695, %v5517_v49  ;;  %v5746_v43 = vsel %vm369_vm2, %v15655_v59, 0.0  ;;  %v17469_v36 = vld [vmem:[#allocation21_spill] sm:$0xff] }
 0x3d2   :  { %v15661_v8 = vpop.xlane.xlu1 %5447  ;;  %5750 = vadd.xlane.f32.xlu1 %v5749_v4  ;;  %v5939_v30 = vmul.f32 %v13754_v19, %v15376_v23  ;;  %v15680_v23 = vpop.eup %13755 }
 0x3d3   :  { %v15665_v62 = vpop.xlane.xlu0 %5444  ;;  %13278 = vmatmul.mubr.msk.f32.vlgmr.msra.gmra.mxu1 %vm369_vm2, %v5940_v25  ;;  %v5755_v41 = vsel %vm369_vm2, %v15680_v23, 0.0  ;;  %v17471_v25 = vld [vmem:[#allocation4_spill] sm:$0xff] }
 0x3d4   :  { %13273 = vmatmul.mubr.msk.f32.vlgmr.msra.gmra.mxu0 %vm369_vm2, %v5939_v30  ;;  %13286 = vmatpush3.msra.mxu1 %v17466_v46  ;;  %v15695_v45 = vpop.eup %13757 }
 0x3d5   :  { %9344 = vrot.lane.b32.xlu0 %v14662_v52, %s14039_s27  ;;  %13281 = vmatpush3.msra.mxu0 %v17467_v57  ;;  %v5608_v52 = vmul.f32 1.442695, %v5516_v34  ;;  %v5752_v14 = vsel %vm369_vm2, %v15695_v45, 0.0 }
 0x3d6   :  { %v15676_v0 = vpop.xlane.xlu1 %5453  ;;  %5747 = vadd.xlane.f32.xlu1 %v5746_v43  ;;  %13287 = vmatprep.mubr.msk.f32.mxu1 %vm14034_vm1, %v17463_v6 }
 0x3d7   :  { %v5697_v24 = vpop.xlane.xlu0 %5696  ;;  %13295 = vmatprep.subr.mxu1 %v17463_v6  ;;  %13282 = vmatprep.mubr.msk.f32.mxu0 %vm14034_vm1, %v17463_v6 }
 0x3d8   :  { %13765 = vrcp.f32 %v5697_v24  ;;  %13290 = vmatprep.subr.mxu0 %v17463_v6 }
 0x3d9   :  { %9420 = vrot.lane.b32.xlu0 %v14594_v31, %s14039_s27  ;;  %13767 = vpow2.f32 %v5610_v21 }
 0x3da   :  { %v5706_v18 = vpop.xlane.xlu1 %5705  ;;  %5756 = vadd.xlane.f32.xlu1 %v5755_v41  ;;  %v17474_v41 = vld [vmem:[#allocation14_spill] sm:$0xff] }
 0x3db   :  { %v15697_v42 = vpop.xlane.xlu0 %5720  ;;  %13769 = vrcp.f32 %v5706_v18  ;;  %v17473_v18 = vld [vmem:[#allocation2_spill] sm:$0xff] }
 0x3dc   :  { %v13760_v31 = vpop.eup %13759  ;;  %13771 = vpow2.f32 %v5608_v52  ;;  %v17472_v52 = vld [vmem:[#allocation51_spill] sm:$0xff] }
 0x3dd   :  { %9496 = vrot.lane.b32.xlu0 %v14704_v33, %s14039_s27  ;;  %v15707_v7 = vpop.eup %13761  ;;  %v5942_v35 = vmul.f32 %v13760_v31, %v15401_v58  ;;  %v5521_v33 = vsub.f32 %v15304_v63, %v15549_v20  ;;  %13773 = vpow2.f32 %v5614_v13  ;;  %v17470_v63 = vld [vmem:[#allocation50_spill] sm:$0xff]  ;;  %v5523_v3 = vsub.f32 %v17472_v52, %v15554_v51  ;;  %v17476_v51 = vld [vmem:[#allocation31_spill] sm:$0xff] }
 0x3de   :  { %v15703_v61 = vpop.xlane.xlu1 %5459  ;;  %5753 = vadd.xlane.f32.xlu1 %v5752_v14  ;;  %v5761_v49 = vsel %vm369_vm2, %v15707_v7, 0.0  ;;  %v15722_v58 = vpop.eup %13763  ;;  %v5520_v20 = vsub.f32 %v17470_v63, %v15545_v40 }
 0x3df   :  { %v15709_v28 = vpop.xlane.xlu0 %5450  ;;  %13288 = vmatmul.mubr.msk.f32.vlgmr.msra.gmra.mxu1 %vm369_vm2, %v5942_v35  ;;  %v5618_v19 = vmul.f32 1.442695, %v5521_v33  ;;  %v5758_v34 = vsel %vm369_vm2, %v15722_v58, 0.0  ;;  %v5622_v35 = vmul.f32 1.442695, %v5523_v3  ;;  %v17477_v33 = vld [vmem:[#allocation27_spill] sm:$0xff] }
 0x3e0   :  { %13296 = vmatpush3.msra.mxu1 %v17469_v36  ;;  %13297 = vmatprep.mubr.msk.f32.mxu1 %vm14034_vm1, %v17463_v6  ;;  %v5616_v24 = vmul.f32 1.442695, %v5520_v20  ;;  %v17484_v3 = vld [vmem:[#allocation29_spill] sm:$0xff] }
 0x3e1   :  { %9572 = vrot.lane.b32.xlu0 %v17468_v5, %s14039_s27  ;;  %13305 = vmatprep.subr.mxu1 %v17463_v6  ;;  %v17478_v5 = vld [vmem:[#allocation7_spill] sm:$0xff] }
 0x3e2   :  { %v5712_v27 = vpop.xlane.xlu1 %5711  ;;  %5762 = vadd.xlane.f32.xlu1 %v5761_v49 }
 0x3e3   :  { %v5727_v4 = vpop.xlane.xlu0 %5726  ;;  %13775 = vrcp.f32 %v5712_v27 }
 0x3e4   :  { %13777 = vpow2.f32 %v5612_v15 }
 0x3e5   :  { %9648 = vrot.lane.b32.xlu0 %v17471_v25, %s14039_s27  ;;  %v13766_v30 = vpop.eup %13765 }
 0x3e6   :  { %v15729_v21 = vpop.xlane.xlu1 %5465  ;;  %v15733_v46 = vpop.eup %13767  ;;  %5759 = vadd.xlane.f32.xlu1 %v5758_v34  ;;  %v5941_v57 = vmul.f32 %v13766_v30, %v15428_v47 }
 0x3e7   :  { %v5703_v43 = vpop.xlane.xlu0 %5702  ;;  %v5767_v47 = vsel %vm369_vm2, %v15733_v46, 0.0 }
 0x3e8   :  { %13779 = vrcp.f32 %v5703_v43  ;;  %v13770_v40 = vpop.eup %13769  ;;  %13283 = vmatmul.mubr.msk.f32.vlgmr.msra.gmra.mxu0 %vm369_vm2, %v5941_v57  ;;  %v17481_v57 = vld [vmem:[#allocation88_spill] sm:$0xff] }
 0x3e9   :  { %13781 = vpow2.f32 %v5618_v19  ;;  %9724 = vrot.lane.b32.xlu0 %v17473_v18, %s14039_s27  ;;  %13291 = vmatpush3.msra.mxu0 %v17474_v41  ;;  %v5944_v13 = vmul.f32 %v13770_v40, %v17475_v54  ;;  %v15748_v14 = vpop.eup %13771  ;;  %v17482_v40 = vld [vmem:[#allocation52_spill] sm:$0xff]  ;;  %v17485_v41 = vld [vmem:[#allocation75_spill] sm:$0xff] }
 0x3ea   :  { %13783 = vrcp.f32 %v15619_v29  ;;  %v5718_v31 = vpop.xlane.xlu1 %5717  ;;  %13292 = vmatprep.mubr.msk.f32.mxu0 %vm14034_vm1, %v17463_v6  ;;  %5768 = vadd.xlane.f32.xlu1 %v5767_v47  ;;  %v5522_v29 = vsub.f32 %v17476_v51, %v15551_v12  ;;  %v5764_v36 = vsel %vm369_vm2, %v15748_v14, 0.0  ;;  %v15765_v27 = vpop.eup %13773  ;;  %v17479_v12 = vld [vmem:[#allocation53_spill] sm:$0xff]  ;;  %v17487_v51 = vld [vmem:[#allocation15_spill] sm:$0xff] }
 0x3eb   :  { %13300 = vmatprep.subr.mxu0 %v17463_v6  ;;  %13785 = vrcp.f32 %v5718_v31  ;;  %13298 = vmatmul.mubr.msk.f32.vlgmr.msra.gmra.mxu1 %vm369_vm2, %v5944_v13  ;;  %v5525_v49 = vsub.f32 %v17479_v12, %v15559_v38  ;;  %v5773_v25 = vsel %vm369_vm2, %v15765_v27, 0.0  ;;  %v17486_v13 = vld [vmem:[#allocation18_spill] sm:$0xff] }
 0x3ec   :  { %13787 = vpow2.f32 %v5616_v24  ;;  %13306 = vmatpush3.msra.mxu1 %v17477_v33  ;;  %13307 = vmatprep.mubr.msk.f32.mxu1 %vm14034_vm1, %v17463_v6  ;;  %v5620_v63 = vmul.f32 1.442695, %v5522_v29  ;;  %v5524_v24 = vsub.f32 %v17482_v40, %v17481_v57  ;;  %v17494_v57 = vld [vmem:[#allocation13_spill] sm:$0xff] }
 0x3ed   :  { %9800 = vrot.lane.b32.xlu0 %v17478_v5, %s14039_s27  ;;  %13789 = vrcp.f32 %v15653_v9  ;;  %13315 = vmatprep.subr.mxu1 %v17463_v6  ;;  %v17480_v9 = vld [vmem:[#allocation11_spill] sm:$0xff]  ;;  %v5626_v43 = vmul.f32 1.442695, %v5525_v49  ;;  %v17490_v49 = vld [vmem:[#allocation76_spill] sm:$0xff] }
 0x3ee   :  { %v15758_v15 = vpop.xlane.xlu1 %5474  ;;  %5765 = vadd.xlane.f32.xlu1 %v5764_v36  ;;  %13791 = vpow2.f32 %v5622_v35  ;;  %v17488_v35 = vld [vmem:[#allocation54_spill] sm:$0xff] }
 0x3ef   :  { %13793 = vrcp.f32 %v15697_v42  ;;  %v17483_v42 = vld [vmem:[#allocation10_spill] sm:$0xff]  ;;  %v5527_v33 = vsub.f32 %v17488_v35, %v15564_v32 }
 0x3f0   :  { %v13776_v20 = vpop.eup %13775  ;;  %13795 = vpow2.f32 %v5620_v63  ;;  %v17489_v36 = vld [vmem:[#allocation62_spill] sm:$0xff] }
 0x3f1   :  { %9952 = vrot.lane.b32.xlu0 %v17480_v9, %s14039_s27  ;;  %v15776_v30 = vpop.eup %13777  ;;  %v5946_v34 = vmul.f32 %v13776_v20, %v15450_v16  ;;  %13797 = vrcp.f32 %v5727_v4  ;;  %v5624_v4 = vmul.f32 1.442695, %v5524_v24  ;;  %v17491_v32 = vld [vmem:[#allocation34_spill] sm:$0xff]  ;;  %v17495_v24 = vld [vmem:[#allocation65_spill] sm:$0xff] }
 0x3f2   :  { %v15772_v19 = vpop.xlane.xlu1 %5471  ;;  %5774 = vadd.xlane.f32.xlu1 %v5773_v25  ;;  %v5770_v16 = vsel %vm369_vm2, %v15776_v30, 0.0  ;;  %13799 = vpow2.f32 %v5626_v43  ;;  %v5526_v20 = vsub.f32 %v17491_v32, %v15562_v50  ;;  %v17492_v25 = vld [vmem:[#allocation22_spill] sm:$0xff] }
 0x3f3   :  { %13308 = vmatmul.mubr.msk.f32.vlgmr.msra.gmra.mxu1 %vm369_vm2, %v5946_v34  ;;  %v17493_v34 = vld [vmem:[#allocation39_spill] sm:$0xff] }
 0x3f4   :  { %13316 = vmatpush3.msra.mxu1 %v17484_v3  ;;  %13317 = vmatprep.mubr.msk.f32.mxu1 %vm14034_vm1, %v17463_v6  ;;  %v5628_v3 = vmul.f32 1.442695, %v5526_v20  ;;  %v17504_v20 = vld [vmem:[#allocation82_spill] sm:$0xff] }
 0x3f5   :  { %v13780_v38 = vpop.eup %13779  ;;  %10028 = vrot.lane.b32.xlu0 %v17483_v42, %s14039_s27  ;;  %13325 = vmatprep.subr.mxu1 %v17463_v6 }
 0x3f6   :  { %v15784_v52 = vpop.eup %13781  ;;  %v5724_v18 = vpop.xlane.xlu1 %5723  ;;  %v5943_v31 = vmul.f32 %v13780_v38, %v17485_v41  ;;  %5771 = vadd.xlane.f32.xlu1 %v5770_v16  ;;  %v5630_v38 = vmul.f32 1.442695, %v5527_v33  ;;  %v17497_v41 = vld [vmem:[#allocation56_spill] sm:$0xff] }
 0x3f7   :  { %v13784_v47 = vpop.eup %13783  ;;  %13801 = vrcp.f32 %v5724_v18  ;;  %v5779_v5 = vsel %vm369_vm2, %v15784_v52, 0.0  ;;  %v17496_v18 = vld [vmem:[#allocation38_spill] sm:$0xff] }
 0x3f8   :  { %13293 = vmatmul.mubr.msk.f32.vlgmr.msra.gmra.mxu0 %vm369_vm2, %v5943_v31  ;;  %v13786_v54 = vpop.eup %13785  ;;  %v5945_v12 = vmul.f32 %v13784_v47, %v17489_v36  ;;  %13803 = vpow2.f32 %v5624_v4  ;;  %v5529_v31 = vsub.f32 %v17497_v41, %v15569_v44  ;;  %v17498_v47 = vld [vmem:[#allocation20_spill] sm:$0xff]  ;;  %v17499_v4 = vld [vmem:[#allocation70_spill] sm:$0xff] }
 0x3f9   :  { %13301 = vmatpush3.msra.mxu0 %v17486_v13  ;;  %10104 = vrot.lane.b32.xlu0 %v17487_v51, %s14039_s27  ;;  %v15797_v29 = vpop.eup %13787  ;;  %v5948_v63 = vmul.f32 %v13786_v54, %v17490_v49  ;;  %13805 = vpow2.f32 %v5630_v38  ;;  %v17500_v44 = vld [vmem:[#allocation40_spill] sm:$0xff]  ;;  %v17502_v49 = vld [vmem:[#allocation25_spill] sm:$0xff]  ;;  %v17506_v38 = vld [vmem:[#allocation58_spill] sm:$0xff] }
 0x3fa   :  { %13302 = vmatprep.mubr.msk.f32.mxu0 %vm14034_vm1, %v17463_v6  ;;  %13310 = vmatprep.subr.mxu0 %v17463_v6  ;;  %v13790_v9 = vpop.eup %13789  ;;  %v5776_v40 = vsel %vm369_vm2, %v15797_v29, 0.0  ;;  %13807 = vpow2.f32 %v5628_v3  ;;  %v17510_v41 = vld [vmem:[#allocation30_spill] sm:$0xff] }
 0x3fb   :  { %5780 = vadd.xlane.f32.xlu1 %v5779_v5  ;;  %13318 = vmatmul.mubr.msk.f32.vlgmr.msra.gmra.mxu1 %vm369_vm2, %v5948_v63  ;;  %v15814_v43 = vpop.eup %13791  ;;  %v5947_v42 = vmul.f32 %v13790_v9, %v17495_v24  ;;  %v17501_v5 = vld [vmem:[#allocation55_spill] sm:$0xff]  ;;  %v17503_v9 = vld [vmem:[#allocation73_spill] sm:$0xff]  ;;  %v17508_v24 = vld [vmem:[#allocation28_spill] sm:$0xff] }
 0x3fc   :  { %13303 = vmatmul.mubr.msk.f32.vlgmr.msra.gmra.mxu0 %vm369_vm2, %v5945_v12  ;;  %13326 = vmatpush3.msra.mxu1 %v17493_v34  ;;  %v13794_v50 = vpop.eup %13793  ;;  %v5785_v54 = vsel %vm369_vm2, %v15814_v43, 0.0  ;;  %v5528_v36 = vsub.f32 %v17501_v5, %v15567_v60  ;;  %v5634_v12 = vmul.f32 1.442695, %v5529_v31  ;;  %v17505_v34 = vld [vmem:[#allocation42_spill] sm:$0xff] }
 0x3fd   :  { %13311 = vmatpush3.msra.mxu0 %v17492_v25  ;;  %10180 = vrot.lane.b32.xlu0 %v17494_v57, %s14039_s27  ;;  %v15830_v16 = vpop.eup %13795  ;;  %v5949_v13 = vmul.f32 %v13794_v50, %v17499_v4  ;;  %v5531_v57 = vsub.f32 %v17506_v38, %v15582_v48  ;;  %v17509_v48 = vld [vmem:[#allocation57_spill] sm:$0xff] }
 0x3fe   :  { %13312 = vmatprep.mubr.msk.f32.mxu0 %vm14034_vm1, %v17463_v6  ;;  %13320 = vmatprep.subr.mxu0 %v17463_v6  ;;  %v13798_v51 = vpop.eup %13797  ;;  %v5782_v63 = vsel %vm369_vm2, %v15830_v16, 0.0  ;;  %v5632_v60 = vmul.f32 1.442695, %v5528_v36  ;;  %13809 = vpow2.f32 %v5634_v12  ;;  %v5530_v3 = vsub.f32 %v17509_v48, %v15579_v26  ;;  %v17515_v48 = vld [vmem:[#allocation67_spill] sm:$0xff] }
 0x3ff   :  { %5777 = vadd.xlane.f32.xlu1 %v5776_v40  ;;  %13327 = vmatprep.mubr.msk.f32.mxu1 %vm14034_vm1, %v17463_v6  ;;  %v15842_v35 = vpop.eup %13799  ;;  %v5951_v32 = vmul.f32 %v13798_v51, %v17503_v9  ;;  %v17507_v40 = vld [vmem:[#allocation41_spill] sm:$0xff] }
 0x400   :  { %13313 = vmatmul.mubr.msk.f32.vlgmr.msra.gmra.mxu0 %vm369_vm2, %v5947_v42  ;;  %13335 = vmatprep.subr.mxu1 %v17463_v6  ;;  %v5791_v42 = vsel %vm369_vm2, %v15842_v35, 0.0  ;;  %13811 = vpow2.f32 %v5632_v60  ;;  %v5636_v4 = vmul.f32 1.442695, %v5530_v3  ;;  %v5537_v3 = vsub.f32 %v17515_v48, %v15665_v62 }
 0x401   :  { %13321 = vmatpush3.msra.mxu0 %v17496_v18  ;;  %13322 = vmatprep.mubr.msk.f32.mxu0 %vm14034_vm1, %v17463_v6  ;;  %v5638_v18 = vmul.f32 1.442695, %v5531_v57 }
 0x402   :  { %10256 = vrot.lane.b32.xlu0 %v17498_v47, %s14039_s27  ;;  %13330 = vmatprep.subr.mxu0 %v17463_v6 }
 0x403   :  { %5786 = vadd.xlane.f32.xlu1 %v5785_v54  ;;  %13813 = vpow2.f32 %v5638_v18 }
 0x404   :  { %13323 = vmatmul.mubr.msk.f32.vlgmr.msra.gmra.mxu0 %vm369_vm2, %v5949_v13  ;;  %v13802_v33 = vpop.eup %13801  ;;  %v17511_v13 = vld [vmem:[#allocation60_spill] sm:$0xff]  ;;  %13815 = vpow2.f32 %v5636_v4  ;;  %v17516_v4 = vld [vmem:[#allocation63_spill] sm:$0xff] }
 0x405   :  { %13331 = vmatpush3.msra.mxu0 %v17500_v44  ;;  %13332 = vmatprep.mubr.msk.f32.mxu0 %vm14034_vm1, %v17463_v6  ;;  %v5950_v25 = vmul.f32 %v13802_v33, %v17504_v20  ;;  %v15866_v50 = vpop.eup %13803  ;;  %v5533_v51 = vsub.f32 %v17511_v13, %v15598_v55  ;;  %v15886_v44 = vpop.xlane.xlu0 %5456  ;;  %v17512_v33 = vld [vmem:[#allocation59_spill] sm:$0xff]  ;;  %v5536_v13 = vsub.f32 %v17516_v4, %v15630_v53  ;;  %v17520_v4 = vld [vmem:[#allocation68_spill] sm:$0xff] }
 0x406   :  { %10408 = vrot.lane.b32.xlu0 %v17502_v49, %s14039_s27  ;;  %13340 = vmatprep.subr.mxu0 %v17463_v6  ;;  %v5788_v31 = vsel %vm369_vm2, %v15866_v50, 0.0  ;;  %v15880_v47 = vpop.eup %13805  ;;  %v5532_v5 = vsub.f32 %v17512_v33, %v15594_v1  ;;  %v15898_v55 = vpop.xlane.xlu1 %5480 }
 0x407   :  { %5783 = vadd.xlane.f32.xlu1 %v5782_v63  ;;  %13328 = vmatmul.mubr.msk.f32.vlgmr.msra.gmra.mxu1 %vm369_vm2, %v5950_v25  ;;  %v15882_v54 = vpop.eup %13807  ;;  %v5797_v26 = vsel %vm369_vm2, %v15880_v47, 0.0  ;;  %v5642_v36 = vmul.f32 1.442695, %v5533_v51  ;;  %v5650_v51 = vmul.f32 1.442695, %v5537_v3 }
 0x408   :  { %13333 = vmatmul.mubr.msk.f32.vlgmr.msra.gmra.mxu0 %vm369_vm2, %v5951_v32  ;;  %13336 = vmatpush3.msra.mxu1 %v17507_v40  ;;  %v5794_v12 = vsel %vm369_vm2, %v15882_v54, 0.0  ;;  %v5640_v9 = vmul.f32 1.442695, %v5532_v5  ;;  %v17513_v32 = vld [vmem:[#allocation64_spill] sm:$0xff]  ;;  %v5648_v5 = vmul.f32 1.442695, %v5536_v13  ;;  %v5540_v13 = vsub.f32 %v17520_v4, %v15676_v0 }
 0x409   :  { %13341 = vmatpush3.msra.mxu0 %v17505_v34  ;;  %13342 = vmatprep.mubr.msk.f32.mxu0 %vm14034_vm1, %v17463_v6  ;;  %v15896_v63 = vpop.xlane.xlu0 %5462  ;;  %13817 = vpow2.f32 %v5642_v36  ;;  %v5535_v20 = vsub.f32 %v17513_v32, %v15637_v37  ;;  %v17514_v34 = vld [vmem:[#allocation61_spill] sm:$0xff]  ;;  %v17517_v36 = vld [vmem:[#allocation72_spill] sm:$0xff] }
 0x40a   :  { %10560 = vrot.lane.b32.xlu0 %v17508_v24, %s14039_s27  ;;  %13350 = vmatprep.subr.mxu0 %v17463_v6  ;;  %13819 = vpow2.f32 %v5640_v9  ;;  %v5534_v60 = vsub.f32 %v17514_v34, %v15617_v39  ;;  %v17525_v4 = vld [vmem:[#allocation81_spill] sm:$0xff] }
 0x40b   :  { %5792 = vadd.xlane.f32.xlu1 %v5791_v42  ;;  %13337 = vmatprep.mubr.msk.f32.mxu1 %vm14034_vm1, %v17463_v6  ;;  %v15894_v49 = vpop.eup %13809  ;;  %v5646_v38 = vmul.f32 1.442695, %v5535_v20  ;;  %v15914_v42 = vpop.xlane.xlu1 %5477  ;;  %v17518_v20 = vld [vmem:[#allocation66_spill] sm:$0xff] }
 0x40c   :  { %13345 = vmatprep.subr.mxu1 %v17463_v6  ;;  %v5803_v25 = vsel %vm369_vm2, %v15894_v49, 0.0  ;;  %v5644_v37 = vmul.f32 1.442695, %v5534_v60 }
 0x40d   :  { %v15904_v1 = vpop.eup %13811  ;;  %v15908_v57 = vpop.xlane.xlu0 %5468  ;;  %13821 = vpow2.f32 %v5646_v38 }
 0x40e   :  { %10712 = vrot.lane.b32.xlu0 %v17510_v41, %s14039_s27  ;;  %v5800_v40 = vsel %vm369_vm2, %v15904_v1, 0.0  ;;  %13823 = vpow2.f32 %v5644_v37  ;;  %v17519_v37 = vld [vmem:[#allocation77_spill] sm:$0xff] }
 0x40f   :  { %5789 = vadd.xlane.f32.xlu1 %v5788_v31  ;;  %v15924_v31 = vpop.xlane.xlu1 %5486  ;;  %v5541_v48 = vsub.f32 %v17519_v37, %v15886_v44  ;;  %v17521_v44 = vld [vmem:[#allocation87_spill] sm:$0xff] }
 0x410   :  { %v15912_v24 = vpop.eup %13813 }
 0x411   :  { %v5809_v18 = vsel %vm369_vm2, %v15912_v24, 0.0  ;;  %v15920_v39 = vpop.eup %13815  ;;  %v15922_v41 = vpop.permute.xlu0 %8660 }
 0x413   :  { %5798 = vadd.xlane.f32.xlu1 %v5797_v26  ;;  %v5806_v26 = vsel %vm369_vm2, %v15920_v39, 0.0  ;;  %v15938_v53 = vpop.xlane.xlu1 %5483 }
 0x416   :  { %v15930_v33 = vpop.eup %13817 }
 0x417   :  { %5795 = vadd.xlane.f32.xlu1 %v5794_v12  ;;  %v5539_v12 = vsub.f32 %v17517_v36, %v15709_v28  ;;  %v5815_v9 = vsel %vm369_vm2, %v15930_v33, 0.0  ;;  %v15936_v32 = vpop.eup %13819  ;;  %v15946_v28 = vpop.permute.xlu1 %9876 }
 0x418   :  { %v5812_v60 = vsel %vm369_vm2, %v15936_v32, 0.0 }
 0x419   :  { %v5654_v34 = vmul.f32 1.442695, %v5539_v12  ;;  %v5656_v12 = vmul.f32 1.442695, %v5540_v13  ;;  %v5545_v13 = vsub.f32 %v17525_v4, %v15908_v57 }
 0x41a   :  { %v15944_v38 = vpop.eup %13821 }
 0x41b   :  { %5804 = vadd.xlane.f32.xlu1 %v5803_v25  ;;  %v5538_v25 = vsub.f32 %v17518_v20, %v15661_v8  ;;  %v5821_v3 = vsel %vm369_vm2, %v15944_v38, 0.0 }
 0x41f   :  { %5801 = vadd.xlane.f32.xlu1 %v5800_v40  ;;  %v5652_v40 = vmul.f32 1.442695, %v5538_v25  ;;  %v17523_v25 = vld [vmem:[#allocation44_spill] sm:$0xff] }
 0x423   :  { %5810 = vadd.xlane.f32.xlu1 %v5809_v18  ;;  %v15952_v18 = vpop.eup %13823 }
 0x427   :  { %5807 = vadd.xlane.f32.xlu1 %v5806_v26  ;;  %v5818_v26 = vsel %vm369_vm2, %v15952_v18, 0.0 }
 0x428   :  { %v5733_v62 = vpop.xlane.xlu0 %5732 }
 0x429   :  { %13825 = vrcp.f32 %v5733_v62 }
 0x42a   :  { %13827 = vpow2.f32 %v5650_v51  ;;  %v5658_v51 = vmul.f32 1.442695, %v5541_v48 }
 0x42b   :  { %5816 = vadd.xlane.f32.xlu1 %v5815_v9  ;;  %13829 = vpow2.f32 %v5648_v5  ;;  %v15960_v5 = vpop.permute.xlu1 %10332  ;;  %v17522_v9 = vld [vmem:[#allocation79_spill] sm:$0xff] }
 0x42c   :  { %13831 = vpow2.f32 %v5654_v34  ;;  %v5543_v20 = vsub.f32 %v17522_v9, %v15896_v63 }
 0x42d   :  { %13833 = vpow2.f32 %v5652_v40  ;;  %v17524_v40 = vld [vmem:[#allocation71_spill] sm:$0xff] }
 0x42e   :  { %13835 = vpow2.f32 %v5658_v51  ;;  %v5542_v37 = vsub.f32 %v17524_v40, %v15703_v61  ;;  %v5662_v63 = vmul.f32 1.442695, %v5543_v20  ;;  %v17526_v61 = vld [vmem:[#allocation74_spill] sm:$0xff] }
 0x42f   :  { %5813 = vadd.xlane.f32.xlu1 %v5812_v60  ;;  %v15974_v60 = vpop.permute.xlu1 %10484  ;;  %13837 = vpow2.f32 %v5656_v12  ;;  %v5666_v12 = vmul.f32 1.442695, %v5545_v13 }
 0x430   :  { %13839 = vpow2.f32 %v5662_v63 }
 0x433   :  { %5822 = vadd.xlane.f32.xlu1 %v5821_v3 }
 0x436   :  { %v13826_v8 = vpop.eup %13825 }
 0x437   :  { %v15958_v62 = vpop.eup %13827  ;;  %5819 = vadd.xlane.f32.xlu1 %v5818_v26  ;;  %v5953_v36 = vmul.f32 %v13826_v8, %v17521_v44  ;;  %v5660_v8 = vmul.f32 1.442695, %v5542_v37  ;;  %v15988_v44 = vpop.permute.xlu1 %10636 }
 0x438   :  { %v5827_v0 = vsel %vm369_vm2, %v15958_v62, 0.0  ;;  %v15971_v34 = vpop.eup %13829 }
 0x439   :  { %13343 = vmatmul.mubr.msk.f32.vlgmr.msra.gmra.mxu0 %vm369_vm2, %v5953_v36  ;;  %v5824_v48 = vsel %vm369_vm2, %v15971_v34, 0.0  ;;  %v15980_v3 = vpop.eup %13831  ;;  %v5544_v36 = vsub.f32 %v17526_v61, %v15729_v21  ;;  %13841 = vpow2.f32 %v5660_v8  ;;  %v17528_v8 = vld [vmem:[#allocation80_spill] sm:$0xff]  ;;  %v17529_v61 = vld [vmem:[#allocation83_spill] sm:$0xff] }
 0x43a   :  { %13351 = vmatpush3.msra.mxu0 %v17523_v25  ;;  %13352 = vmatprep.mubr.msk.f32.mxu0 %vm14034_vm1, %v17463_v6  ;;  %v5833_v51 = vsel %vm369_vm2, %v15980_v3, 0.0  ;;  %v15986_v26 = vpop.eup %13833  ;;  %v5546_v4 = vsub.f32 %v17528_v8, %v15772_v19 }
 0x43b   :  { %5828 = vadd.xlane.f32.xlu1 %v5827_v0  ;;  %13360 = vmatprep.subr.mxu0 %v17463_v6  ;;  %v5830_v9 = vsel %vm369_vm2, %v15986_v26, 0.0  ;;  %v15994_v20 = vpop.eup %13835  ;;  %v5664_v25 = vmul.f32 1.442695, %v5544_v36  ;;  %v17527_v0 = vld [vmem:[#allocation78_spill] sm:$0xff]  ;;  %v5549_v36 = vsub.f32 %v17529_v61, %v15898_v55  ;;  %v17532_v61 = vld [vmem:[#allocation85_spill] sm:$0xff] }
 0x43c   :  { %v5547_v40 = vsub.f32 %v17527_v0, %v15758_v15  ;;  %v5839_v37 = vsel %vm369_vm2, %v15994_v20, 0.0  ;;  %v16000_v63 = vpop.eup %13837 }
 0x43d   :  { %v5836_v13 = vsel %vm369_vm2, %v16000_v63, 0.0  ;;  %v5674_v19 = vmul.f32 1.442695, %v5549_v36 }
 0x43f   :  { %5825 = vadd.xlane.f32.xlu1 %v5824_v48  ;;  %v5670_v48 = vmul.f32 1.442695, %v5547_v40  ;;  %v17530_v40 = vld [vmem:[#allocation84_spill] sm:$0xff] }
 0x443   :  { %5834 = vadd.xlane.f32.xlu1 %v5833_v51  ;;  %v16006_v51 = vpop.eup %13839 }
 0x447   :  { %5831 = vadd.xlane.f32.xlu1 %v5830_v9  ;;  %v5730_v57 = vpop.xlane.xlu1 %5729  ;;  %v5845_v9 = vsel %vm369_vm2, %v16006_v51, 0.0 }
 0x448   :  { %13843 = vrcp.f32 %v5730_v57  ;;  %v16012_v57 = vpop.eup %13841 }
 0x449   :  { %13845 = vpow2.f32 %v5666_v12  ;;  %v5668_v12 = vmul.f32 1.442695, %v5546_v4  ;;  %v5842_v55 = vsel %vm369_vm2, %v16012_v57, 0.0 }
 0x44b   :  { %5840 = vadd.xlane.f32.xlu1 %v5839_v37  ;;  %v5739_v21 = vpop.xlane.xlu1 %5738  ;;  %v5548_v37 = vsub.f32 %v17530_v40, %v15914_v42 }
 0x44c   :  { %13847 = vrcp.f32 %v5739_v21 }
 0x44d   :  { %13849 = vpow2.f32 %v5664_v25 }
 0x44f   :  { %5837 = vadd.xlane.f32.xlu1 %v5836_v13  ;;  %v5736_v15 = vpop.xlane.xlu1 %5735  ;;  %v17531_v13 = vld [vmem:[#allocation43_spill] sm:$0xff] }
 0x450   :  { %13851 = vrcp.f32 %v5736_v15  ;;  %v5672_v15 = vmul.f32 1.442695, %v5548_v37 }
 0x451   :  { %13853 = vpow2.f32 %v5670_v48 }
 0x453   :  { %5846 = vadd.xlane.f32.xlu1 %v5845_v9  ;;  %v5745_v25 = vpop.xlane.xlu1 %5744 }
 0x454   :  { %13855 = vrcp.f32 %v5745_v25  ;;  %v17533_v25 = vld [vmem:[#allocation32_spill] sm:$0xff] }
 0x455   :  { %v13844_v0 = vpop.eup %13843  ;;  %13857 = vpow2.f32 %v5668_v12 }
 0x456   :  { %v5952_v21 = vmul.f32 %v13844_v0, %v15576_v22  ;;  %v16019_v48 = vpop.eup %13845  ;;  %13859 = vpow2.f32 %v5674_v19  ;;  %v5551_v22 = vsub.f32 %v17532_v61, %v15924_v31 }
 0x457   :  { %5843 = vadd.xlane.f32.xlu1 %v5842_v55  ;;  %v5742_v8 = vpop.xlane.xlu1 %5741  ;;  %v5851_v36 = vsel %vm369_vm2, %v16019_v48, 0.0 }
 0x458   :  { %13338 = vmatmul.mubr.msk.f32.vlgmr.msra.gmra.mxu1 %vm369_vm2, %v5952_v21  ;;  %13861 = vrcp.f32 %v5742_v8  ;;  %v5678_v31 = vmul.f32 1.442695, %v5551_v22  ;;  %v17535_v8 = vld [vmem:[#allocation35_spill] sm:$0xff] }
 0x459   :  { %v13848_v4 = vpop.eup %13847  ;;  %13346 = vmatpush3.msra.mxu1 %v17531_v13  ;;  %13347 = vmatprep.mubr.msk.f32.mxu1 %vm14034_vm1, %v17463_v6 }
 0x45a   :  { %v16025_v42 = vpop.eup %13849  ;;  %v5955_v12 = vmul.f32 %v13848_v4, %v15592_v17  ;;  %13355 = vmatprep.subr.mxu1 %v17463_v6  ;;  %v17534_v17 = vld [vmem:[#allocation86_spill] sm:$0xff] }
 0x45b   :  { %5852 = vadd.xlane.f32.xlu1 %v5851_v36  ;;  %v5751_v9 = vpop.xlane.xlu1 %5750  ;;  %v5848_v0 = vsel %vm369_vm2, %v16025_v42, 0.0  ;;  %v5550_v40 = vsub.f32 %v17534_v17, %v15938_v53 }
 0x45c   :  { %13353 = vmatmul.mubr.msk.f32.vlgmr.msra.gmra.mxu0 %vm369_vm2, %v5955_v12  ;;  %13863 = vrcp.f32 %v5751_v9  ;;  %v17536_v12 = vld [vmem:[#allocation33_spill] sm:$0xff] }
 0x45d   :  { %v13852_v19 = vpop.eup %13851  ;;  %13361 = vmatpush3.msra.mxu0 %v17533_v25  ;;  %13362 = vmatprep.mubr.msk.f32.mxu0 %vm14034_vm1, %v17463_v6  ;;  %13865 = vpow2.f32 %v5672_v15  ;;  %v5676_v13 = vmul.f32 1.442695, %v5550_v40 }
 0x45e   :  { %v5954_v37 = vmul.f32 %v13852_v19, %v15605_v10  ;;  %13370 = vmatprep.subr.mxu0 %v17463_v6  ;;  %v16043_v55 = vpop.eup %13853 }
 0x45f   :  { %5849 = vadd.xlane.f32.xlu1 %v5848_v0  ;;  %v5748_v21 = vpop.xlane.xlu1 %5747  ;;  %v5857_v10 = vsel %vm369_vm2, %v16043_v55, 0.0  ;;  %v17537_v0 = vld [vmem:[#allocation17_spill] sm:$0xff] }
 0x460   :  { %13348 = vmatmul.mubr.msk.f32.vlgmr.msra.gmra.mxu1 %vm369_vm2, %v5954_v37  ;;  %13867 = vrcp.f32 %v5748_v21  ;;  %v17538_v21 = vld [vmem:[#allocation19_spill] sm:$0xff] }
 0x461   :  { %13356 = vmatpush3.msra.mxu1 %v17535_v8  ;;  %13357 = vmatprep.mubr.msk.f32.mxu1 %vm14034_vm1, %v17463_v6  ;;  %v13856_v4 = vpop.eup %13855  ;;  %13869 = vpow2.f32 %v5678_v31 }
 0x462   :  { %13365 = vmatprep.subr.mxu1 %v17463_v6  ;;  %v16052_v53 = vpop.eup %13857  ;;  %v5957_v15 = vmul.f32 %v13856_v4, %v15609_v2 }
 0x463   :  { %5858 = vadd.xlane.f32.xlu1 %v5857_v10  ;;  %v5757_v61 = vpop.xlane.xlu1 %5756  ;;  %v16055_v22 = vpop.eup %13859  ;;  %v5854_v9 = vsel %vm369_vm2, %v16052_v53, 0.0 }
 0x464   :  { %13871 = vrcp.f32 %v5757_v61  ;;  %13363 = vmatmul.mubr.msk.f32.vlgmr.msra.gmra.mxu0 %vm369_vm2, %v5957_v15  ;;  %v5863_v31 = vsel %vm369_vm2, %v16055_v22, 0.0  ;;  %v17539_v15 = vld [vmem:[#allocation36_spill] sm:$0xff] }
 0x465   :  { %v13862_v36 = vpop.eup %13861  ;;  %13873 = vpow2.f32 %v5676_v13  ;;  %13371 = vmatpush3.msra.mxu0 %v17536_v12  ;;  %13372 = vmatprep.mubr.msk.f32.mxu0 %vm14034_vm1, %v17463_v6 }
 0x466   :  { %v5956_v19 = vmul.f32 %v13862_v36, %v15634_v56  ;;  %13380 = vmatprep.subr.mxu0 %v17463_v6 }
 0x467   :  { %5855 = vadd.xlane.f32.xlu1 %v5854_v9  ;;  %v5754_v2 = vpop.xlane.xlu1 %5753 }
 0x468   :  { %13875 = vrcp.f32 %v5754_v2  ;;  %13358 = vmatmul.mubr.msk.f32.vlgmr.msra.gmra.mxu1 %vm369_vm2, %v5956_v19  ;;  %v17540_v19 = vld [vmem:[#allocation23_spill] sm:$0xff] }
 0x469   :  { %v13864_v25 = vpop.eup %13863  ;;  %13366 = vmatpush3.msra.mxu1 %v17537_v0  ;;  %13367 = vmatprep.mubr.msk.f32.mxu1 %vm14034_vm1, %v17463_v6 }
 0x46a   :  { %v16071_v17 = vpop.eup %13865  ;;  %v5959_v56 = vmul.f32 %v13864_v25, %v15651_v11  ;;  %13375 = vmatprep.subr.mxu1 %v17463_v6 }
 0x46b   :  { %5864 = vadd.xlane.f32.xlu1 %v5863_v31  ;;  %v5763_v40 = vpop.xlane.xlu1 %5762  ;;  %v5860_v8 = vsel %vm369_vm2, %v16071_v17, 0.0 }
 0x46c   :  { %13877 = vrcp.f32 %v5763_v40  ;;  %13373 = vmatmul.mubr.msk.f32.vlgmr.msra.gmra.mxu0 %vm369_vm2, %v5959_v56  ;;  %v17541_v56 = vld [vmem:[#allocation37_spill] sm:$0xff] }
 0x46d   :  { %v13868_v37 = vpop.eup %13867  ;;  %13381 = vmatpush3.msra.mxu0 %v17538_v21  ;;  %13382 = vmatprep.mubr.msk.f32.mxu0 %vm14034_vm1, %v17463_v6 }
 0x46e   :  { %v16081_v4 = vpop.eup %13869  ;;  %v5958_v11 = vmul.f32 %v13868_v37, %v15655_v59  ;;  %13390 = vmatprep.subr.mxu0 %v17463_v6 }
 0x46f   :  { %5861 = vadd.xlane.f32.xlu1 %v5860_v8  ;;  %v5760_v13 = vpop.xlane.xlu1 %5759  ;;  %v5869_v61 = vsel %vm369_vm2, %v16081_v4, 0.0 }
 0x470   :  { %13879 = vrcp.f32 %v5760_v13  ;;  %13368 = vmatmul.mubr.msk.f32.vlgmr.msra.gmra.mxu1 %vm369_vm2, %v5958_v11  ;;  %v17542_v11 = vld [vmem:[#allocation3_spill] sm:$0xff] }
 0x471   :  { %v13872_v10 = vpop.eup %13871  ;;  %13376 = vmatpush3.msra.mxu1 %v17539_v15  ;;  %13377 = vmatprep.mubr.msk.f32.mxu1 %vm14034_vm1, %v17463_v6 }
 0x472   :  { %v16091_v36 = vpop.eup %13873  ;;  %v5961_v59 = vmul.f32 %v13872_v10, %v15680_v23  ;;  %13385 = vmatprep.subr.mxu1 %v17463_v6  ;;  %v16103_v23 = vpop.permute.xlu0 %8736 }
 0x473   :  { %5870 = vadd.xlane.f32.xlu1 %v5869_v61  ;;  %v5769_v12 = vpop.xlane.xlu1 %5768  ;;  %v5866_v2 = vsel %vm369_vm2, %v16091_v36, 0.0  ;;  %v17543_v61 = vld [vmem:[#allocation5_spill] sm:$0xff] }
 0x474   :  { %13881 = vrcp.f32 %v5769_v12  ;;  %13383 = vmatmul.mubr.msk.f32.vlgmr.msra.gmra.mxu0 %vm369_vm2, %v5961_v59 }
 0x475   :  { %v13876_v9 = vpop.eup %13875  ;;  %13391 = vmatpush3.msra.mxu0 %v17540_v19  ;;  %13392 = vmatprep.mubr.msk.f32.mxu0 %vm14034_vm1, %v17463_v6  ;;  %v17544_v19 = vld [vmem:[#allocation46_spill] sm:$0xff] }
 0x476   :  { %v5960_v25 = vmul.f32 %v13876_v9, %v15695_v45  ;;  %13400 = vmatprep.subr.mxu0 %v17463_v6  ;;  %v16114_v8 = vpop.permute.xlu0 %8812 }
 0x477   :  { %5867 = vadd.xlane.f32.xlu1 %v5866_v2  ;;  %v5766_v0 = vpop.xlane.xlu1 %5765 }
 0x478   :  { %13883 = vrcp.f32 %v5766_v0  ;;  %13378 = vmatmul.mubr.msk.f32.vlgmr.msra.gmra.mxu1 %vm369_vm2, %v5960_v25 }
 0x479   :  { %v13878_v31 = vpop.eup %13877  ;;  %13386 = vmatpush3.msra.mxu1 %v17541_v56  ;;  %13387 = vmatprep.mubr.msk.f32.mxu1 %vm14034_vm1, %v17463_v6 }
 0x47a   :  { %v5963_v40 = vmul.f32 %v13878_v31, %v15707_v7  ;;  %13395 = vmatprep.subr.mxu1 %v17463_v6  ;;  %v16127_v12 = vpop.permute.xlu0 %8888 }
 0x47b   :  { %v16111_v37 = vpop.f32.mrf.mxu1  ;;  %v5775_v45 = vpop.xlane.xlu1 %5774 }
 0x47c   :  { %13393 = vmatmul.mubr.msk.f32.vlgmr.msra.gmra.mxu0 %vm369_vm2, %v5963_v40  ;;  %13885 = vrcp.f32 %v5775_v45  ;;  %v17546_v40 = vld [vmem:[#allocation45_spill] sm:$0xff] }
 0x47d   :  { %v13880_v21 = vpop.eup %13879  ;;  %13401 = vmatpush3.msra.mxu0 %v17542_v11  ;;  %v13259_v13 = vpop.f32.mrf.mxu1  ;;  %13402 = vmatprep.mubr.msk.f32.mxu0 %vm14034_vm1, %v17463_v6 }
 0x47e   :  { %v5962_v10 = vmul.f32 %v13880_v21, %v15722_v58  ;;  %13410 = vmatprep.subr.mxu0 %v17463_v6  ;;  %v16140_v31 = vpop.permute.xlu0 %8964 }
 0x47f   :  { %v5772_v7 = vpop.xlane.xlu1 %5771 }
 0x480   :  { %13388 = vmatmul.mubr.msk.f32.vlgmr.msra.gmra.mxu1 %vm369_vm2, %v5962_v10  ;;  %13887 = vrcp.f32 %v5772_v7  ;;  %v17547_v7 = vld [vmem:[#allocation48_spill] sm:$0xff] }
 0x481   :  { %v13882_v15 = vpop.eup %13881  ;;  %13396 = vmatpush3.msra.mxu1 %v17543_v61  ;;  %13397 = vmatprep.mubr.msk.f32.mxu1 %vm14034_vm1, %v17463_v6 }
 0x482   :  { %v5965_v59 = vmul.f32 %v13882_v15, %v15733_v46  ;;  %13405 = vmatprep.subr.mxu1 %v17463_v6  ;;  %v17545_v46 = vld [vmem:[#allocation26_spill] sm:$0xff]  ;;  %v16153_v15 = vpop.permute.xlu0 %9040 }
 0x484   :  { %v5781_v9 = vpop.xlane.xlu1 %5780  ;;  %13403 = vmatmul.mubr.msk.f32.vlgmr.msra.gmra.mxu0 %vm369_vm2, %v5965_v59 }
 0x485   :  { %v13884_v58 = vpop.eup %13883  ;;  %13889 = vrcp.f32 %v5781_v9  ;;  %13411 = vmatpush3.msra.mxu0 %v17544_v19  ;;  %13412 = vmatprep.mubr.msk.f32.mxu0 %vm14034_vm1, %v17463_v6  ;;  %v17548_v9 = vld [vmem:[#allocation47_spill] sm:$0xff] }
 0x486   :  { %v5964_v2 = vmul.f32 %v13884_v58, %v15748_v14  ;;  %13420 = vmatprep.subr.mxu0 %v17463_v6 }
 0x487   :  { %v16137_v25 = vpop.f32.mrf.mxu1 }
 0x488   :  { %10788 = vrot.lane.b32.xlu1 %v17545_v46, %s14039_s27  ;;  %v5778_v0 = vpop.xlane.xlu1 %5777  ;;  %13398 = vmatmul.mubr.msk.f32.vlgmr.msra.gmra.mxu1 %vm369_vm2, %v5964_v2  ;;  %v16142_v56 = vpop.f32.mrf.mxu0 }
 0x489   :  { %13891 = vrcp.f32 %v5778_v0  ;;  %13406 = vmatpush3.msra.mxu1 %v17546_v40  ;;  %13407 = vmatprep.mubr.msk.f32.mxu1 %vm14034_vm1, %v17463_v6  ;;  %v13886_v14 = vpop.eup %13885  ;;  %v13269_v45 = vpop.f32.mrf.mxu1 }
 0x48a   :  { %13415 = vmatprep.subr.mxu1 %v17463_v6  ;;  %v13264_v21 = vpop.f32.mrf.mxu0  ;;  %v5967_v11 = vmul.f32 %v13886_v14, %v15765_v27 }
 0x48c   :  { %v5787_v13 = vpop.xlane.xlu1 %5786  ;;  %13413 = vmatmul.mubr.msk.f32.vlgmr.msra.gmra.mxu0 %vm369_vm2, %v5967_v11  ;;  %v17549_v11 = vld [vmem:[#allocation49_spill] sm:$0xff] }
 0x48d   :  { %13893 = vrcp.f32 %v5787_v13  ;;  %v13888_v10 = vpop.eup %13887  ;;  %13421 = vmatpush3.msra.mxu0 %v17547_v7  ;;  %13422 = vmatprep.mubr.msk.f32.mxu0 %vm14034_vm1, %v17463_v6 }
 0x48e   :  { %v5966_v61 = vmul.f32 %v13888_v10, %v15776_v30  ;;  %13430 = vmatprep.subr.mxu0 %v17463_v6  ;;  %v16165_v30 = vpop.permute.xlu0 %9116 }
 0x490   :  { %v5784_v59 = vpop.xlane.xlu1 %5783  ;;  %13408 = vmatmul.mubr.msk.f32.vlgmr.msra.gmra.mxu1 %vm369_vm2, %v5966_v61 }
 0x491   :  { %13895 = vrcp.f32 %v5784_v59  ;;  %13416 = vmatpush3.msra.mxu1 %v17548_v9  ;;  %13417 = vmatprep.mubr.msk.f32.mxu1 %vm14034_vm1, %v17463_v6 }
 0x492   :  { %v13890_v27 = vpop.eup %13889  ;;  %13425 = vmatprep.subr.mxu1 %v17463_v6 }
 0x493   :  { %v5969_v58 = vmul.f32 %v13890_v27, %v15784_v52  ;;  %v16163_v19 = vpop.f32.mrf.mxu1 }
 0x494   :  { %v5793_v2 = vpop.xlane.xlu1 %5792  ;;  %v16167_v46 = vpop.f32.mrf.mxu0 }
 0x495   :  { %13897 = vrcp.f32 %v5793_v2  ;;  %13423 = vmatmul.mubr.msk.f32.vlgmr.msra.gmra.mxu0 %vm369_vm2, %v5969_v58  ;;  %v13279_v40 = vpop.f32.mrf.mxu1 }
 0x496   :  { %v13892_v0 = vpop.eup %13891  ;;  %13431 = vmatpush3.msra.mxu0 %v15922_v41  ;;  %13432 = vmatprep.mubr.msk.f32.mxu0 %vm14034_vm1, %v17463_v6  ;;  %v13274_v52 = vpop.f32.mrf.mxu0 }
 0x497   :  { %v5968_v14 = vmul.f32 %v13892_v0, %v15797_v29  ;;  %13440 = vmatprep.subr.mxu0 %v17463_v6  ;;  %v16179_v41 = vpop.permute.xlu0 %9192 }
 0x498   :  { %v5790_v45 = vpop.xlane.xlu1 %5789 }
 0x499   :  { %13899 = vrcp.f32 %v5790_v45  ;;  %13418 = vmatmul.mubr.msk.f32.vlgmr.msra.gmra.mxu1 %vm369_vm2, %v5968_v14 }
 0x49a   :  { %v13894_v21 = vpop.eup %13893  ;;  %13426 = vmatpush3.msra.mxu1 %v17549_v11  ;;  %13427 = vmatprep.mubr.msk.f32.mxu1 %vm14034_vm1, %v17463_v6 }
 0x49b   :  { %v5971_v13 = vmul.f32 %v13894_v21, %v15814_v43  ;;  %13435 = vmatprep.subr.mxu1 %v17463_v6  ;;  %v9269_v43 = vpop.permute.xlu0 %9268 }
 0x49c   :  { %v5799_v10 = vpop.xlane.xlu1 %5798 }
 0x49d   :  { %13901 = vrcp.f32 %v5799_v10  ;;  %13433 = vmatmul.mubr.msk.f32.vlgmr.msra.gmra.mxu0 %vm369_vm2, %v5971_v13 }
 0x49e   :  { %v13896_v29 = vpop.eup %13895  ;;  %13441 = vmatpush3.msra.mxu0 %v16114_v8  ;;  %13442 = vmatprep.mubr.msk.f32.mxu0 %vm14034_vm1, %v17463_v6 }
 0x49f   :  { %v5970_v7 = vmul.f32 %v13896_v29, %v15830_v16  ;;  %13450 = vmatprep.subr.mxu0 %v17463_v6  ;;  %v16189_v61 = vpop.f32.mrf.mxu1  ;;  %v16201_v2 = vpop.permute.xlu0 %9344 }
 0x4a0   :  { %v5796_v59 = vpop.xlane.xlu1 %5795 }
 0x4a1   :  { %13903 = vrcp.f32 %v5796_v59  ;;  %13428 = vmatmul.mubr.msk.f32.vlgmr.msra.gmra.mxu1 %vm369_vm2, %v5970_v7  ;;  %v13289_v9 = vpop.f32.mrf.mxu1 }
 0x4a2   :  { %v13898_v27 = vpop.eup %13897  ;;  %13436 = vmatpush3.msra.mxu1 %v16103_v23  ;;  %13437 = vmatprep.mubr.msk.f32.mxu1 %vm14034_vm1, %v17463_v6 }
 0x4a3   :  { %v5973_v8 = vmul.f32 %v13898_v27, %v15842_v35  ;;  %13445 = vmatprep.subr.mxu1 %v17463_v6  ;;  %v9421_v45 = vpop.permute.xlu0 %9420 }
 0x4a4   :  { %v5805_v16 = vpop.xlane.xlu1 %5804 }
 0x4a5   :  { %13905 = vrcp.f32 %v5805_v16  ;;  %13443 = vmatmul.mubr.msk.f32.vlgmr.msra.gmra.mxu0 %vm369_vm2, %v5973_v8 }
 0x4a6   :  { %v13900_v58 = vpop.eup %13899  ;;  %13451 = vmatpush3.msra.mxu0 %v16140_v31  ;;  %13452 = vmatprep.mubr.msk.f32.mxu0 %vm14034_vm1, %v17463_v6 }
 0x4a7   :  { %v5972_v23 = vmul.f32 %v13900_v58, %v15866_v50  ;;  %13460 = vmatprep.subr.mxu0 %v17463_v6  ;;  %v16225_v10 = vpop.permute.xlu0 %9496 }
 0x4a8   :  { %v5802_v0 = vpop.xlane.xlu1 %5801  ;;  %v16205_v35 = vpop.f32.mrf.mxu0 }
 0x4a9   :  { %13907 = vrcp.f32 %v5802_v0  ;;  %13438 = vmatmul.mubr.msk.f32.vlgmr.msra.gmra.mxu1 %vm369_vm2, %v5972_v23 }
 0x4aa   :  { %v13902_v40 = vpop.eup %13901  ;;  %13446 = vmatpush3.msra.mxu1 %v16127_v12  ;;  %v13284_v52 = vpop.f32.mrf.mxu0  ;;  %13447 = vmatprep.mubr.msk.f32.mxu1 %vm14034_vm1, %v17463_v6 }
 0x4ab   :  { %v16211_v31 = vpop.f32.mrf.mxu1  ;;  %v5975_v14 = vmul.f32 %v13902_v40, %v15880_v47  ;;  %13455 = vmatprep.subr.mxu1 %v17463_v6  ;;  %v9573_v16 = vpop.permute.xlu0 %9572 }
 0x4ac   :  { %v5811_v50 = vpop.xlane.xlu1 %5810 }
 0x4ad   :  { %13909 = vrcp.f32 %v5811_v50  ;;  %13453 = vmatmul.mubr.msk.f32.vlgmr.msra.gmra.mxu0 %vm369_vm2, %v5975_v14  ;;  %v13299_v21 = vpop.f32.mrf.mxu1 }
 0x4ae   :  { %v13904_v11 = vpop.eup %13903  ;;  %13461 = vmatpush3.msra.mxu0 %v16165_v30  ;;  %13462 = vmatprep.mubr.msk.f32.mxu0 %vm14034_vm1, %v17463_v6 }
 0x4af   :  { %v5974_v12 = vmul.f32 %v13904_v11, %v15882_v54  ;;  %13470 = vmatprep.subr.mxu0 %v17463_v6  ;;  %v9649_v50 = vpop.permute.xlu0 %9648 }
 0x4b0   :  { %v5808_v13 = vpop.xlane.xlu1 %5807 }
 0x4b1   :  { %13911 = vrcp.f32 %v5808_v13  ;;  %13448 = vmatmul.mubr.msk.f32.vlgmr.msra.gmra.mxu1 %vm369_vm2, %v5974_v12 }
 0x4b2   :  { %v13906_v47 = vpop.eup %13905  ;;  %13456 = vmatpush3.msra.mxu1 %v16153_v15  ;;  %13457 = vmatprep.mubr.msk.f32.mxu1 %vm14034_vm1, %v17463_v6 }
 0x4b3   :  { %v5977_v30 = vmul.f32 %v13906_v47, %v15894_v49  ;;  %13465 = vmatprep.subr.mxu1 %v17463_v6  ;;  %v16229_v29 = vpop.f32.mrf.mxu1 }
 0x4b4   :  { %v5817_v54 = vpop.xlane.xlu1 %5816 }
 0x4b5   :  { %13913 = vrcp.f32 %v5817_v54  ;;  %13463 = vmatmul.mubr.msk.f32.vlgmr.msra.gmra.mxu0 %vm369_vm2, %v5977_v30  ;;  %v13309_v59 = vpop.f32.mrf.mxu1 }
 0x4b6   :  { %v13908_v7 = vpop.eup %13907  ;;  %13471 = vmatpush3.msra.mxu0 %v9269_v43  ;;  %13472 = vmatprep.mubr.msk.f32.mxu0 %vm14034_vm1, %v17463_v6 }
 0x4b7   :  { %v5976_v15 = vmul.f32 %v13908_v7, %v15904_v1  ;;  %13480 = vmatprep.subr.mxu0 %v17463_v6 }
 0x4b8   :  { %v16235_v27 = vpop.f32.mrf.mxu0  ;;  %v5814_v49 = vpop.xlane.xlu1 %5813 }
 0x4b9   :  { %13915 = vrcp.f32 %v5814_v49  ;;  %13458 = vmatmul.mubr.msk.f32.vlgmr.msra.gmra.mxu1 %vm369_vm2, %v5976_v15 }
 0x4ba   :  { %v13294_v9 = vpop.f32.mrf.mxu0  ;;  %v13910_v8 = vpop.eup %13909  ;;  %13466 = vmatpush3.msra.mxu1 %v16179_v41  ;;  %13467 = vmatprep.mubr.msk.f32.mxu1 %vm14034_vm1, %v17463_v6 }
 0x4bb   :  { %v5979_v43 = vmul.f32 %v13910_v8, %v15912_v24  ;;  %v16243_v58 = vpop.f32.mrf.mxu1  ;;  %13475 = vmatprep.subr.mxu1 %v17463_v6 }
 0x4bc   :  { %v16245_v1 = vpop.f32.mrf.mxu0  ;;  %v5823_v23 = vpop.xlane.xlu1 %5822 }
 0x4bd   :  { %13917 = vrcp.f32 %v5823_v23  ;;  %13473 = vmatmul.mubr.msk.f32.vlgmr.msra.gmra.mxu0 %vm369_vm2, %v5979_v43  ;;  %v13319_v40 = vpop.f32.mrf.mxu1 }
 0x4be   :  { %v13304_v0 = vpop.f32.mrf.mxu0  ;;  %v13912_v52 = vpop.eup %13911  ;;  %13481 = vmatpush3.msra.mxu0 %v9421_v45  ;;  %13482 = vmatprep.mubr.msk.f32.mxu0 %vm14034_vm1, %v17463_v6 }
 0x4bf   :  { %v5978_v41 = vmul.f32 %v13912_v52, %v15920_v39  ;;  %13490 = vmatprep.subr.mxu0 %v17463_v6 }
 0x4c0   :  { %v16252_v24 = vpop.f32.mrf.mxu0  ;;  %v5820_v14 = vpop.xlane.xlu1 %5819 }
 0x4c1   :  { %13919 = vrcp.f32 %v5820_v14  ;;  %13468 = vmatmul.mubr.msk.f32.vlgmr.msra.gmra.mxu1 %vm369_vm2, %v5978_v41 }
 0x4c2   :  { %v13314_v21 = vpop.f32.mrf.mxu0  ;;  %v13914_v11 = vpop.eup %13913  ;;  %13476 = vmatpush3.msra.mxu1 %v16201_v2  ;;  %13477 = vmatprep.mubr.msk.f32.mxu1 %vm14034_vm1, %v17463_v6 }
 0x4c3   :  { %v5981_v45 = vmul.f32 %v13914_v11, %v15930_v33  ;;  %13485 = vmatprep.subr.mxu1 %v17463_v6  ;;  %v9725_v2 = vpop.permute.xlu0 %9724 }
 0x4c4   :  { %v16260_v12 = vpop.f32.mrf.mxu0  ;;  %v5829_v39 = vpop.xlane.xlu1 %5828 }
 0x4c5   :  { %13921 = vrcp.f32 %v5829_v39  ;;  %13483 = vmatmul.mubr.msk.f32.vlgmr.msra.gmra.mxu0 %vm369_vm2, %v5981_v45 }
 0x4c6   :  { %v13324_v13 = vpop.f32.mrf.mxu0  ;;  %v13916_v47 = vpop.eup %13915  ;;  %13491 = vmatpush3.msra.mxu0 %v9573_v16  ;;  %13492 = vmatprep.mubr.msk.f32.mxu0 %vm14034_vm1, %v17463_v6 }
 0x4c7   :  { %v5980_v30 = vmul.f32 %v13916_v47, %v15936_v32  ;;  %13500 = vmatprep.subr.mxu0 %v17463_v6  ;;  %v16270_v33 = vpop.f32.mrf.mxu1  ;;  %v9801_v8 = vpop.permute.xlu0 %9800 }
 0x4c8   :  { %v16267_v54 = vpop.f32.mrf.mxu0  ;;  %v5826_v7 = vpop.xlane.xlu1 %5825 }
 0x4c9   :  { %13923 = vrcp.f32 %v5826_v7  ;;  %13478 = vmatmul.mubr.msk.f32.vlgmr.msra.gmra.mxu1 %vm369_vm2, %v5980_v30  ;;  %v13329_v49 = vpop.f32.mrf.mxu1 }
 0x4ca   :  { %v13334_v59 = vpop.f32.mrf.mxu0  ;;  %v13918_v15 = vpop.eup %13917  ;;  %13486 = vmatpush3.msra.mxu1 %v16225_v10  ;;  %13487 = vmatprep.mubr.msk.f32.mxu1 %vm14034_vm1, %v17463_v6 }
 0x4cb   :  { %v5983_v32 = vmul.f32 %v13918_v15, %v15944_v38  ;;  %13495 = vmatprep.subr.mxu1 %v17463_v6  ;;  %v9953_v23 = vpop.permute.xlu0 %9952 }
 0x4cc   :  { %v5835_v9 = vpop.xlane.xlu1 %5834 }
 0x4cd   :  { %13925 = vrcp.f32 %v5835_v9  ;;  %13493 = vmatmul.mubr.msk.f32.vlgmr.msra.gmra.mxu0 %vm369_vm2, %v5983_v32 }
 0x4ce   :  { %v13920_v16 = vpop.eup %13919  ;;  %13501 = vmatpush3.msra.mxu0 %v9725_v2  ;;  %13502 = vmatprep.mubr.msk.f32.mxu0 %vm14034_vm1, %v17463_v6 }
 0x4cf   :  { %v5982_v10 = vmul.f32 %v13920_v16, %v15952_v18  ;;  %13510 = vmatprep.subr.mxu0 %v17463_v6  ;;  %v10029_v14 = vpop.permute.xlu0 %10028 }
 0x4d0   :  { %v5832_v43 = vpop.xlane.xlu1 %5831 }
 0x4d1   :  { %13927 = vrcp.f32 %v5832_v43  ;;  %13488 = vmatmul.mubr.msk.f32.vlgmr.msra.gmra.mxu1 %vm369_vm2, %v5982_v10 }
 0x4d2   :  { %v13922_v38 = vpop.eup %13921  ;;  %13496 = vmatpush3.msra.mxu1 %v9649_v50  ;;  %13497 = vmatprep.mubr.msk.f32.mxu1 %vm14034_vm1, %v17463_v6 }
 0x4d3   :  { %v5985_v0 = vmul.f32 %v13922_v38, %v15958_v62  ;;  %13505 = vmatprep.subr.mxu1 %v17463_v6  ;;  %v10105_v21 = vpop.permute.xlu0 %10104 }
 0x4d4   :  { %v5841_v40 = vpop.xlane.xlu1 %5840 }
 0x4d5   :  { %13929 = vrcp.f32 %v5841_v40  ;;  %13503 = vmatmul.mubr.msk.f32.vlgmr.msra.gmra.mxu0 %vm369_vm2, %v5985_v0 }
 0x4d6   :  { %v13924_v18 = vpop.eup %13923  ;;  %13511 = vmatpush3.msra.mxu0 %v15946_v28  ;;  %13512 = vmatprep.mubr.msk.f32.mxu0 %vm14034_vm1, %v17463_v6 }
 0x4d7   :  { %v5984_v52 = vmul.f32 %v13924_v18, %v15971_v34  ;;  %13520 = vmatprep.subr.mxu0 %v17463_v6  ;;  %v10181_v47 = vpop.permute.xlu0 %10180 }
 0x4d8   :  { %v5838_v41 = vpop.xlane.xlu1 %5837 }
 0x4d9   :  { %13931 = vrcp.f32 %v5838_v41  ;;  %13498 = vmatmul.mubr.msk.f32.vlgmr.msra.gmra.mxu1 %vm369_vm2, %v5984_v52 }
 0x4da   :  { %v13926_v62 = vpop.eup %13925  ;;  %13506 = vmatpush3.msra.mxu1 %v9801_v8  ;;  %13507 = vmatprep.mubr.msk.f32.mxu1 %vm14034_vm1, %v17463_v6 }
 0x4db   :  { %v5987_v50 = vmul.f32 %v13926_v62, %v15980_v3  ;;  %13515 = vmatprep.subr.mxu1 %v17463_v6  ;;  %v10257_v32 = vpop.permute.xlu0 %10256 }
 0x4dc   :  { %v5847_v28 = vpop.xlane.xlu1 %5846 }
 0x4dd   :  { %13933 = vrcp.f32 %v5847_v28  ;;  %13513 = vmatmul.mubr.msk.f32.vlgmr.msra.gmra.mxu0 %vm369_vm2, %v5987_v50 }
 0x4de   :  { %v13928_v34 = vpop.eup %13927  ;;  %13521 = vmatpush3.msra.mxu0 %v10029_v14  ;;  %13522 = vmatprep.mubr.msk.f32.mxu0 %vm14034_vm1, %v17463_v6 }
 0x4df   :  { %v5986_v11 = vmul.f32 %v13928_v34, %v15986_v26  ;;  %13530 = vmatprep.subr.mxu0 %v17463_v6  ;;  %v10409_v43 = vpop.permute.xlu0 %10408 }
 0x4e0   :  { %v5844_v45 = vpop.xlane.xlu1 %5843 }
 0x4e1   :  { %13935 = vrcp.f32 %v5844_v45  ;;  %13508 = vmatmul.mubr.msk.f32.vlgmr.msra.gmra.mxu1 %vm369_vm2, %v5986_v11 }
 0x4e2   :  { %v13930_v3 = vpop.eup %13929  ;;  %13516 = vmatpush3.msra.mxu1 %v9953_v23  ;;  %13517 = vmatprep.mubr.msk.f32.mxu1 %vm14034_vm1, %v17463_v6 }
 0x4e3   :  { %v5989_v39 = vmul.f32 %v13930_v3, %v15994_v20  ;;  %13525 = vmatprep.subr.mxu1 %v17463_v6  ;;  %v10561_v18 = vpop.permute.xlu0 %10560 }
 0x4e4   :  { %v5853_v13 = vpop.xlane.xlu1 %5852 }
 0x4e5   :  { %13937 = vrcp.f32 %v5853_v13  ;;  %13523 = vmatmul.mubr.msk.f32.vlgmr.msra.gmra.mxu0 %vm369_vm2, %v5989_v39 }
 0x4e6   :  { %v13932_v26 = vpop.eup %13931  ;;  %13531 = vmatpush3.msra.mxu0 %v10181_v47  ;;  %13532 = vmatprep.mubr.msk.f32.mxu0 %vm14034_vm1, %v17463_v6 }
 0x4e7   :  { %v5988_v2 = vmul.f32 %v13932_v26, %v16000_v63  ;;  %13540 = vmatprep.subr.mxu0 %v17463_v6  ;;  %v10713_v14 = vpop.permute.xlu0 %10712 }
 0x4e8   :  { %v5850_v30 = vpop.xlane.xlu1 %5849 }
 0x4e9   :  { %13939 = vrcp.f32 %v5850_v30  ;;  %13518 = vmatmul.mubr.msk.f32.vlgmr.msra.gmra.mxu1 %vm369_vm2, %v5988_v2 }
 0x4ea   :  { %v13934_v20 = vpop.eup %13933  ;;  %13526 = vmatpush3.msra.mxu1 %v10105_v21  ;;  %13527 = vmatprep.mubr.msk.f32.mxu1 %vm14034_vm1, %v17463_v6 }
 0x4eb   :  { %v5991_v7 = vmul.f32 %v13934_v20, %v16006_v51  ;;  %13535 = vmatprep.subr.mxu1 %v17463_v6 }
 0x4ec   :  { %v5859_v59 = vpop.xlane.xlu1 %5858 }
 0x4ed   :  { %13941 = vrcp.f32 %v5859_v59  ;;  %13533 = vmatmul.mubr.msk.f32.vlgmr.msra.gmra.mxu0 %vm369_vm2, %v5991_v7 }
 0x4ee   :  { %v13936_v63 = vpop.eup %13935  ;;  %13541 = vmatpush3.msra.mxu0 %v15960_v5  ;;  %13542 = vmatprep.mubr.msk.f32.mxu0 %vm14034_vm1, %v17463_v6 }
 0x4ef   :  { %v5990_v15 = vmul.f32 %v13936_v63, %v16012_v57  ;;  %13550 = vmatprep.subr.mxu0 %v17463_v6 }
 0x4f0   :  { %v5856_v49 = vpop.xlane.xlu1 %5855 }
 0x4f1   :  { %13943 = vrcp.f32 %v5856_v49  ;;  %13528 = vmatmul.mubr.msk.f32.vlgmr.msra.gmra.mxu1 %vm369_vm2, %v5990_v15 }
 0x4f2   :  { %v13938_v51 = vpop.eup %13937  ;;  %13536 = vmatpush3.msra.mxu1 %v10257_v32  ;;  %13537 = vmatprep.mubr.msk.f32.mxu1 %vm14034_vm1, %v17463_v6 }
 0x4f3   :  { %v5993_v9 = vmul.f32 %v13938_v51, %v16019_v48  ;;  %13545 = vmatprep.subr.mxu1 %v17463_v6 }
 0x4f4   :  { %v5865_v5 = vpop.xlane.xlu1 %5864 }
 0x4f5   :  { %13945 = vrcp.f32 %v5865_v5  ;;  %13543 = vmatmul.mubr.msk.f32.vlgmr.msra.gmra.mxu0 %vm369_vm2, %v5993_v9 }
 0x4f6   :  { %v13940_v57 = vpop.eup %13939  ;;  %13551 = vmatpush3.msra.mxu0 %v15974_v60  ;;  %13552 = vmatprep.mubr.msk.f32.mxu0 %vm14034_vm1, %v17463_v6 }
 0x4f7   :  { %v5992_v8 = vmul.f32 %v13940_v57, %v16025_v42  ;;  %13560 = vmatprep.subr.mxu0 %v17463_v6 }
 0x4f8   :  { %v5862_v16 = vpop.xlane.xlu1 %5861 }
 0x4f9   :  { %v7364_v10 = vpop.f32.mrf.mxu0  ;;  %13947 = vrcp.f32 %v5862_v16  ;;  %13538 = vmatmul.mubr.msk.f32.vlgmr.msra.gmra.mxu1 %vm369_vm2, %v5992_v8 }
 0x4fa   :  { %10882 = vrot.lane.b32.xlu1 %v7364_v10, %s14040_s28  ;;  %v13942_v48 = vpop.eup %13941  ;;  %13546 = vmatpush3.msra.mxu1 %v10409_v43 }
 0x4fb   :  { %v13344_v38 = vpop.f32.mrf.mxu0  ;;  %13547 = vmatprep.mubr.msk.f32.mxu1 %vm14034_vm1, %v17463_v6  ;;  %v5995_v60 = vmul.f32 %v13942_v48, %v16043_v55  ;;  %13555 = vmatprep.subr.mxu1 %v17463_v6 }
 0x4fc   :  { %v5871_v42 = vpop.xlane.xlu1 %5870 }
 0x4fd   :  { %13949 = vrcp.f32 %v5871_v42  ;;  %13553 = vmatmul.mubr.msk.f32.vlgmr.msra.gmra.mxu0 %vm369_vm2, %v5995_v60 }
 0x4fe   :  { %v13944_v23 = vpop.eup %13943  ;;  %13561 = vmatpush3.msra.mxu0 %v15988_v44  ;;  %13562 = vmatprep.mubr.msk.f32.mxu0 %vm14034_vm1, %v17463_v6 }
 0x4ff   :  { %v5994_v0 = vmul.f32 %v13944_v23, %v16052_v53  ;;  %13570 = vmatprep.subr.mxu0 %v17463_v6 }
 0x500   :  { %v5868_v40 = vpop.xlane.xlu1 %5867 }
 0x501   :  { %13951 = vrcp.f32 %v5868_v40  ;;  %13548 = vmatmul.mubr.msk.f32.vlgmr.msra.gmra.mxu1 %vm369_vm2, %v5994_v0 }
 0x502   :  { %v13946_v55 = vpop.eup %13945  ;;  %13556 = vmatpush3.msra.mxu1 %v10561_v18  ;;  %13557 = vmatprep.mubr.msk.f32.mxu1 %vm14034_vm1, %v17463_v6 }
 0x503   :  { %v5997_v52 = vmul.f32 %v13946_v55, %v16055_v22  ;;  %13565 = vmatprep.subr.mxu1 %v17463_v6 }
 0x504   :  { %v10789_v44 = vpop.permute.xlu1 %10788 }
 0x505   :  { %13563 = vmatmul.mubr.msk.f32.vlgmr.msra.gmra.mxu0 %vm369_vm2, %v5997_v52 }
 0x506   :  { %v13948_v53 = vpop.eup %13947  ;;  %13571 = vmatpush3.msra.mxu0 %v10789_v44  ;;  %13572 = vmatprep.mubr.msk.f32.mxu0 %vm14034_vm1, %v17463_v6 }
 0x507   :  { %v5996_v41 = vmul.f32 %v13948_v53, %v16071_v17 }
 0x509   :  { %13558 = vmatmul.mubr.msk.f32.vlgmr.msra.gmra.mxu1 %vm369_vm2, %v5996_v41 }
 0x50a   :  { %v13950_v62 = vpop.eup %13949  ;;  %13566 = vmatpush3.msra.mxu1 %v10713_v14  ;;  %13567 = vmatprep.mubr.msk.f32.mxu1 %vm14034_vm1, %v17463_v6 }
 0x50b   :  { %v5999_v22 = vmul.f32 %v13950_v62, %v16081_v4 }
 0x50d   :  { %13573 = vmatmul.mubr.msk.f32.vlgmr.msra.gmra.mxu0 %vm369_vm2, %v5999_v22 }
 0x50e   :  { %v13952_v50 = vpop.eup %13951 }
 0x50f   :  { %v5998_v28 = vmul.f32 %v13952_v50, %v16091_v36 }
 0x511   :  { %13568 = vmatmul.mubr.msk.f32.vlgmr.msra.gmra.mxu1 %vm369_vm2, %v5998_v28 }
 0x518   :  { %v7288_v34 = vpop.f32.mrf.mxu1 }
 0x519   :  { %10880 = vrot.lane.b32.xlu0 %v7288_v34, %s14040_s28 }
 0x51a   :  { %v13339_v17 = vpop.f32.mrf.mxu1 }
 0x51c   :  { %v7516_v21 = vpop.f32.mrf.mxu0 }
 0x51d   :  { %10886 = vrot.lane.b32.xlu1 %v7516_v21, %s14040_s28 }
 0x51e   :  { %v13354_v11 = vpop.f32.mrf.mxu0 }
 0x520   :  { %v7440_v45 = vpop.f32.mrf.mxu1 }
 0x521   :  { %10884 = vrot.lane.b32.xlu0 %v7440_v45, %s14040_s28 }
 0x522   :  { %v13349_v6 = vpop.f32.mrf.mxu1 }
 0x524   :  { %v7668_v4 = vpop.f32.mrf.mxu0 }
 0x525   :  { %10890 = vrot.lane.b32.xlu1 %v7668_v4, %s14040_s28 }
 0x526   :  { %v13364_v3 = vpop.f32.mrf.mxu0 }
 0x527   :  { %v11109_v3 = vld [vmem:[%s17269_s2 + $0x18] sm:$0xff] }
 0x528   :  { %v7592_v39 = vpop.f32.mrf.mxu1  ;;  %13575 = vmatprep.subr.mxu0 %v11109_v3  ;;  %13679 = vmatprep.subr.mxu1 %v11109_v3 }
 0x529   :  { %10888 = vrot.lane.b32.xlu0 %v7592_v39, %s14040_s28  ;;  %13576 = vmatpush3.msra.mxu0 %v11109_v3 }
 0x52a   :  { %v13359_v36 = vpop.f32.mrf.mxu1  ;;  %13683 = vmatpush3.msra.mxu1 %v11109_v3 }
 0x52c   :  { %v7820_v13 = vpop.f32.mrf.mxu0 }
 0x52d   :  { %10894 = vrot.lane.b32.xlu1 %v7820_v13, %s14040_s28  ;;  %v11108_v13 = vld [vmem:[%s17269_s2 + $0x10] sm:$0xff] }
 0x52e   :  { %v13374_v47 = vpop.f32.mrf.mxu0  ;;  %13577 = vmatprep.subr.mxu0 %v11108_v13  ;;  %13680 = vmatprep.subr.mxu1 %v11108_v13 }
 0x52f   :  { %v11107_v47 = vld [vmem:[%s17269_s2 + $0x8] sm:$0xff]  ;;  %13578 = vmatpush3.msra.mxu0 %v11108_v13  ;;  %13684 = vmatpush3.msra.mxu1 %v11108_v13 }
 0x530   :  { %v7744_v26 = vpop.f32.mrf.mxu1  ;;  %13579 = vmatprep.subr.mxu0 %v11107_v47  ;;  %13681 = vmatprep.subr.mxu1 %v11107_v47 }
 0x531   :  { %10892 = vrot.lane.b32.xlu0 %v7744_v26, %s14040_s28  ;;  %13580 = vmatpush3.msra.mxu0 %v11107_v47 }
 0x532   :  { %v13369_v2 = vpop.f32.mrf.mxu1  ;;  %13685 = vmatpush3.msra.mxu1 %v11107_v47 }
 0x534   :  { %v7972_v30 = vpop.f32.mrf.mxu0 }
 0x535   :  { %10898 = vrot.lane.b32.xlu1 %v7972_v30, %s14040_s28  ;;  %v11106_v30 = vld [vmem:[%s17269_s2] sm:$0xff] }
 0x536   :  { %v13384_v20 = vpop.f32.mrf.mxu0  ;;  %13581 = vmatprep.subr.mxu0 %v11106_v30  ;;  %13682 = vmatprep.subr.mxu1 %v11106_v30 }
 0x537   :  { %13582 = vmatpush3.msra.mxu0 %v11106_v30  ;;  %13686 = vmatpush3.msra.mxu1 %v11106_v30 }
 0x538   :  { %v7896_v7 = vpop.f32.mrf.mxu1 }
 0x539   :  { %10896 = vrot.lane.b32.xlu0 %v7896_v7, %s14040_s28 }
 0x53a   :  { %v13379_v59 = vpop.f32.mrf.mxu1 }
 0x53c   :  { %v8124_v63 = vpop.f32.mrf.mxu0 }
 0x53d   :  { %10902 = vrot.lane.b32.xlu1 %v8124_v63, %s14040_s28 }
 0x53e   :  { %v13394_v15 = vpop.f32.mrf.mxu0 }
 0x540   :  { %v8048_v49 = vpop.f32.mrf.mxu1 }
 0x541   :  { %10900 = vrot.lane.b32.xlu0 %v8048_v49, %s14040_s28 }
 0x542   :  { %v13389_v32 = vpop.f32.mrf.mxu1 }
 0x544   :  { %v8276_v51 = vpop.f32.mrf.mxu0 }
 0x545   :  { %10906 = vrot.lane.b32.xlu1 %v8276_v51, %s14040_s28 }
 0x546   :  { %v13404_v9 = vpop.f32.mrf.mxu0 }
 0x548   :  { %v8200_v5 = vpop.f32.mrf.mxu1 }
 0x549   :  { %10904 = vrot.lane.b32.xlu0 %v8200_v5, %s14040_s28 }
 0x54a   :  { %v13399_v57 = vpop.f32.mrf.mxu1 }
 0x54c   :  { %v8428_v8 = vpop.f32.mrf.mxu0 }
 0x54d   :  { %10910 = vrot.lane.b32.xlu1 %v8428_v8, %s14040_s28 }
 0x54e   :  { %v13414_v16 = vpop.f32.mrf.mxu0 }
 0x550   :  { %v8352_v10 = vpop.f32.mrf.mxu1 }
 0x551   :  { %10908 = vrot.lane.b32.xlu0 %v8352_v10, %s14040_s28 }
 0x552   :  { %v13409_v43 = vpop.f32.mrf.mxu1 }
 0x555   :  { %v8580_v48 = vpop.f32.mrf.mxu0 }
 0x556   :  { %10946 = vrot.lane.b32.xlu1 %v8580_v48, %s14041_s29 }
 0x557   :  { %v13424_v38 = vpop.f32.mrf.mxu0 }
 0x559   :  { %v8504_v60 = vpop.f32.mrf.mxu1 }
 0x55a   :  { %10944 = vrot.lane.b32.xlu0 %v8504_v60, %s14041_s29 }
 0x55b   :  { %v13419_v42 = vpop.f32.mrf.mxu1 }
 0x55d   :  { %v8732_v23 = vpop.f32.mrf.mxu0 }
 0x55e   :  { %10950 = vrot.lane.b32.xlu1 %v8732_v23, %s14041_s29 }
 0x55f   :  { %v13434_v0 = vpop.f32.mrf.mxu0 }
 0x561   :  { %v8656_v40 = vpop.f32.mrf.mxu1 }
 0x562   :  { %10948 = vrot.lane.b32.xlu0 %v8656_v40, %s14041_s29 }
 0x563   :  { %v13429_v18 = vpop.f32.mrf.mxu1 }
 0x565   :  { %v8884_v55 = vpop.f32.mrf.mxu0 }
 0x566   :  { %10954 = vrot.lane.b32.xlu1 %v8884_v55, %s14041_s29 }
 0x567   :  { %v13444_v52 = vpop.f32.mrf.mxu0 }
 0x569   :  { %v8808_v44 = vpop.f32.mrf.mxu1 }
 0x56a   :  { %10952 = vrot.lane.b32.xlu0 %v8808_v44, %s14041_s29 }
 0x56b   :  { %v13439_v53 = vpop.f32.mrf.mxu1 }
 0x56d   :  { %v9036_v41 = vpop.f32.mrf.mxu0 }
 0x56e   :  { %10958 = vrot.lane.b32.xlu1 %v9036_v41, %s14041_s29 }
 0x56f   :  { %v13454_v14 = vpop.f32.mrf.mxu0 }
 0x571   :  { %v8960_v62 = vpop.f32.mrf.mxu1 }
 0x572   :  { %10956 = vrot.lane.b32.xlu0 %v8960_v62, %s14041_s29 }
 0x573   :  { %v13449_v22 = vpop.f32.mrf.mxu1 }
 0x574   :  { %v10883_v22 = vpop.permute.xlu1 %10882 }
 0x575   :  { %v9188_v50 = vpop.f32.mrf.mxu0 }
 0x576   :  { %10962 = vrot.lane.b32.xlu1 %v9188_v50, %s14041_s29 }
 0x577   :  { %v13464_v28 = vpop.f32.mrf.mxu0 }
 0x579   :  { %v9112_v34 = vpop.f32.mrf.mxu1 }
 0x57a   :  { %10960 = vrot.lane.b32.xlu0 %v9112_v34, %s14041_s29 }
 0x57b   :  { %v13459_v17 = vpop.f32.mrf.mxu1 }
 0x57d   :  { %v9340_v21 = vpop.f32.mrf.mxu0 }
 0x57e   :  { %10966 = vrot.lane.b32.xlu1 %v9340_v21, %s14041_s29 }
 0x57f   :  { %v13474_v11 = vpop.f32.mrf.mxu0 }
 0x581   :  { %v9264_v45 = vpop.f32.mrf.mxu1 }
 0x582   :  { %10964 = vrot.lane.b32.xlu0 %v9264_v45, %s14041_s29 }
 0x583   :  { %v13469_v6 = vpop.f32.mrf.mxu1 }
 0x585   :  { %v9492_v4 = vpop.f32.mrf.mxu0 }
 0x586   :  { %10970 = vrot.lane.b32.xlu1 %v9492_v4, %s14041_s29 }
 0x587   :  { %v13484_v39 = vpop.f32.mrf.mxu0 }
 0x589   :  { %v9416_v36 = vpop.f32.mrf.mxu1 }
 0x58a   :  { %10968 = vrot.lane.b32.xlu0 %v9416_v36, %s14041_s29 }
 0x58b   :  { %v13479_v26 = vpop.f32.mrf.mxu1  ;;  %v10881_v28 = vpop.permute.xlu0 %10880 }
 0x58d   :  { %v9644_v2 = vpop.f32.mrf.mxu0 }
 0x58e   :  { %10974 = vrot.lane.b32.xlu1 %v9644_v2, %s14041_s29 }
 0x58f   :  { %v13494_v20 = vpop.f32.mrf.mxu0  ;;  %v10887_v17 = vpop.permute.xlu1 %10886 }
 0x591   :  { %v9568_v7 = vpop.f32.mrf.mxu1 }
 0x592   :  { %10972 = vrot.lane.b32.xlu0 %v9568_v7, %s14041_s29 }
 0x593   :  { %v13489_v59 = vpop.f32.mrf.mxu1  ;;  %v10885_v11 = vpop.permute.xlu0 %10884 }
 0x595   :  { %v9796_v63 = vpop.f32.mrf.mxu0 }
 0x596   :  { %11010 = vrot.lane.b32.xlu1 %v9796_v63, %s14042_s19 }
 0x597   :  { %v13504_v15 = vpop.f32.mrf.mxu0  ;;  %v10891_v6 = vpop.permute.xlu1 %10890 }
 0x599   :  { %v9720_v49 = vpop.f32.mrf.mxu1 }
 0x59a   :  { %11008 = vrot.lane.b32.xlu0 %v9720_v49, %s14042_s19 }
 0x59b   :  { %v13499_v32 = vpop.f32.mrf.mxu1  ;;  %v10889_v3 = vpop.permute.xlu0 %10888 }
 0x59d   :  { %v9948_v51 = vpop.f32.mrf.mxu0 }
 0x59e   :  { %11014 = vrot.lane.b32.xlu1 %v9948_v51, %s14042_s19 }
 0x59f   :  { %v13514_v9 = vpop.f32.mrf.mxu0  ;;  %v10895_v39 = vpop.permute.xlu1 %10894 }
 0x5a1   :  { %v9872_v5 = vpop.f32.mrf.mxu1 }
 0x5a2   :  { %11012 = vrot.lane.b32.xlu0 %v9872_v5, %s14042_s19 }
 0x5a3   :  { %v13509_v57 = vpop.f32.mrf.mxu1  ;;  %v10893_v36 = vpop.permute.xlu0 %10892 }
 0x5a5   :  { %v10100_v8 = vpop.f32.mrf.mxu0 }
 0x5a6   :  { %11018 = vrot.lane.b32.xlu1 %v10100_v8, %s14042_s19 }
 0x5a7   :  { %v13524_v16 = vpop.f32.mrf.mxu0  ;;  %v16423_v13 = vpop.permute.xlu1 %10898 }
 0x5a9   :  { %v10024_v10 = vpop.f32.mrf.mxu1 }
 0x5aa   :  { %11016 = vrot.lane.b32.xlu0 %v10024_v10, %s14042_s19 }
 0x5ab   :  { %v13519_v43 = vpop.f32.mrf.mxu1  ;;  %v16425_v47 = vpop.permute.xlu0 %10896 }
 0x5ad   :  { %v10252_v48 = vpop.f32.mrf.mxu0 }
 0x5ae   :  { %11022 = vrot.lane.b32.xlu1 %v10252_v48, %s14042_s19 }
 0x5af   :  { %v13534_v38 = vpop.f32.mrf.mxu0  ;;  %v16427_v26 = vpop.permute.xlu1 %10902 }
 0x5b1   :  { %v10176_v60 = vpop.f32.mrf.mxu1 }
 0x5b2   :  { %11020 = vrot.lane.b32.xlu0 %v10176_v60, %s14042_s19 }
 0x5b3   :  { %v13529_v42 = vpop.f32.mrf.mxu1  ;;  %v16429_v2 = vpop.permute.xlu0 %10900 }
 0x5b5   :  { %v10404_v23 = vpop.f32.mrf.mxu0 }
 0x5b6   :  { %11026 = vrot.lane.b32.xlu1 %v10404_v23, %s14042_s19  ;;  %v11056_v23 = vsel %vm369_vm2, %v16111_v37, %v10881_v28  ;;  %v11058_v37 = vsel %vm369_vm2, %v16137_v25, %v10885_v11  ;;  %v11060_v25 = vsel %vm369_vm2, %v16163_v19, %v10889_v3  ;;  %v11062_v19 = vsel %vm369_vm2, %v16189_v61, %v10893_v36 }
 0x5b7   :  { %v13544_v0 = vpop.f32.mrf.mxu0  ;;  %v16431_v30 = vpop.permute.xlu1 %10906  ;;  %v11064_v61 = vsel %vm369_vm2, %v16211_v31, %v16425_v47  ;;  %v11066_v31 = vsel %vm369_vm2, %v16229_v29, %v16429_v2 }
 0x5b9   :  { %v10328_v40 = vpop.f32.mrf.mxu1 }
 0x5ba   :  { %11024 = vrot.lane.b32.xlu0 %v10328_v40, %s14042_s19  ;;  %v11057_v40 = vsel %vm369_vm2, %v16142_v56, %v10883_v22  ;;  %v11059_v56 = vsel %vm369_vm2, %v16167_v46, %v10887_v17  ;;  %v11061_v46 = vsel %vm369_vm2, %v16205_v35, %v10891_v6  ;;  %v11063_v35 = vsel %vm369_vm2, %v16235_v27, %v10895_v39 }
 0x5bb   :  { %v13539_v18 = vpop.f32.mrf.mxu1  ;;  %v16433_v20 = vpop.permute.xlu0 %10904  ;;  %v11065_v27 = vsel %vm369_vm2, %v16245_v1, %v16423_v13  ;;  %v11067_v1 = vsel %vm369_vm2, %v16252_v24, %v16427_v26  ;;  %v11069_v24 = vsel %vm369_vm2, %v16260_v12, %v16431_v30 }
 0x5bc   :  { %v11068_v29 = vsel %vm369_vm2, %v16243_v58, %v16433_v20 }
 0x5bd   :  { %v10556_v55 = vpop.f32.mrf.mxu0 }
 0x5be   :  { %11030 = vrot.lane.b32.xlu1 %v10556_v55, %s14042_s19 }
 0x5bf   :  { %v13554_v52 = vpop.f32.mrf.mxu0  ;;  %v16435_v7 = vpop.permute.xlu1 %10910 }
 0x5c0   :  { %v11071_v30 = vsel %vm369_vm2, %v16267_v54, %v16435_v7 }
 0x5c1   :  { %v10480_v44 = vpop.f32.mrf.mxu1 }
 0x5c2   :  { %11028 = vrot.lane.b32.xlu0 %v10480_v44, %s14042_s19 }
 0x5c3   :  { %v13549_v53 = vpop.f32.mrf.mxu1  ;;  %v16437_v59 = vpop.permute.xlu0 %10908 }
 0x5c4   :  { %v11070_v58 = vsel %vm369_vm2, %v16270_v33, %v16437_v59  ;;  %v16545_v33 = vld [vmem:[%s17270_s3] ss:$0 sm:$0xff] }
 0x5c5   :  { %v10708_v41 = vpop.f32.mrf.mxu0 }
 0x5c6   :  { %11034 = vrot.lane.b32.xlu1 %v10708_v41, %s14042_s19 }
 0x5c7   :  { %v13564_v14 = vpop.f32.mrf.mxu0 }
 0x5c8   :  { %v10947_v63 = vpop.permute.xlu1 %10946 }
 0x5c9   :  { %v10632_v62 = vpop.f32.mrf.mxu1  ;;  %v11074_v52 = vsel %vm11072_vm3, %v11057_v40, %v10947_v63 }
 0x5ca   :  { %11032 = vrot.lane.b32.xlu0 %v10632_v62, %s14042_s19 }
 0x5cb   :  { %v13559_v50 = vpop.f32.mrf.mxu1 }
 0x5cc   :  { %v10945_v15 = vpop.permute.xlu0 %10944 }
 0x5cd   :  { %v10860_v34 = vpop.f32.mrf.mxu0  ;;  %v11073_v18 = vsel %vm11072_vm3, %v11056_v23, %v10945_v15 }
 0x5ce   :  { %11038 = vrot.lane.b32.xlu1 %v10860_v34, %s14042_s19 }
 0x5cf   :  { %v13574_v21 = vpop.f32.mrf.mxu0 }
 0x5d0   :  { %v10951_v49 = vpop.permute.xlu1 %10950 }
 0x5d1   :  { %v10784_v45 = vpop.f32.mrf.mxu1  ;;  %v11076_v22 = vsel %vm11072_vm3, %v11059_v56, %v10951_v49 }
 0x5d2   :  { %11036 = vrot.lane.b32.xlu0 %v10784_v45, %s14042_s19 }
 0x5d3   :  { %v13569_v4 = vpop.f32.mrf.mxu1 }
 0x5d4   :  { %v10949_v32 = vpop.permute.xlu0 %10948 }
 0x5d5   :  { %v11075_v14 = vsel %vm11072_vm3, %v11058_v37, %v10949_v32 }
 0x5d8   :  { %v10955_v51 = vpop.permute.xlu1 %10954 }
 0x5d9   :  { %v11078_v11 = vsel %vm11072_vm3, %v11061_v46, %v10955_v51 }
 0x5dc   :  { %v10953_v9 = vpop.permute.xlu0 %10952 }
 0x5dd   :  { %v11077_v17 = vsel %vm11072_vm3, %v11060_v25, %v10953_v9 }
 0x5e0   :  { %v10959_v5 = vpop.permute.xlu1 %10958 }
 0x5e1   :  { %v11080_v15 = vsel %vm11072_vm3, %v11063_v35, %v10959_v5 }
 0x5e4   :  { %v10957_v57 = vpop.permute.xlu0 %10956 }
 0x5e5   :  { %v11079_v6 = vsel %vm11072_vm3, %v11062_v19, %v10957_v57 }
 0x5e8   :  { %v10963_v8 = vpop.permute.xlu1 %10962 }
 0x5e9   :  { %v11082_v9 = vsel %vm11072_vm3, %v11065_v27, %v10963_v8  ;;  %v14023_v27 = vld [vmem:[%s17268_s0 + $0x38] sm:$0xff] }
 0x5ec   :  { %v10961_v16 = vpop.permute.xlu0 %10960 }
 0x5ed   :  { %v11081_v39 = vsel %vm11072_vm3, %v11064_v61, %v10961_v16 }
 0x5f0   :  { %v16439_v10 = vpop.permute.xlu1 %10966 }
 0x5f1   :  { %v11084_v16 = vsel %vm11072_vm3, %v11067_v1, %v16439_v10 }
 0x5f4   :  { %v10965_v43 = vpop.permute.xlu0 %10964 }
 0x5f5   :  { %v11083_v13 = vsel %vm11072_vm3, %v11066_v31, %v10965_v43 }
 0x5f8   :  { %v16441_v48 = vpop.permute.xlu1 %10970 }
 0x5f9   :  { %v11086_v43 = vsel %vm11072_vm3, %v11069_v24, %v16441_v48 }
 0x5fc   :  { %v16443_v38 = vpop.permute.xlu0 %10968 }
 0x5fd   :  { %v11085_v26 = vsel %vm11072_vm3, %v11068_v29, %v16443_v38 }
 0x600   :  { %v16445_v60 = vpop.permute.xlu1 %10974 }
 0x601   :  { %v11088_v38 = vsel %vm11072_vm3, %v11071_v30, %v16445_v60  ;;  %v14017_v60 = vld [vmem:[%s17268_s0 + $0x8] sm:$0xff] }
 0x604   :  { %v16447_v42 = vpop.permute.xlu0 %10972 }
 0x605   :  { %v11087_v20 = vsel %vm11072_vm3, %v11070_v58, %v16447_v42 }
 0x608   :  { %v11011_v0 = vpop.permute.xlu1 %11010 }
 0x609   :  { %v11091_v53 = vsel %vm11089_vm4, %v11074_v52, %v11011_v0 }
 0x60c   :  { %v11009_v55 = vpop.permute.xlu0 %11008 }
 0x60d   :  { %v11090_v44 = vsel %vm11089_vm4, %v11073_v18, %v11009_v55 }
 0x60e   :  { %13583 = vmatprep.mubr.msk.f32.mxu0 %vm61_vm0, %v11090_v44 }
 0x60f   :  { %13584 = vmatmul.mubr.msk.f32.vlgmr.msra.gmra.mxu0 %vm61_vm0, %v11091_v53  ;;  %v14018_v53 = vld [vmem:[%s17268_s0] sm:$0xff] }
 0x610   :  { %v11015_v41 = vpop.permute.xlu1 %11014 }
 0x611   :  { %v11093_v28 = vsel %vm11089_vm4, %v11076_v22, %v11015_v41 }
 0x614   :  { %v11013_v62 = vpop.permute.xlu0 %11012 }
 0x615   :  { %v11092_v50 = vsel %vm11089_vm4, %v11075_v14, %v11013_v62 }
 0x616   :  { %13586 = vmatprep.mubr.msk.f32.mxu0 %vm61_vm0, %v11092_v50 }
 0x617   :  { %13587 = vmatmul.mubr.msk.f32.gmra.mxu0 %vm61_vm0, %v11093_v28  ;;  %v14019_v28 = vld [vmem:[%s17268_s0 + $0x10] sm:$0xff] }
 0x618   :  { %v11019_v34 = vpop.permute.xlu1 %11018 }
 0x619   :  { %v11095_v4 = vsel %vm11089_vm4, %v11078_v11, %v11019_v34  ;;  %v14020_v34 = vld [vmem:[%s17268_s0 + $0x18] sm:$0xff] }
 0x61c   :  { %v11017_v21 = vpop.permute.xlu0 %11016 }
 0x61d   :  { %v11094_v45 = vsel %vm11089_vm4, %v11077_v17, %v11017_v21 }
 0x61e   :  { %13589 = vmatprep.mubr.msk.f32.mxu0 %vm61_vm0, %v11094_v45 }
 0x61f   :  { %13590 = vmatmul.mubr.msk.f32.gmra.mxu0 %vm61_vm0, %v11095_v4  ;;  %v14021_v4 = vld [vmem:[%s17268_s0 + $0x28] sm:$0xff] }
 0x620   :  { %v11023_v3 = vpop.permute.xlu1 %11022 }
 0x621   :  { %v11097_v32 = vsel %vm11089_vm4, %v11080_v15, %v11023_v3 }
 0x624   :  { %v11021_v63 = vpop.permute.xlu0 %11020 }
 0x625   :  { %v11096_v49 = vsel %vm11089_vm4, %v11079_v6, %v11021_v63  ;;  %v14022_v6 = vld [vmem:[%s17268_s0 + $0x20] sm:$0xff] }
 0x626   :  { %13592 = vmatprep.mubr.msk.f32.mxu0 %vm61_vm0, %v11096_v49 }
 0x627   :  { %13593 = vmatmul.mubr.msk.f32.gmra.mxu0 %vm61_vm0, %v11097_v32 }
 0x628   :  { %v11027_v36 = vpop.permute.xlu1 %11026 }
 0x629   :  { %v11099_v57 = vsel %vm11089_vm4, %v11082_v9, %v11027_v36  ;;  %v14024_v9 = vld [vmem:[%s17268_s0 + $0x30] sm:$0xff] }
 0x62c   :  { %v11025_v51 = vpop.permute.xlu0 %11024 }
 0x62d   :  { %v11098_v5 = vsel %vm11089_vm4, %v11081_v39, %v11025_v51 }
 0x62e   :  { %13595 = vmatprep.mubr.msk.f32.mxu1 %vm61_vm0, %v11098_v5 }
 0x62f   :  { %13596 = vmatmul.mubr.msk.f32.vlgmr.msra.gmra.mxu1 %vm61_vm0, %v11099_v57 }
 0x630   :  { %v11031_v47 = vpop.permute.xlu1 %11030 }
 0x631   :  { %v11101_v0 = vsel %vm11089_vm4, %v11084_v16, %v11031_v47 }
 0x634   :  { %v11029_v8 = vpop.permute.xlu0 %11028 }
 0x635   :  { %v11100_v23 = vsel %vm11089_vm4, %v11083_v13, %v11029_v8  ;;  %v14025_v8 = vld [vmem:[%s17268_s0 + $0x48] sm:$0xff] }
 0x636   :  { %13598 = vmatprep.mubr.msk.f32.mxu1 %vm61_vm0, %v11100_v23 }
 0x637   :  { %13599 = vmatmul.mubr.msk.f32.gmra.mxu1 %vm61_vm0, %v11101_v0  ;;  %v14026_v0 = vld [vmem:[%s17268_s0 + $0x40] sm:$0xff] }
 0x638   :  { %v11035_v2 = vpop.permute.xlu1 %11034 }
 0x639   :  { %v11103_v18 = vsel %vm11089_vm4, %v11086_v43, %v11035_v2 }
 0x63c   :  { %v11033_v10 = vpop.permute.xlu0 %11032 }
 0x63d   :  { %v11102_v40 = vsel %vm11089_vm4, %v11085_v26, %v11033_v10 }
 0x63e   :  { %13601 = vmatprep.mubr.msk.f32.mxu1 %vm61_vm0, %v11102_v40  ;;  %v14027_v40 = vld [vmem:[%s17268_s0 + $0x58] sm:$0xff] }
 0x63f   :  { %13602 = vmatmul.mubr.msk.f32.gmra.mxu1 %vm61_vm0, %v11103_v18 }
 0x640   :  { %v11039_v12 = vpop.permute.xlu1 %11038 }
 0x641   :  { %v11105_v52 = vsel %vm11089_vm4, %v11088_v38, %v11039_v12  ;;  %v14028_v12 = vld [vmem:[%s17268_s0 + $0x50] sm:$0xff] }
 0x644   :  { %v11037_v48 = vpop.permute.xlu0 %11036 }
 0x645   :  { %v11104_v55 = vsel %vm11089_vm4, %v11087_v20, %v11037_v48 }
 0x646   :  { %13604 = vmatprep.mubr.msk.f32.mxu1 %vm61_vm0, %v11104_v55 }
 0x647   :  { %13605 = vmatmul.mubr.msk.f32.gmra.mxu1 %vm61_vm0, %v11105_v52 }
 0x6cf   :  { %v13585_v54 = vpop.f32.mrf.mxu0 }
 0x6d0   :  { %v11237_v7 = vadd.f32 %v13585_v54, %v16545_v33  ;;  %v14029_v54 = vld [vmem:[%s17268_s0 + $0x68] sm:$0xff] }
 0x6d1   :  { %v11231_v59 = vpop.f32.mrf.mxu0 }
 0x6d2   :  { %v16551_v42 = vadd.f32 %v14017_v60, %v11237_v7  ;;  %v11232_v44 = vadd.f32 %v16545_v33, %v11231_v59  ;;  %v14030_v60 = vld [vmem:[%s17268_s0 + $0x60] sm:$0xff] }
 0x6d4   :  { %v16557_v37 = vadd.f32 %v14018_v53, %v11232_v44  ;;  %v11331_v41 = vsel %vm61_vm0, %v16551_v42, 0.0 }
 0x6d5   :  { %11332 = vadd.xlane.f32.xlu1 %v11331_v41 }
 0x6d6   :  { %v11328_v56 = vsel %vm61_vm0, %v16557_v37, 0.0 }
 0x6d7   :  { %v13588_v14 = vpop.f32.mrf.mxu0  ;;  %11329 = vadd.xlane.f32.xlu0 %v11328_v56 }
 0x6d8   :  { %v11247_v22 = vadd.f32 %v13588_v14, %v16545_v33 }
 0x6d9   :  { %v11241_v62 = vpop.f32.mrf.mxu0 }
 0x6da   :  { %v11242_v50 = vadd.f32 %v16545_v33, %v11241_v62  ;;  %v16573_v46 = vadd.f32 %v14020_v34, %v11247_v22  ;;  %v14031_v22 = vld [vmem:[%s17268_s0 + $0x78] sm:$0xff]  ;;  %v14032_v34 = vld [vmem:[%s17268_s0 + $0x70] sm:$0xff] }
 0x6dc   :  { %v16568_v25 = vadd.f32 %v14019_v28, %v11242_v50  ;;  %v11337_v35 = vsel %vm61_vm0, %v16573_v46, 0.0 }
 0x6de   :  { %v11334_v17 = vsel %vm61_vm0, %v16568_v25, 0.0 }
 0x6df   :  { %v13591_v21 = vpop.f32.mrf.mxu0  ;;  %11335 = vadd.xlane.f32.xlu0 %v11334_v17 }
 0x6e0   :  { %v11257_v11 = vadd.f32 %v13591_v21, %v16545_v33 }
 0x6e1   :  { %v11251_v45 = vpop.f32.mrf.mxu0 }
 0x6e2   :  { %v16581_v19 = vadd.f32 %v14021_v4, %v11257_v11  ;;  %v11252_v3 = vadd.f32 %v16545_v33, %v11251_v45 }
 0x6e3   :  { %11338 = vadd.xlane.f32.xlu0 %v11337_v35 }
 0x6e4   :  { %v16589_v63 = vadd.f32 %v14022_v6, %v11252_v3  ;;  %v11343_v49 = vsel %vm61_vm0, %v16581_v19, 0.0 }
 0x6e6   :  { %v11340_v15 = vsel %vm61_vm0, %v16589_v63, 0.0 }
 0x6e7   :  { %v13594_v32 = vpop.f32.mrf.mxu0  ;;  %11341 = vadd.xlane.f32.xlu1 %v11340_v15  ;;  %11344 = vadd.xlane.f32.xlu0 %v11343_v49 }
 0x6e8   :  { %v11267_v61 = vadd.f32 %v13594_v32, %v16545_v33 }
 0x6e9   :  { %v11261_v36 = vpop.f32.mrf.mxu0 }
 0x6ea   :  { %v16599_v39 = vadd.f32 %v14023_v27, %v11267_v61  ;;  %v11262_v51 = vadd.f32 %v16545_v33, %v11261_v36 }
 0x6ec   :  { %v16605_v5 = vadd.f32 %v14024_v9, %v11262_v51  ;;  %v11349_v57 = vsel %vm61_vm0, %v16599_v39, 0.0 }
 0x6ed   :  { %11350 = vadd.xlane.f32.xlu0 %v11349_v57 }
 0x6ee   :  { %v11346_v31 = vsel %vm61_vm0, %v16605_v5, 0.0 }
 0x6ef   :  { %v13597_v47 = vpop.f32.mrf.mxu1  ;;  %11347 = vadd.xlane.f32.xlu1 %v11346_v31 }
 0x6f0   :  { %v11277_v1 = vadd.f32 %v13597_v47, %v16545_v33 }
 0x6f1   :  { %v11271_v13 = vpop.f32.mrf.mxu1 }
 0x6f2   :  { %v16615_v16 = vadd.f32 %v14025_v8, %v11277_v1  ;;  %v11272_v23 = vadd.f32 %v16545_v33, %v11271_v13 }
 0x6f4   :  { %v16621_v29 = vadd.f32 %v14026_v0, %v11272_v23  ;;  %v11355_v2 = vsel %vm61_vm0, %v16615_v16, 0.0 }
 0x6f5   :  { %11356 = vadd.xlane.f32.xlu0 %v11355_v2 }
 0x6f6   :  { %v11352_v24 = vsel %vm61_vm0, %v16621_v29, 0.0 }
 0x6f7   :  { %v13600_v26 = vpop.f32.mrf.mxu1  ;;  %11353 = vadd.xlane.f32.xlu1 %v11352_v24 }
 0x6f8   :  { %v11287_v10 = vadd.f32 %v13600_v26, %v16545_v33 }
 0x6f9   :  { %v11281_v43 = vpop.f32.mrf.mxu1 }
 0x6fa   :  { %v16631_v18 = vadd.f32 %v14027_v40, %v11287_v10  ;;  %v11282_v58 = vadd.f32 %v16545_v33, %v11281_v43 }
 0x6fc   :  { %v16637_v30 = vadd.f32 %v14028_v12, %v11282_v58  ;;  %v11361_v20 = vsel %vm61_vm0, %v16631_v18, 0.0 }
 0x6fd   :  { %11362 = vadd.xlane.f32.xlu0 %v11361_v20 }
 0x6fe   :  { %v11358_v48 = vsel %vm61_vm0, %v16637_v30, 0.0 }
 0x6ff   :  { %v13603_v38 = vpop.f32.mrf.mxu1  ;;  %11359 = vadd.xlane.f32.xlu1 %v11358_v48 }
 0x700   :  { %v11297_v55 = vadd.f32 %v13603_v38, %v16545_v33 }
 0x701   :  { %v11291_v52 = vpop.f32.mrf.mxu1 }
 0x702   :  { %v16647_v7 = vadd.f32 %v14029_v54, %v11297_v55  ;;  %v11292_v59 = vadd.f32 %v16545_v33, %v11291_v52 }
 0x704   :  { %v16653_v44 = vadd.f32 %v14030_v60, %v11292_v59  ;;  %v11367_v53 = vsel %vm61_vm0, %v16647_v7, 0.0 }
 0x705   :  { %11368 = vadd.xlane.f32.xlu0 %v11367_v53 }
 0x706   :  { %v11364_v41 = vsel %vm61_vm0, %v16653_v44, 0.0 }
 0x707   :  { %v13606_v56 = vpop.f32.mrf.mxu1  ;;  %11365 = vadd.xlane.f32.xlu1 %v11364_v41 }
 0x708   :  { %v11307_v14 = vadd.f32 %v13606_v56, %v16545_v33 }
 0x709   :  { %v11301_v62 = vpop.f32.mrf.mxu1 }
 0x70a   :  { %v16663_v50 = vadd.f32 %v14031_v22, %v11307_v14  ;;  %v11302_v28 = vadd.f32 %v16545_v33, %v11301_v62  ;;  %v11584_v62 = vld [vmem:[%s17271_s4 + $0x18] sm:$0xff] }
 0x70b   :  { %13607 = vmatprep.subr.mxu0 %v11584_v62 }
 0x70c   :  { %v16669_v17 = vadd.f32 %v14032_v34, %v11302_v28  ;;  %v11373_v21 = vsel %vm61_vm0, %v16663_v50, 0.0  ;;  %13608 = vmatpush3.msra.mxu0 %v11584_v62  ;;  %v11583_v28 = vld [vmem:[%s17271_s4 + $0x10] sm:$0xff] }
 0x70d   :  { %11374 = vadd.xlane.f32.xlu0 %v11373_v21  ;;  %13609 = vmatprep.subr.mxu0 %v11583_v28 }
 0x70e   :  { %v11370_v11 = vsel %vm61_vm0, %v16669_v17, 0.0  ;;  %13610 = vmatpush3.msra.mxu0 %v11583_v28 }
 0x70f   :  { %11371 = vadd.xlane.f32.xlu1 %v11370_v11  ;;  %v11582_v11 = vld [vmem:[%s17271_s4 + $0x8] sm:$0xff] }
 0x710   :  { %13611 = vmatprep.subr.mxu0 %v11582_v11 }
 0x711   :  { %13612 = vmatpush3.msra.mxu0 %v11582_v11 }
 0x75e   :  { %v11333_v45 = vpop.xlane.xlu1 %11332 }
 0x75f   :  { %v11378_v4 = vmul.f32 0.03125, %v11333_v45 }
 0x760   :  { %v11330_v3 = vpop.xlane.xlu0 %11329 }
 0x761   :  { %v16676_v35 = vsub.f32 %v16551_v42, %v11378_v4  ;;  %v11377_v33 = vmul.f32 0.03125, %v11330_v3 }
 0x763   :  { %v16679_v6 = vsub.f32 %v16557_v37, %v11377_v33  ;;  %v11410_v15 = vmul.f32 %v16676_v35, %v16676_v35 }
 0x765   :  { %v11428_v49 = vsel %vm61_vm0, %v11410_v15, 0.0  ;;  %v11409_v32 = vmul.f32 %v16679_v6, %v16679_v6 }
 0x766   :  { %11429 = vadd.xlane.f32.xlu0 %v11428_v49 }
 0x767   :  { %v11425_v61 = vsel %vm61_vm0, %v11409_v32, 0.0 }
 0x768   :  { %11426 = vadd.xlane.f32.xlu1 %v11425_v61  ;;  %v11336_v36 = vpop.xlane.xlu0 %11335 }
 0x769   :  { %v11379_v27 = vmul.f32 0.03125, %v11336_v36 }
 0x76b   :  { %v16688_v42 = vsub.f32 %v16568_v25, %v11379_v27 }
 0x76c   :  { %v11339_v51 = vpop.xlane.xlu0 %11338 }
 0x76d   :  { %v11380_v37 = vmul.f32 0.03125, %v11339_v51  ;;  %v11411_v9 = vmul.f32 %v16688_v42, %v16688_v42 }
 0x76f   :  { %v16693_v57 = vsub.f32 %v16573_v46, %v11380_v37  ;;  %v11431_v31 = vsel %vm61_vm0, %v11411_v9, 0.0 }
 0x770   :  { %v11342_v47 = vpop.xlane.xlu1 %11341  ;;  %11432 = vadd.xlane.f32.xlu1 %v11431_v31  ;;  %v11345_v1 = vpop.xlane.xlu0 %11344 }
 0x771   :  { %v11381_v13 = vmul.f32 0.03125, %v11342_v47  ;;  %v11382_v8 = vmul.f32 0.03125, %v11345_v1  ;;  %v11412_v23 = vmul.f32 %v16693_v57, %v16693_v57 }
 0x773   :  { %v16699_v25 = vsub.f32 %v16589_v63, %v11381_v13  ;;  %v16702_v0 = vsub.f32 %v16581_v19, %v11382_v8  ;;  %v11434_v2 = vsel %vm61_vm0, %v11412_v23, 0.0 }
 0x774   :  { %11435 = vadd.xlane.f32.xlu0 %v11434_v2 }
 0x775   :  { %v11413_v46 = vmul.f32 %v16699_v25, %v16699_v25  ;;  %v11414_v24 = vmul.f32 %v16702_v0, %v16702_v0 }
 0x776   :  { %v11351_v26 = vpop.xlane.xlu0 %11350 }
 0x777   :  { %v11384_v10 = vmul.f32 0.03125, %v11351_v26  ;;  %v11437_v43 = vsel %vm61_vm0, %v11413_v46, 0.0  ;;  %v11440_v40 = vsel %vm61_vm0, %v11414_v24, 0.0  ;;  %v11806_v26 = vld [vmem:[%s17272_s6 + $0x28] sm:$0xff] }
 0x778   :  { %v11348_v63 = vpop.xlane.xlu1 %11347  ;;  %11438 = vadd.xlane.f32.xlu1 %v11437_v43  ;;  %11441 = vadd.xlane.f32.xlu0 %v11440_v40 }
 0x779   :  { %v16712_v19 = vsub.f32 %v16599_v39, %v11384_v10  ;;  %v11383_v58 = vmul.f32 0.03125, %v11348_v63  ;;  %v11805_v10 = vld [vmem:[%s17272_s6 + $0x20] sm:$0xff] }
 0x77b   :  { %v16715_v12 = vsub.f32 %v16605_v5, %v11383_v58  ;;  %v11416_v20 = vmul.f32 %v16712_v19, %v16712_v19 }
 0x77d   :  { %v11446_v48 = vsel %vm61_vm0, %v11416_v20, 0.0  ;;  %v11415_v38 = vmul.f32 %v16715_v12, %v16715_v12 }
 0x77e   :  { %11447 = vadd.xlane.f32.xlu0 %v11446_v48  ;;  %v11357_v55 = vpop.xlane.xlu0 %11356 }
 0x77f   :  { %v11386_v52 = vmul.f32 0.03125, %v11357_v55  ;;  %v11443_v54 = vsel %vm61_vm0, %v11415_v38, 0.0 }
 0x780   :  { %v11354_v59 = vpop.xlane.xlu1 %11353  ;;  %11444 = vadd.xlane.f32.xlu1 %v11443_v54 }
 0x781   :  { %v16724_v39 = vsub.f32 %v16615_v16, %v11386_v52  ;;  %v11385_v5 = vmul.f32 0.03125, %v11354_v59 }
 0x783   :  { %v16727_v60 = vsub.f32 %v16621_v29, %v11385_v5  ;;  %v11418_v53 = vmul.f32 %v16724_v39, %v16724_v39 }
 0x785   :  { %v11452_v41 = vsel %vm61_vm0, %v11418_v53, 0.0  ;;  %v11417_v56 = vmul.f32 %v16727_v60, %v16727_v60 }
 0x786   :  { %11453 = vadd.xlane.f32.xlu0 %v11452_v41  ;;  %v11363_v14 = vpop.xlane.xlu0 %11362 }
 0x787   :  { %v11388_v16 = vmul.f32 0.03125, %v11363_v14  ;;  %v11449_v22 = vsel %vm61_vm0, %v11417_v56, 0.0  ;;  %v16798_v14 = vld [vmem:[%s17273_s8] ss:$0 sm:$0xff] }
 0x788   :  { %v11360_v29 = vpop.xlane.xlu1 %11359  ;;  %11450 = vadd.xlane.f32.xlu1 %v11449_v22 }
 0x789   :  { %v16742_v34 = vsub.f32 %v16631_v18, %v11388_v16  ;;  %v11387_v21 = vmul.f32 0.03125, %v11360_v29  ;;  %v11581_v18 = vld [vmem:[%s17271_s4] sm:$0xff] }
 0x78a   :  { %13613 = vmatprep.subr.mxu0 %v11581_v18 }
 0x78b   :  { %v16748_v45 = vsub.f32 %v16637_v30, %v11387_v21  ;;  %v11420_v4 = vmul.f32 %v16742_v34, %v16742_v34  ;;  %13614 = vmatpush3.msra.mxu0 %v11581_v18  ;;  %v16806_v18 = vld [vmem:[%s17274_s9] ss:$0 sm:$0xff] }
 0x78d   :  { %v11458_v3 = vsel %vm61_vm0, %v11420_v4, 0.0  ;;  %v11419_v33 = vmul.f32 %v16748_v45, %v16748_v45 }
 0x78e   :  { %11459 = vadd.xlane.f32.xlu0 %v11458_v3  ;;  %v11369_v15 = vpop.xlane.xlu0 %11368 }
 0x78f   :  { %v11390_v30 = vmul.f32 0.03125, %v11369_v15  ;;  %v11455_v49 = vsel %vm61_vm0, %v11419_v33, 0.0 }
 0x790   :  { %v11366_v32 = vpop.xlane.xlu1 %11365  ;;  %11456 = vadd.xlane.f32.xlu1 %v11455_v49 }
 0x791   :  { %v16760_v61 = vsub.f32 %v16647_v7, %v11390_v30  ;;  %v11389_v36 = vmul.f32 0.03125, %v11366_v32 }
 0x793   :  { %v16763_v27 = vsub.f32 %v16653_v44, %v11389_v36  ;;  %v11422_v51 = vmul.f32 %v16760_v61, %v16760_v61 }
 0x795   :  { %v11464_v37 = vsel %vm61_vm0, %v11422_v51, 0.0  ;;  %v11421_v9 = vmul.f32 %v16763_v27, %v16763_v27 }
 0x796   :  { %11465 = vadd.xlane.f32.xlu0 %v11464_v37  ;;  %v11375_v31 = vpop.xlane.xlu0 %11374 }
 0x797   :  { %v11392_v47 = vmul.f32 0.03125, %v11375_v31  ;;  %v11461_v1 = vsel %vm61_vm0, %v11421_v9, 0.0 }
 0x798   :  { %v11372_v13 = vpop.xlane.xlu1 %11371  ;;  %11462 = vadd.xlane.f32.xlu1 %v11461_v1 }
 0x799   :  { %v16772_v7 = vsub.f32 %v16663_v50, %v11392_v47  ;;  %v11391_v44 = vmul.f32 0.03125, %v11372_v13  ;;  %v11808_v50 = vld [vmem:[%s17272_s6 + $0x38] sm:$0xff] }
 0x79a   :  { %13639 = vmatprep.subr.mxu1 %v11808_v50 }
 0x79b   :  { %v16775_v8 = vsub.f32 %v16669_v17, %v11391_v44  ;;  %v11424_v23 = vmul.f32 %v16772_v7, %v16772_v7  ;;  %v11807_v17 = vld [vmem:[%s17272_s6 + $0x30] sm:$0xff]  ;;  %13640 = vmatpush3.msra.mxu1 %v11808_v50 }
 0x79c   :  { %13641 = vmatprep.subr.mxu1 %v11807_v17 }
 0x79d   :  { %v11470_v2 = vsel %vm61_vm0, %v11424_v23, 0.0  ;;  %v11423_v46 = vmul.f32 %v16775_v8, %v16775_v8  ;;  %13642 = vmatpush3.msra.mxu1 %v11807_v17 }
 0x79e   :  { %11471 = vadd.xlane.f32.xlu0 %v11470_v2  ;;  %13643 = vmatprep.subr.mxu1 %v11806_v26 }
 0x79f   :  { %v11467_v24 = vsel %vm61_vm0, %v11423_v46, 0.0  ;;  %13644 = vmatpush3.msra.mxu1 %v11806_v26 }
 0x7a0   :  { %11468 = vadd.xlane.f32.xlu1 %v11467_v24  ;;  %13645 = vmatprep.subr.mxu1 %v11805_v10 }
 0x7a1   :  { %13646 = vmatpush3.msra.mxu1 %v11805_v10 }
 0x7ef   :  { %v11430_v43 = vpop.xlane.xlu0 %11429 }
 0x7f0   :  { %v11474_v40 = vmul.f32 0.03125, %v11430_v43 }
 0x7f1   :  { %v11427_v63 = vpop.xlane.xlu1 %11426 }
 0x7f2   :  { %v11490_v58 = vadd.f32 1e-05, %v11474_v40  ;;  %v11473_v20 = vmul.f32 0.03125, %v11427_v63 }
 0x7f4   :  { %13953 = vrsqrt.f32 %v11490_v58  ;;  %v11489_v48 = vadd.f32 1e-05, %v11473_v20 }
 0x7f6   :  { %13955 = vrsqrt.f32 %v11489_v48 }
 0x7f9   :  { %v11433_v38 = vpop.xlane.xlu1 %11432 }
 0x7fa   :  { %v11475_v55 = vmul.f32 0.03125, %v11433_v38 }
 0x7fc   :  { %v11491_v52 = vadd.f32 1e-05, %v11475_v55 }
 0x7fd   :  { %v11436_v54 = vpop.xlane.xlu0 %11435 }
 0x7fe   :  { %13957 = vrsqrt.f32 %v11491_v52  ;;  %v11476_v59 = vmul.f32 0.03125, %v11436_v54 }
 0x800   :  { %v11492_v5 = vadd.f32 1e-05, %v11476_v59 }
 0x801   :  { %v13954_v53 = vpop.eup %13953  ;;  %v11439_v41 = vpop.xlane.xlu1 %11438 }
 0x802   :  { %v11442_v56 = vpop.xlane.xlu0 %11441  ;;  %v11522_v62 = vmul.f32 %v13954_v53, %v16676_v35  ;;  %13959 = vrsqrt.f32 %v11492_v5  ;;  %v11477_v16 = vmul.f32 0.03125, %v11439_v41 }
 0x803   :  { %v11478_v22 = vmul.f32 0.03125, %v11442_v56  ;;  %v13956_v29 = vpop.eup %13955 }
 0x804   :  { %v11493_v28 = vadd.f32 1e-05, %v11477_v16  ;;  %v11521_v11 = vmul.f32 %v13956_v29, %v16679_v6  ;;  %v11544_v4 = vmul.f32 %v16798_v14, %v11522_v62 }
 0x805   :  { %v11494_v21 = vadd.f32 1e-05, %v11478_v22 }
 0x806   :  { %13961 = vrsqrt.f32 %v11493_v28  ;;  %v11543_v3 = vmul.f32 %v16798_v14, %v11521_v11  ;;  %v16813_v30 = vadd.f32 %v16806_v18, %v11544_v4 }
 0x807   :  { %13963 = vrsqrt.f32 %v11494_v21  ;;  %v11448_v35 = vpop.xlane.xlu0 %11447 }
 0x808   :  { %v11480_v33 = vmul.f32 0.03125, %v11448_v35  ;;  %v16810_v15 = vadd.f32 %v16806_v18, %v11543_v3 }
 0x809   :  { %v11445_v6 = vpop.xlane.xlu1 %11444 }
 0x80a   :  { %v11496_v49 = vadd.f32 1e-05, %v11480_v33  ;;  %v11479_v32 = vmul.f32 0.03125, %v11445_v6  ;;  %13615 = vmatprep.mubr.msk.f32.mxu0 %vm61_vm0, %v16810_v15 }
 0x80b   :  { %v13958_v36 = vpop.eup %13957  ;;  %13616 = vmatmul.mubr.msk.f32.vlgmr.msra.gmra.mxu0 %vm61_vm0, %v16813_v30 }
 0x80c   :  { %13965 = vrsqrt.f32 %v11496_v49  ;;  %v11495_v51 = vadd.f32 1e-05, %v11479_v32  ;;  %v11523_v37 = vmul.f32 %v13958_v36, %v16688_v42 }
 0x80e   :  { %13967 = vrsqrt.f32 %v11495_v51  ;;  %v11545_v9 = vmul.f32 %v16798_v14, %v11523_v37 }
 0x80f   :  { %v13960_v31 = vpop.eup %13959  ;;  %v11454_v47 = vpop.xlane.xlu0 %11453 }
 0x810   :  { %v11524_v1 = vmul.f32 %v13960_v31, %v16693_v57  ;;  %v11482_v13 = vmul.f32 0.03125, %v11454_v47  ;;  %v16823_v44 = vadd.f32 %v16806_v18, %v11545_v9 }
 0x811   :  { %v11451_v23 = vpop.xlane.xlu1 %11450 }
 0x812   :  { %v11498_v2 = vadd.f32 1e-05, %v11482_v13  ;;  %v11481_v46 = vmul.f32 0.03125, %v11451_v23  ;;  %13618 = vmatprep.mubr.msk.f32.mxu0 %vm61_vm0, %v16823_v44  ;;  %v11546_v24 = vmul.f32 %v16798_v14, %v11524_v1 }
 0x813   :  { %v13962_v42 = vpop.eup %13961 }
 0x814   :  { %v13964_v50 = vpop.eup %13963  ;;  %13969 = vrsqrt.f32 %v11498_v2  ;;  %v11497_v17 = vadd.f32 1e-05, %v11481_v46  ;;  %v16829_v26 = vadd.f32 %v16806_v18, %v11546_v24  ;;  %v11525_v57 = vmul.f32 %v13962_v42, %v16699_v25 }
 0x815   :  { %v11526_v10 = vmul.f32 %v13964_v50, %v16702_v0 }
 0x816   :  { %13971 = vrsqrt.f32 %v11497_v17  ;;  %13619 = vmatmul.mubr.msk.f32.gmra.mxu0 %vm61_vm0, %v16829_v26  ;;  %v11547_v43 = vmul.f32 %v16798_v14, %v11525_v57 }
 0x817   :  { %v11460_v40 = vpop.xlane.xlu0 %11459  ;;  %v11548_v63 = vmul.f32 %v16798_v14, %v11526_v10 }
 0x818   :  { %v11484_v58 = vmul.f32 0.03125, %v11460_v40  ;;  %v16838_v20 = vadd.f32 %v16806_v18, %v11547_v43 }
 0x819   :  { %v13966_v48 = vpop.eup %13965  ;;  %v11457_v38 = vpop.xlane.xlu1 %11456  ;;  %v16841_v55 = vadd.f32 %v16806_v18, %v11548_v63 }
 0x81a   :  { %v11528_v25 = vmul.f32 %v13966_v48, %v16712_v19  ;;  %v11500_v0 = vadd.f32 1e-05, %v11484_v58  ;;  %v11483_v52 = vmul.f32 0.03125, %v11457_v38  ;;  %13621 = vmatprep.mubr.msk.f32.mxu0 %vm61_vm0, %v16838_v20 }
 0x81b   :  { %v13968_v54 = vpop.eup %13967  ;;  %13622 = vmatmul.mubr.msk.f32.gmra.mxu0 %vm61_vm0, %v16841_v55 }
 0x81c   :  { %13973 = vrsqrt.f32 %v11500_v0  ;;  %v11499_v59 = vadd.f32 1e-05, %v11483_v52  ;;  %v11527_v5 = vmul.f32 %v13968_v54, %v16715_v12  ;;  %v11550_v53 = vmul.f32 %v16798_v14, %v11528_v25  ;;  %v12527_v25 = vld [vmem:[%s17275_s5] ss:$0 sm:$0xff] }
 0x81e   :  { %13975 = vrsqrt.f32 %v11499_v59  ;;  %v11549_v41 = vmul.f32 %v16798_v14, %v11527_v5  ;;  %v16855_v29 = vadd.f32 %v16806_v18, %v11550_v53 }
 0x81f   :  { %v11466_v56 = vpop.xlane.xlu0 %11465 }
 0x820   :  { %v11486_v19 = vmul.f32 0.03125, %v11466_v56  ;;  %v16852_v62 = vadd.f32 %v16806_v18, %v11549_v41 }
 0x821   :  { %v13970_v16 = vpop.eup %13969  ;;  %v11463_v22 = vpop.xlane.xlu1 %11462 }
 0x822   :  { %v11530_v28 = vmul.f32 %v13970_v16, %v16724_v39  ;;  %v11502_v21 = vadd.f32 1e-05, %v11486_v19  ;;  %v11485_v11 = vmul.f32 0.03125, %v11463_v22  ;;  %13624 = vmatprep.mubr.msk.f32.mxu0 %vm61_vm0, %v16852_v62 }
 0x823   :  { %v13972_v12 = vpop.eup %13971  ;;  %13625 = vmatmul.mubr.msk.f32.gmra.mxu0 %vm61_vm0, %v16855_v29 }
 0x824   :  { %13977 = vrsqrt.f32 %v11502_v21  ;;  %v11501_v4 = vadd.f32 1e-05, %v11485_v11  ;;  %v11529_v3 = vmul.f32 %v13972_v12, %v16727_v60  ;;  %v11552_v35 = vmul.f32 %v16798_v14, %v11530_v28 }
 0x826   :  { %13979 = vrsqrt.f32 %v11501_v4  ;;  %v11551_v33 = vmul.f32 %v16798_v14, %v11529_v3  ;;  %v16869_v51 = vadd.f32 %v16806_v18, %v11552_v35 }
 0x827   :  { %v11472_v6 = vpop.xlane.xlu0 %11471 }
 0x828   :  { %v11488_v39 = vmul.f32 0.03125, %v11472_v6  ;;  %v16866_v49 = vadd.f32 %v16806_v18, %v11551_v33 }
 0x829   :  { %v13974_v32 = vpop.eup %13973  ;;  %v11469_v36 = vpop.xlane.xlu1 %11468 }
 0x82a   :  { %v11532_v37 = vmul.f32 %v13974_v32, %v16742_v34  ;;  %v11504_v9 = vadd.f32 1e-05, %v11488_v39  ;;  %v11487_v31 = vmul.f32 0.03125, %v11469_v36  ;;  %13627 = vmatprep.mubr.msk.f32.mxu0 %vm61_vm0, %v16866_v49 }
 0x82b   :  { %v13976_v60 = vpop.eup %13975  ;;  %13628 = vmatmul.mubr.msk.f32.gmra.mxu0 %vm61_vm0, %v16869_v51 }
 0x82c   :  { %13981 = vrsqrt.f32 %v11504_v9  ;;  %v11503_v47 = vadd.f32 1e-05, %v11487_v31  ;;  %v11531_v1 = vmul.f32 %v13976_v60, %v16748_v45  ;;  %v11554_v13 = vmul.f32 %v16798_v14, %v11532_v37 }
 0x82e   :  { %13983 = vrsqrt.f32 %v11503_v47  ;;  %v11553_v23 = vmul.f32 %v16798_v14, %v11531_v1  ;;  %v16883_v46 = vadd.f32 %v16806_v18, %v11554_v13 }
 0x830   :  { %v16880_v34 = vadd.f32 %v16806_v18, %v11553_v23 }
 0x831   :  { %v13978_v2 = vpop.eup %13977 }
 0x832   :  { %v11534_v24 = vmul.f32 %v13978_v2, %v16760_v61  ;;  %13630 = vmatprep.mubr.msk.f32.mxu0 %vm61_vm0, %v16880_v34 }
 0x833   :  { %v13980_v42 = vpop.eup %13979  ;;  %13631 = vmatmul.mubr.msk.f32.gmra.mxu0 %vm61_vm0, %v16883_v46 }
 0x834   :  { %v11533_v45 = vmul.f32 %v13980_v42, %v16763_v27  ;;  %v11556_v50 = vmul.f32 %v16798_v14, %v11534_v24 }
 0x836   :  { %v11555_v17 = vmul.f32 %v16798_v14, %v11533_v45  ;;  %v16897_v43 = vadd.f32 %v16806_v18, %v11556_v50 }
 0x838   :  { %v16894_v57 = vadd.f32 %v16806_v18, %v11555_v17 }
 0x839   :  { %v13982_v10 = vpop.eup %13981 }
 0x83a   :  { %v11536_v61 = vmul.f32 %v13982_v10, %v16772_v7  ;;  %13633 = vmatprep.mubr.msk.f32.mxu0 %vm61_vm0, %v16894_v57  ;;  %v11804_v7 = vld [vmem:[%s17272_s6 + $0x18] sm:$0xff] }
 0x83b   :  { %v13984_v40 = vpop.eup %13983  ;;  %13634 = vmatmul.mubr.msk.f32.gmra.mxu0 %vm61_vm0, %v16897_v43  ;;  %13647 = vmatprep.subr.mxu1 %v11804_v7 }
 0x83c   :  { %v11535_v27 = vmul.f32 %v13984_v40, %v16775_v8  ;;  %v11558_v63 = vmul.f32 %v16798_v14, %v11536_v61  ;;  %13648 = vmatpush3.msra.mxu1 %v11804_v7  ;;  %v11803_v8 = vld [vmem:[%s17272_s6 + $0x10] sm:$0xff] }
 0x83d   :  { %13649 = vmatprep.subr.mxu1 %v11803_v8 }
 0x83e   :  { %v11557_v58 = vmul.f32 %v16798_v14, %v11535_v27  ;;  %v16911_v38 = vadd.f32 %v16806_v18, %v11558_v63  ;;  %v11802_v14 = vld [vmem:[%s17272_s6 + $0x8] sm:$0xff]  ;;  %13650 = vmatpush3.msra.mxu1 %v11803_v8 }
 0x83f   :  { %13651 = vmatprep.subr.mxu1 %v11802_v14 }
 0x840   :  { %v16908_v48 = vadd.f32 %v16806_v18, %v11557_v58  ;;  %v11801_v18 = vld [vmem:[%s17272_s6] sm:$0xff]  ;;  %13652 = vmatpush3.msra.mxu1 %v11802_v14 }
 0x841   :  { %13653 = vmatprep.subr.mxu1 %v11801_v18 }
 0x842   :  { %13636 = vmatprep.mubr.msk.f32.mxu0 %vm61_vm0, %v16908_v48  ;;  %13654 = vmatpush3.msra.mxu1 %v11801_v18 }
 0x843   :  { %13637 = vmatmul.mubr.msk.f32.gmra.mxu0 %vm61_vm0, %v16911_v38 }
 0x8cb   :  { %v13617_v0 = vpop.f32.mrf.mxu0 }
 0x8cc   :  { %v11712_v52 = vadd.f32 %v13617_v0, %v12527_v25 }
 0x8cd   :  { %v11706_v54 = vpop.f32.mrf.mxu0 }
 0x8ce   :  { %v11707_v59 = vadd.f32 %v12527_v25, %v11706_v54  ;;  %v11786_v53 = vmax.f32 %v11712_v52, 0.0  ;;  %v16951_v52 = vld [vmem:[%s17276_s7] ss:$0 sm:$0xff] }
 0x8d0   :  { %v11785_v5 = vmax.f32 %v11707_v59, 0.0 }
 0x8d2   :  { %13655 = vmatprep.mubr.msk.f32.mxu1 %vm11816_vm5, %v11785_v5 }
 0x8d3   :  { %13656 = vmatmul.mubr.msk.f32.vlgmr.msra.gmra.mxu1 %vm11816_vm5, %v11786_v53 }
 0x8d6   :  { %v13620_v41 = vpop.f32.mrf.mxu0 }
 0x8d7   :  { %v11722_v56 = vadd.f32 %v13620_v41, %v12527_v25 }
 0x8d8   :  { %v11716_v19 = vpop.f32.mrf.mxu0 }
 0x8d9   :  { %v11717_v16 = vadd.f32 %v12527_v25, %v11716_v19  ;;  %v11788_v21 = vmax.f32 %v11722_v56, 0.0 }
 0x8db   :  { %v11787_v22 = vmax.f32 %v11717_v16, 0.0  ;;  %v13623_v28 = vpop.f32.mrf.mxu0 }
 0x8dc   :  { %v11732_v11 = vadd.f32 %v13623_v28, %v12527_v25 }
 0x8dd   :  { %v11726_v12 = vpop.f32.mrf.mxu0  ;;  %13658 = vmatprep.mubr.msk.f32.mxu1 %vm11816_vm5, %v11787_v22 }
 0x8de   :  { %v11727_v4 = vadd.f32 %v12527_v25, %v11726_v12  ;;  %13659 = vmatmul.mubr.msk.f32.gmra.mxu1 %vm11816_vm5, %v11788_v21  ;;  %v11790_v35 = vmax.f32 %v11732_v11, 0.0 }
 0x8e0   :  { %v11789_v3 = vmax.f32 %v11727_v4, 0.0 }
 0x8e2   :  { %13661 = vmatprep.mubr.msk.f32.mxu1 %vm11816_vm5, %v11789_v3 }
 0x8e3   :  { %v13626_v33 = vpop.f32.mrf.mxu0  ;;  %13662 = vmatmul.mubr.msk.f32.gmra.mxu1 %vm11816_vm5, %v11790_v35 }
 0x8e4   :  { %v11742_v6 = vadd.f32 %v13626_v33, %v12527_v25 }
 0x8e5   :  { %v11736_v39 = vpop.f32.mrf.mxu0 }
 0x8e6   :  { %v11737_v32 = vadd.f32 %v12527_v25, %v11736_v39  ;;  %v11792_v37 = vmax.f32 %v11742_v6, 0.0 }
 0x8e8   :  { %v11791_v36 = vmax.f32 %v11737_v32, 0.0 }
 0x8ea   :  { %13664 = vmatprep.mubr.msk.f32.mxu1 %vm11816_vm5, %v11791_v36 }
 0x8eb   :  { %v13629_v9 = vpop.f32.mrf.mxu0  ;;  %13665 = vmatmul.mubr.msk.f32.gmra.mxu1 %vm11816_vm5, %v11792_v37 }
 0x8ec   :  { %v11752_v31 = vadd.f32 %v13629_v9, %v12527_v25 }
 0x8ed   :  { %v11746_v60 = vpop.f32.mrf.mxu0 }
 0x8ee   :  { %v11747_v47 = vadd.f32 %v12527_v25, %v11746_v60  ;;  %v11794_v13 = vmax.f32 %v11752_v31, 0.0 }
 0x8f0   :  { %v11793_v1 = vmax.f32 %v11747_v47, 0.0 }
 0x8f2   :  { %13667 = vmatprep.mubr.msk.f32.mxu1 %vm11816_vm5, %v11793_v1 }
 0x8f3   :  { %v13632_v23 = vpop.f32.mrf.mxu0  ;;  %13668 = vmatmul.mubr.msk.f32.gmra.mxu1 %vm11816_vm5, %v11794_v13 }
 0x8f4   :  { %v11762_v2 = vadd.f32 %v13632_v23, %v12527_v25 }
 0x8f5   :  { %v11756_v24 = vpop.f32.mrf.mxu0 }
 0x8f6   :  { %v11757_v42 = vadd.f32 %v12527_v25, %v11756_v24  ;;  %v11796_v50 = vmax.f32 %v11762_v2, 0.0 }
 0x8f8   :  { %v11795_v45 = vmax.f32 %v11757_v42, 0.0 }
 0x8fa   :  { %13670 = vmatprep.mubr.msk.f32.mxu1 %vm11816_vm5, %v11795_v45 }
 0x8fb   :  { %v13635_v17 = vpop.f32.mrf.mxu0  ;;  %13671 = vmatmul.mubr.msk.f32.gmra.mxu1 %vm11816_vm5, %v11796_v50 }
 0x8fc   :  { %v11772_v10 = vadd.f32 %v13635_v17, %v12527_v25 }
 0x8fd   :  { %v11766_v61 = vpop.f32.mrf.mxu0 }
 0x8fe   :  { %v11767_v40 = vadd.f32 %v12527_v25, %v11766_v61  ;;  %v11798_v63 = vmax.f32 %v11772_v10, 0.0 }
 0x900   :  { %v11797_v27 = vmax.f32 %v11767_v40, 0.0 }
 0x902   :  { %13673 = vmatprep.mubr.msk.f32.mxu1 %vm11816_vm5, %v11797_v27 }
 0x903   :  { %v13638_v58 = vpop.f32.mrf.mxu0  ;;  %13674 = vmatmul.mubr.msk.f32.gmra.mxu1 %vm11816_vm5, %v11798_v63 }
 0x904   :  { %v11782_v7 = vadd.f32 %v13638_v58, %v12527_v25 }
 0x905   :  { %v11776_v8 = vpop.f32.mrf.mxu0 }
 0x906   :  { %v11777_v14 = vadd.f32 %v12527_v25, %v11776_v8  ;;  %v11800_v0 = vmax.f32 %v11782_v7, 0.0 }
 0x908   :  { %v11799_v18 = vmax.f32 %v11777_v14, 0.0 }
 0x90a   :  { %13676 = vmatprep.mubr.msk.f32.mxu1 %vm11816_vm5, %v11799_v18 }
 0x90b   :  { %13677 = vmatmul.mubr.msk.f32.gmra.mxu1 %vm11816_vm5, %v11800_v0 }
 0x993   :  { %v13657_v54 = vpop.f32.mrf.mxu1 }
 0x994   :  { %v11937_v59 = vadd.f32 %v13657_v54, %v16951_v52 }
 0x995   :  { %v11931_v5 = vpop.f32.mrf.mxu1 }
 0x996   :  { %v16955_v53 = vadd.f32 %v11937_v59, %v16813_v30  ;;  %v11932_v25 = vadd.f32 %v16951_v52, %v11931_v5 }
 0x998   :  { %v16959_v41 = vadd.f32 %v11932_v25, %v16810_v15  ;;  %v12031_v56 = vsel %vm61_vm0, %v16955_v53, 0.0 }
 0x999   :  { %12032 = vadd.xlane.f32.xlu0 %v12031_v56 }
 0x99a   :  { %v12028_v19 = vsel %vm61_vm0, %v16959_v41, 0.0 }
 0x99b   :  { %12029 = vadd.xlane.f32.xlu1 %v12028_v19 }
 0x99e   :  { %v13660_v16 = vpop.f32.mrf.mxu1 }
 0x99f   :  { %v11947_v22 = vadd.f32 %v13660_v16, %v16951_v52 }
 0x9a0   :  { %v11941_v28 = vpop.f32.mrf.mxu1 }
 0x9a1   :  { %v16967_v30 = vadd.f32 %v11947_v22, %v16829_v26  ;;  %v11942_v21 = vadd.f32 %v16951_v52, %v11941_v28 }
 0x9a3   :  { %v16971_v15 = vadd.f32 %v11942_v21, %v16823_v44  ;;  %v13663_v11 = vpop.f32.mrf.mxu1  ;;  %v12037_v12 = vsel %vm61_vm0, %v16967_v30, 0.0 }
 0x9a4   :  { %v11957_v4 = vadd.f32 %v13663_v11, %v16951_v52  ;;  %12038 = vadd.xlane.f32.xlu0 %v12037_v12 }
 0x9a5   :  { %v11951_v3 = vpop.f32.mrf.mxu1  ;;  %v12034_v35 = vsel %vm61_vm0, %v16971_v15, 0.0 }
 0x9a6   :  { %v16979_v33 = vadd.f32 %v11957_v4, %v16841_v55  ;;  %v11952_v26 = vadd.f32 %v16951_v52, %v11951_v3  ;;  %12035 = vadd.xlane.f32.xlu1 %v12034_v35 }
 0x9a8   :  { %v16983_v44 = vadd.f32 %v11952_v26, %v16838_v20  ;;  %v12043_v6 = vsel %vm61_vm0, %v16979_v33, 0.0 }
 0x9a9   :  { %12044 = vadd.xlane.f32.xlu0 %v12043_v6 }
 0x9aa   :  { %v12040_v39 = vsel %vm61_vm0, %v16983_v44, 0.0 }
 0x9ab   :  { %12041 = vadd.xlane.f32.xlu1 %v12040_v39  ;;  %v13666_v32 = vpop.f32.mrf.mxu1 }
 0x9ac   :  { %v11967_v36 = vadd.f32 %v13666_v32, %v16951_v52 }
 0x9ad   :  { %v11961_v37 = vpop.f32.mrf.mxu1 }
 0x9ae   :  { %v16991_v55 = vadd.f32 %v11967_v36, %v16855_v29  ;;  %v11962_v9 = vadd.f32 %v16951_v52, %v11961_v37 }
 0x9b0   :  { %v16995_v20 = vadd.f32 %v11962_v9, %v16852_v62  ;;  %v12049_v31 = vsel %vm61_vm0, %v16991_v55, 0.0 }
 0x9b1   :  { %12050 = vadd.xlane.f32.xlu0 %v12049_v31 }
 0x9b2   :  { %v12046_v60 = vsel %vm61_vm0, %v16995_v20, 0.0 }
 0x9b3   :  { %12047 = vadd.xlane.f32.xlu1 %v12046_v60  ;;  %v13669_v47 = vpop.f32.mrf.mxu1 }
 0x9b4   :  { %v11977_v1 = vadd.f32 %v13669_v47, %v16951_v52 }
 0x9b5   :  { %v11971_v13 = vpop.f32.mrf.mxu1 }
 0x9b6   :  { %v17003_v29 = vadd.f32 %v11977_v1, %v16869_v51  ;;  %v11972_v23 = vadd.f32 %v16951_v52, %v11971_v13 }
 0x9b8   :  { %v17007_v62 = vadd.f32 %v11972_v23, %v16866_v49  ;;  %v12055_v2 = vsel %vm61_vm0, %v17003_v29, 0.0 }
 0x9b9   :  { %12056 = vadd.xlane.f32.xlu0 %v12055_v2 }
 0x9ba   :  { %v12052_v24 = vsel %vm61_vm0, %v17007_v62, 0.0 }
 0x9bb   :  { %12053 = vadd.xlane.f32.xlu1 %v12052_v24  ;;  %v13672_v42 = vpop.f32.mrf.mxu1 }
 0x9bc   :  { %v11987_v45 = vadd.f32 %v13672_v42, %v16951_v52 }
 0x9bd   :  { %v11981_v50 = vpop.f32.mrf.mxu1 }
 0x9be   :  { %v17015_v51 = vadd.f32 %v11987_v45, %v16883_v46  ;;  %v11982_v17 = vadd.f32 %v16951_v52, %v11981_v50 }
 0x9c0   :  { %v17019_v49 = vadd.f32 %v11982_v17, %v16880_v34  ;;  %v12061_v10 = vsel %vm61_vm0, %v17015_v51, 0.0 }
 0x9c1   :  { %12062 = vadd.xlane.f32.xlu0 %v12061_v10 }
 0x9c2   :  { %v12058_v61 = vsel %vm61_vm0, %v17019_v49, 0.0 }
 0x9c3   :  { %12059 = vadd.xlane.f32.xlu1 %v12058_v61  ;;  %v13675_v40 = vpop.f32.mrf.mxu1 }
 0x9c4   :  { %v11997_v27 = vadd.f32 %v13675_v40, %v16951_v52 }
 0x9c5   :  { %v11991_v63 = vpop.f32.mrf.mxu1 }
 0x9c6   :  { %v17027_v46 = vadd.f32 %v11997_v27, %v16897_v43  ;;  %v11992_v58 = vadd.f32 %v16951_v52, %v11991_v63 }
 0x9c8   :  { %v17031_v34 = vadd.f32 %v11992_v58, %v16894_v57  ;;  %v12067_v7 = vsel %vm61_vm0, %v17027_v46, 0.0 }
 0x9c9   :  { %12068 = vadd.xlane.f32.xlu0 %v12067_v7 }
 0x9ca   :  { %v12064_v8 = vsel %vm61_vm0, %v17031_v34, 0.0 }
 0x9cb   :  { %12065 = vadd.xlane.f32.xlu1 %v12064_v8  ;;  %v13678_v14 = vpop.f32.mrf.mxu1 }
 0x9cc   :  { %v12007_v18 = vadd.f32 %v13678_v14, %v16951_v52 }
 0x9cd   :  { %v12001_v0 = vpop.f32.mrf.mxu1 }
 0x9ce   :  { %v17039_v43 = vadd.f32 %v12007_v18, %v16911_v38  ;;  %v12002_v54 = vadd.f32 %v16951_v52, %v12001_v0 }
 0x9d0   :  { %v17043_v57 = vadd.f32 %v12002_v54, %v16908_v48  ;;  %v12073_v59 = vsel %vm61_vm0, %v17039_v43, 0.0 }
 0x9d1   :  { %12074 = vadd.xlane.f32.xlu0 %v12073_v59 }
 0x9d2   :  { %v12070_v5 = vsel %vm61_vm0, %v17043_v57, 0.0 }
 0x9d3   :  { %12071 = vadd.xlane.f32.xlu1 %v12070_v5 }
 0xa22   :  { %v12033_v25 = vpop.xlane.xlu0 %12032 }
 0xa23   :  { %v12077_v56 = vmul.f32 0.03125, %v12033_v25 }
 0xa24   :  { %v12030_v19 = vpop.xlane.xlu1 %12029 }
 0xa25   :  { %v17050_v16 = vsub.f32 %v16955_v53, %v12077_v56  ;;  %v12076_v38 = vmul.f32 0.03125, %v12030_v19 }
 0xa27   :  { %v17053_v52 = vsub.f32 %v16959_v41, %v12076_v38  ;;  %v12109_v48 = vmul.f32 %v17050_v16, %v17050_v16 }
 0xa29   :  { %v12127_v22 = vsel %vm61_vm0, %v12109_v48, 0.0  ;;  %v12108_v28 = vmul.f32 %v17053_v52, %v17053_v52 }
 0xa2a   :  { %12128 = vadd.xlane.f32.xlu0 %v12127_v22 }
 0xa2b   :  { %v12124_v21 = vsel %vm61_vm0, %v12108_v28, 0.0 }
 0xa2c   :  { %12125 = vadd.xlane.f32.xlu1 %v12124_v21 }
 0xa2d   :  { %v12039_v11 = vpop.xlane.xlu0 %12038 }
 0xa2e   :  { %v12079_v12 = vmul.f32 0.03125, %v12039_v11 }
 0xa2f   :  { %v12036_v53 = vpop.xlane.xlu1 %12035 }
 0xa30   :  { %v17062_v4 = vsub.f32 %v16967_v30, %v12079_v12  ;;  %v12078_v41 = vmul.f32 0.03125, %v12036_v53 }
 0xa32   :  { %v17065_v3 = vsub.f32 %v16971_v15, %v12078_v41  ;;  %v12045_v35 = vpop.xlane.xlu0 %12044  ;;  %v12111_v26 = vmul.f32 %v17062_v4, %v17062_v4 }
 0xa33   :  { %v12081_v6 = vmul.f32 0.03125, %v12045_v35 }
 0xa34   :  { %v12042_v39 = vpop.xlane.xlu1 %12041  ;;  %v12133_v32 = vsel %vm61_vm0, %v12111_v26, 0.0  ;;  %v12110_v36 = vmul.f32 %v17065_v3, %v17065_v3 }
 0xa35   :  { %v17073_v37 = vsub.f32 %v16979_v33, %v12081_v6  ;;  %v12080_v30 = vmul.f32 0.03125, %v12042_v39  ;;  %12134 = vadd.xlane.f32.xlu0 %v12133_v32 }
 0xa36   :  { %v12130_v9 = vsel %vm61_vm0, %v12110_v36, 0.0 }
 0xa37   :  { %v17077_v15 = vsub.f32 %v16983_v44, %v12080_v30  ;;  %12131 = vadd.xlane.f32.xlu1 %v12130_v9  ;;  %v12113_v31 = vmul.f32 %v17073_v37, %v17073_v37 }
 0xa39   :  { %v12139_v60 = vsel %vm61_vm0, %v12113_v31, 0.0  ;;  %v12112_v47 = vmul.f32 %v17077_v15, %v17077_v15 }
 0xa3a   :  { %12140 = vadd.xlane.f32.xlu0 %v12139_v60  ;;  %v12051_v1 = vpop.xlane.xlu0 %12050 }
 0xa3b   :  { %v12083_v33 = vmul.f32 0.03125, %v12051_v1  ;;  %v12136_v13 = vsel %vm61_vm0, %v12112_v47, 0.0 }
 0xa3c   :  { %v12048_v23 = vpop.xlane.xlu1 %12047  ;;  %12137 = vadd.xlane.f32.xlu1 %v12136_v13 }
 0xa3d   :  { %v17086_v2 = vsub.f32 %v16991_v55, %v12083_v33  ;;  %v12082_v44 = vmul.f32 0.03125, %v12048_v23 }
 0xa3f   :  { %v17089_v24 = vsub.f32 %v16995_v20, %v12082_v44  ;;  %v12115_v42 = vmul.f32 %v17086_v2, %v17086_v2 }
 0xa41   :  { %v12145_v45 = vsel %vm61_vm0, %v12115_v42, 0.0  ;;  %v12114_v50 = vmul.f32 %v17089_v24, %v17089_v24 }
 0xa42   :  { %12146 = vadd.xlane.f32.xlu0 %v12145_v45  ;;  %v12057_v17 = vpop.xlane.xlu0 %12056 }
 0xa43   :  { %v12085_v10 = vmul.f32 0.03125, %v12057_v17  ;;  %v12142_v61 = vsel %vm61_vm0, %v12114_v50, 0.0  ;;  %v17148_v17 = vld [vmem:[%s17277_s10] ss:$0 sm:$0xff] }
 0xa44   :  { %v12054_v40 = vpop.xlane.xlu1 %12053  ;;  %12143 = vadd.xlane.f32.xlu1 %v12142_v61 }
 0xa45   :  { %v17098_v55 = vsub.f32 %v17003_v29, %v12085_v10  ;;  %v12084_v20 = vmul.f32 0.03125, %v12054_v40 }
 0xa47   :  { %v17101_v27 = vsub.f32 %v17007_v62, %v12084_v20  ;;  %v12117_v63 = vmul.f32 %v17098_v55, %v17098_v55 }
 0xa49   :  { %v12151_v58 = vsel %vm61_vm0, %v12117_v63, 0.0  ;;  %v12116_v7 = vmul.f32 %v17101_v27, %v17101_v27 }
 0xa4a   :  { %12152 = vadd.xlane.f32.xlu0 %v12151_v58  ;;  %v12063_v8 = vpop.xlane.xlu0 %12062  ;;  %v17154_v58 = vld [vmem:[%s17278_s11] ss:$0 sm:$0xff] }
 0xa4b   :  { %v12087_v14 = vmul.f32 0.03125, %v12063_v8  ;;  %v12148_v18 = vsel %vm61_vm0, %v12116_v7, 0.0 }
 0xa4c   :  { %v12060_v0 = vpop.xlane.xlu1 %12059  ;;  %12149 = vadd.xlane.f32.xlu1 %v12148_v18 }
 0xa4d   :  { %v17110_v29 = vsub.f32 %v17015_v51, %v12087_v14  ;;  %v12086_v62 = vmul.f32 0.03125, %v12060_v0 }
 0xa4f   :  { %v17113_v54 = vsub.f32 %v17019_v49, %v12086_v62  ;;  %v12119_v59 = vmul.f32 %v17110_v29, %v17110_v29 }
 0xa51   :  { %v12157_v5 = vsel %vm61_vm0, %v12119_v59, 0.0  ;;  %v12118_v25 = vmul.f32 %v17113_v54, %v17113_v54 }
 0xa52   :  { %12158 = vadd.xlane.f32.xlu0 %v12157_v5  ;;  %v12069_v56 = vpop.xlane.xlu0 %12068 }
 0xa53   :  { %v12089_v19 = vmul.f32 0.03125, %v12069_v56  ;;  %v12154_v38 = vsel %vm61_vm0, %v12118_v25, 0.0 }
 0xa54   :  { %v12066_v48 = vpop.xlane.xlu1 %12065  ;;  %12155 = vadd.xlane.f32.xlu1 %v12154_v38 }
 0xa55   :  { %v17122_v51 = vsub.f32 %v17027_v46, %v12089_v19  ;;  %v12088_v49 = vmul.f32 0.03125, %v12066_v48 }
 0xa57   :  { %v17125_v22 = vsub.f32 %v17031_v34, %v12088_v49  ;;  %v12121_v28 = vmul.f32 %v17122_v51, %v17122_v51 }
 0xa59   :  { %v12163_v21 = vsel %vm61_vm0, %v12121_v28, 0.0  ;;  %v12120_v11 = vmul.f32 %v17125_v22, %v17125_v22 }
 0xa5a   :  { %12164 = vadd.xlane.f32.xlu0 %v12163_v21  ;;  %v12075_v12 = vpop.xlane.xlu0 %12074 }
 0xa5b   :  { %v12091_v53 = vmul.f32 0.03125, %v12075_v12  ;;  %v12160_v41 = vsel %vm61_vm0, %v12120_v11, 0.0 }
 0xa5c   :  { %12161 = vadd.xlane.f32.xlu1 %v12160_v41  ;;  %v12072_v46 = vpop.xlane.xlu1 %12071 }
 0xa5d   :  { %v17134_v35 = vsub.f32 %v17039_v43, %v12091_v53  ;;  %v12090_v34 = vmul.f32 0.03125, %v12072_v46 }
 0xa5f   :  { %v17137_v26 = vsub.f32 %v17043_v57, %v12090_v34  ;;  %v12123_v6 = vmul.f32 %v17134_v35, %v17134_v35 }
 0xa61   :  { %v12169_v39 = vsel %vm61_vm0, %v12123_v6, 0.0  ;;  %v12122_v32 = vmul.f32 %v17137_v26, %v17137_v26 }
 0xa62   :  { %12170 = vadd.xlane.f32.xlu0 %v12169_v39 }
 0xa63   :  { %v12166_v36 = vsel %vm61_vm0, %v12122_v32, 0.0 }
 0xa64   :  { %12167 = vadd.xlane.f32.xlu1 %v12166_v36 }
 0xab3   :  { %v12129_v30 = vpop.xlane.xlu0 %12128 }
 0xab4   :  { %v12173_v9 = vmul.f32 0.03125, %v12129_v30 }
 0xab5   :  { %v12126_v43 = vpop.xlane.xlu1 %12125 }
 0xab6   :  { %v12189_v31 = vadd.f32 1e-05, %v12173_v9  ;;  %v12172_v60 = vmul.f32 0.03125, %v12126_v43 }
 0xab8   :  { %13985 = vrsqrt.f32 %v12189_v31  ;;  %v12188_v57 = vadd.f32 1e-05, %v12172_v60 }
 0xaba   :  { %13987 = vrsqrt.f32 %v12188_v57 }
 0xabe   :  { %v12135_v47 = vpop.xlane.xlu0 %12134 }
 0xabf   :  { %v12175_v1 = vmul.f32 0.03125, %v12135_v47 }
 0xac0   :  { %v12132_v33 = vpop.xlane.xlu1 %12131 }
 0xac1   :  { %v12191_v13 = vadd.f32 1e-05, %v12175_v1  ;;  %v12174_v23 = vmul.f32 0.03125, %v12132_v33 }
 0xac3   :  { %13989 = vrsqrt.f32 %v12191_v13  ;;  %v12190_v44 = vadd.f32 1e-05, %v12174_v23  ;;  %v12141_v42 = vpop.xlane.xlu0 %12140 }
 0xac4   :  { %v12177_v45 = vmul.f32 0.03125, %v12141_v42 }
 0xac5   :  { %v13986_v50 = vpop.eup %13985  ;;  %13991 = vrsqrt.f32 %v12190_v44  ;;  %v12138_v10 = vpop.xlane.xlu1 %12137 }
 0xac6   :  { %v12221_v61 = vmul.f32 %v13986_v50, %v17050_v16  ;;  %v12193_v40 = vadd.f32 1e-05, %v12177_v45  ;;  %v12176_v20 = vmul.f32 0.03125, %v12138_v10 }
 0xac7   :  { %v13988_v63 = vpop.eup %13987 }
 0xac8   :  { %v12243_v7 = vmul.f32 %v17148_v17, %v12221_v61  ;;  %v12220_v8 = vmul.f32 %v13988_v63, %v17053_v52  ;;  %13993 = vrsqrt.f32 %v12193_v40  ;;  %v12192_v14 = vadd.f32 1e-05, %v12176_v20 }
 0xaca   :  { %v12265_v18 = vadd.f32 %v17154_v58, %v12243_v7  ;;  %v12242_v0 = vmul.f32 %v17148_v17, %v12220_v8  ;;  %13995 = vrsqrt.f32 %v12192_v14 }
 0xacb   :  { %v12147_v16 = vpop.xlane.xlu0 %12146 }
 0xacc   :  { %12281 = vst.msk [vmem:[%s17279_s12 + $0x8] sm:$0xff] %vm61_vm0, %v12265_v18  ;;  %v12264_v62 = vadd.f32 %v17154_v58, %v12242_v0  ;;  %v12179_v59 = vmul.f32 0.03125, %v12147_v16 }
 0xacd   :  { %v12144_v5 = vpop.xlane.xlu1 %12143 }
 0xace   :  { %12280 = vst.msk [vmem:[%s17279_s12] sm:$0xff] %vm61_vm0, %v12264_v62  ;;  %v12195_v52 = vadd.f32 1e-05, %v12179_v59  ;;  %v12178_v25 = vmul.f32 0.03125, %v12144_v5 }
 0xad0   :  { %v13990_v56 = vpop.eup %13989  ;;  %13997 = vrsqrt.f32 %v12195_v52  ;;  %v12194_v19 = vadd.f32 1e-05, %v12178_v25 }
 0xad1   :  { %v12223_v38 = vmul.f32 %v13990_v56, %v17062_v4 }
 0xad2   :  { %v13992_v48 = vpop.eup %13991  ;;  %13999 = vrsqrt.f32 %v12194_v19 }
 0xad3   :  { %v12245_v49 = vmul.f32 %v17148_v17, %v12223_v38  ;;  %v12222_v28 = vmul.f32 %v13992_v48, %v17065_v3  ;;  %v12153_v21 = vpop.xlane.xlu0 %12152 }
 0xad4   :  { %v12181_v11 = vmul.f32 0.03125, %v12153_v21 }
 0xad5   :  { %v13994_v12 = vpop.eup %13993  ;;  %v12267_v53 = vadd.f32 %v17154_v58, %v12245_v49  ;;  %v12244_v41 = vmul.f32 %v17148_v17, %v12222_v28  ;;  %v12150_v46 = vpop.xlane.xlu1 %12149 }
 0xad6   :  { %v12225_v34 = vmul.f32 %v13994_v12, %v17073_v37  ;;  %v12197_v6 = vadd.f32 1e-05, %v12181_v11  ;;  %v12180_v39 = vmul.f32 0.03125, %v12150_v46 }
 0xad7   :  { %v13996_v32 = vpop.eup %13995  ;;  %12283 = vst.msk [vmem:[%s17279_s12 + $0x18] sm:$0xff] %vm61_vm0, %v12267_v53  ;;  %v12266_v4 = vadd.f32 %v17154_v58, %v12244_v41 }
 0xad8   :  { %v12247_v3 = vmul.f32 %v17148_v17, %v12225_v34  ;;  %v12224_v36 = vmul.f32 %v13996_v32, %v17077_v15  ;;  %14001 = vrsqrt.f32 %v12197_v6  ;;  %v12196_v30 = vadd.f32 1e-05, %v12180_v39 }
 0xad9   :  { %12282 = vst.msk [vmem:[%s17279_s12 + $0x10] sm:$0xff] %vm61_vm0, %v12266_v4 }
 0xada   :  { %v12269_v37 = vadd.f32 %v17154_v58, %v12247_v3  ;;  %v12246_v9 = vmul.f32 %v17148_v17, %v12224_v36  ;;  %14003 = vrsqrt.f32 %v12196_v30 }
 0xadb   :  { %v12159_v43 = vpop.xlane.xlu0 %12158 }
 0xadc   :  { %12285 = vst.msk [vmem:[%s17279_s12 + $0x28] sm:$0xff] %vm61_vm0, %v12269_v37  ;;  %v12268_v15 = vadd.f32 %v17154_v58, %v12246_v9  ;;  %v12183_v31 = vmul.f32 0.03125, %v12159_v43 }
 0xadd   :  { %v13998_v60 = vpop.eup %13997  ;;  %v12156_v57 = vpop.xlane.xlu1 %12155 }
 0xade   :  { %12284 = vst.msk [vmem:[%s17279_s12 + $0x20] sm:$0xff] %vm61_vm0, %v12268_v15  ;;  %v12227_v47 = vmul.f32 %v13998_v60, %v17086_v2  ;;  %v12199_v1 = vadd.f32 1e-05, %v12183_v31  ;;  %v12182_v33 = vmul.f32 0.03125, %v12156_v57 }
 0xadf   :  { %v14000_v13 = vpop.eup %13999 }
 0xae0   :  { %v12249_v23 = vmul.f32 %v17148_v17, %v12227_v47  ;;  %v12226_v44 = vmul.f32 %v14000_v13, %v17089_v24  ;;  %14005 = vrsqrt.f32 %v12199_v1  ;;  %v12198_v42 = vadd.f32 1e-05, %v12182_v33 }
 0xae2   :  { %v12271_v45 = vadd.f32 %v17154_v58, %v12249_v23  ;;  %v12248_v50 = vmul.f32 %v17148_v17, %v12226_v44  ;;  %14007 = vrsqrt.f32 %v12198_v42 }
 0xae3   :  { %v12165_v10 = vpop.xlane.xlu0 %12164 }
 0xae4   :  { %12287 = vst.msk [vmem:[%s17279_s12 + $0x38] sm:$0xff] %vm61_vm0, %v12271_v45  ;;  %v12270_v2 = vadd.f32 %v17154_v58, %v12248_v50  ;;  %v12185_v61 = vmul.f32 0.03125, %v12165_v10 }
 0xae5   :  { %v14002_v40 = vpop.eup %14001  ;;  %v12162_v20 = vpop.xlane.xlu1 %12161 }
 0xae6   :  { %12286 = vst.msk [vmem:[%s17279_s12 + $0x30] sm:$0xff] %vm61_vm0, %v12270_v2  ;;  %v12229_v24 = vmul.f32 %v14002_v40, %v17098_v55  ;;  %v12201_v63 = vadd.f32 1e-05, %v12185_v61  ;;  %v12184_v7 = vmul.f32 0.03125, %v12162_v20 }
 0xae7   :  { %v14004_v8 = vpop.eup %14003 }
 0xae8   :  { %v12251_v14 = vmul.f32 %v17148_v17, %v12229_v24  ;;  %v12228_v18 = vmul.f32 %v14004_v8, %v17101_v27  ;;  %14009 = vrsqrt.f32 %v12201_v63  ;;  %v12200_v0 = vadd.f32 1e-05, %v12184_v7 }
 0xaea   :  { %v12273_v16 = vadd.f32 %v17154_v58, %v12251_v14  ;;  %v12250_v62 = vmul.f32 %v17148_v17, %v12228_v18  ;;  %14011 = vrsqrt.f32 %v12200_v0 }
 0xaeb   :  { %v12171_v59 = vpop.xlane.xlu0 %12170 }
 0xaec   :  { %12289 = vst.msk [vmem:[%s17279_s12 + $0x48] sm:$0xff] %vm61_vm0, %v12273_v16  ;;  %v12272_v55 = vadd.f32 %v17154_v58, %v12250_v62  ;;  %v12187_v5 = vmul.f32 0.03125, %v12171_v59 }
 0xaed   :  { %v14006_v52 = vpop.eup %14005  ;;  %v12168_v25 = vpop.xlane.xlu1 %12167 }
 0xaee   :  { %12288 = vst.msk [vmem:[%s17279_s12 + $0x40] sm:$0xff] %vm61_vm0, %v12272_v55  ;;  %v12231_v27 = vmul.f32 %v14006_v52, %v17110_v29  ;;  %v12203_v56 = vadd.f32 1e-05, %v12187_v5  ;;  %v12186_v19 = vmul.f32 0.03125, %v12168_v25 }
 0xaef   :  { %v14008_v38 = vpop.eup %14007 }
 0xaf0   :  { %v12253_v48 = vmul.f32 %v17148_v17, %v12231_v27  ;;  %v12230_v49 = vmul.f32 %v14008_v38, %v17113_v54  ;;  %14013 = vrsqrt.f32 %v12203_v56  ;;  %v12202_v28 = vadd.f32 1e-05, %v12186_v19 }
 0xaf2   :  { %v12275_v21 = vadd.f32 %v17154_v58, %v12253_v48  ;;  %v12252_v11 = vmul.f32 %v17148_v17, %v12230_v49  ;;  %14015 = vrsqrt.f32 %v12202_v28 }
 0xaf4   :  { %12291 = vst.msk [vmem:[%s17279_s12 + $0x58] sm:$0xff] %vm61_vm0, %v12275_v21  ;;  %v12274_v29 = vadd.f32 %v17154_v58, %v12252_v11 }
 0xaf5   :  { %v14010_v12 = vpop.eup %14009 }
 0xaf6   :  { %12290 = vst.msk [vmem:[%s17279_s12 + $0x50] sm:$0xff] %vm61_vm0, %v12274_v29  ;;  %v12233_v54 = vmul.f32 %v14010_v12, %v17122_v51 }
 0xaf7   :  { %v14012_v53 = vpop.eup %14011 }
 0xaf8   :  { %v12255_v41 = vmul.f32 %v17148_v17, %v12233_v54  ;;  %v12232_v46 = vmul.f32 %v14012_v53, %v17125_v22 }
 0xafa   :  { %v12277_v34 = vadd.f32 %v17154_v58, %v12255_v41  ;;  %v12254_v6 = vmul.f32 %v17148_v17, %v12232_v46 }
 0xafc   :  { %12293 = vst.msk [vmem:[%s17279_s12 + $0x68] sm:$0xff] %vm61_vm0, %v12277_v34  ;;  %v12276_v39 = vadd.f32 %v17154_v58, %v12254_v6 }
 0xafd   :  { %v14014_v32 = vpop.eup %14013 }
 0xafe   :  { %12292 = vst.msk [vmem:[%s17279_s12 + $0x60] sm:$0xff] %vm61_vm0, %v12276_v39  ;;  %v12235_v51 = vmul.f32 %v14014_v32, %v17134_v35 }
 0xaff   :  { %v14016_v22 = vpop.eup %14015 }
 0xb00   :  { %v12257_v4 = vmul.f32 %v17148_v17, %v12235_v51  ;;  %v12234_v3 = vmul.f32 %v14016_v22, %v17137_v26 }
 0xb02   :  { %v12279_v36 = vadd.f32 %v17154_v58, %v12257_v4  ;;  %v12256_v30 = vmul.f32 %v17148_v17, %v12234_v3 }
 0xb04   :  { %12295 = vst.msk [vmem:[%s17279_s12 + $0x78] sm:$0xff] %vm61_vm0, %v12279_v36  ;;  %v12278_v37 = vadd.f32 %v17154_v58, %v12256_v30 }
 0xb06   :  { %12294 = vst.msk [vmem:[%s17279_s12 + $0x70] sm:$0xff] %vm61_vm0, %v12278_v37 }

</bundles_post_ra>
